<compile_context>
chip_gen: v5e
topology: v5e:2x2
jax: 0.10.0
libtpu: 0.0.40
codegen_flags: <defaults>
</compile_context>

<pallas_src>
import jax
import jax.numpy as jnp
from jax.experimental import pallas as pl
from jax.experimental.pallas import tpu as pltpu

LANE = 128


def _round_up(n, m):
    return ((n + m - 1) // m) * m


# ----------------------------------------------------------------------------
# Pallas kernel
# ----------------------------------------------------------------------------
def make_lstm_model_kernel(layer_dim, seq_len, batch):
    """Builds the kernel for static layer count, sequence length and batch."""
    T, B = seq_len, batch

    def kernel(*refs):
        # ref layout:
        #   x_ref                                     (T*B, Dp)   time-major slab
        #   per layer l:  w_ih (D_lp, 4*Hp), w_hh (Hp, 4*Hp), b (1, 4*Hp)
        #                 [b = b_ih + b_hh, gate blocks lane-aligned to Hp]
        #   w_sm (Hp, Hp), b_sm (1, Hp), w_fc (Hp, Op), b_fc (1, Op)
        # outputs:
        #   out_ref (B, Op), hn_ref (L, B, Hp), cn_ref (L, B, Hp)
        idx = 0
        x_ref = refs[idx]; idx += 1
        layer_refs = []
        for _ in range(layer_dim):
            layer_refs.append((refs[idx], refs[idx + 1], refs[idx + 2]))
            idx += 3
        w_sm_ref, b_sm_ref, w_fc_ref, b_fc_ref = refs[idx: idx + 4]
        idx += 4
        out_ref, hn_ref, cn_ref = refs[idx: idx + 3]

        Hp = w_sm_ref.shape[0]

        # Current layer's input, as a time-major (T*B, D) slab.
        seq_slab = x_ref[...]

        hs = []
        for l, (w_ih_ref, w_hh_ref, b_ref) in enumerate(layer_refs):
            w_hh = w_hh_ref[...]

            # All timesteps' input-side gate pre-activations in one MXU matmul,
            # bias folded in.  (T*B, 4*Hp); gate g lives in lanes [g*Hp, g*Hp+H).
            proj = (
                jnp.dot(seq_slab, w_ih_ref[...], preferred_element_type=jnp.float32)
                + b_ref[...]
            )

            hs = []
            h = None
            c = None
            for t in range(T):
                g_in = proj[t * B:(t + 1) * B, :]          # (B, 4*Hp)
                if t == 0:
                    gates = g_in                           # h0 == 0: skip dead matmul
                else:
                    gates = g_in + jnp.dot(h, w_hh, preferred_element_type=jnp.float32)
                # 128-lane-aligned gate slices (no relayout).
                i_g = jax.nn.sigmoid(gates[:, 0 * Hp:1 * Hp])
                f_g = jax.nn.sigmoid(gates[:, 1 * Hp:2 * Hp])
                g_g = jnp.tanh(gates[:, 2 * Hp:3 * Hp])
                o_g = jax.nn.sigmoid(gates[:, 3 * Hp:4 * Hp])
                c = i_g * g_g if t == 0 else f_g * c + i_g * g_g   # c0 == 0
                h = o_g * jnp.tanh(c)
                hs.append(h)

            hn_ref[l, :, :] = h
            cn_ref[l, :, :] = c
            seq_slab = jnp.concatenate(hs, axis=0)         # (T*B, Hp) next layer input

        # out[:, -1, :] of the top layer; Dropout is identity at inference.
        y = hs[-1]                                         # (B, Hp)

        # smoothing_layer applied three times (LeakyReLU never applied in forward()).
        w_sm = w_sm_ref[...]
        b_sm = b_sm_ref[...]
        for _ in range(3):
            y = jnp.dot(y, w_sm, preferred_element_type=jnp.float32) + b_sm

        out_ref[...] = (
            jnp.dot(y, w_fc_ref[...], preferred_element_type=jnp.float32) + b_fc_ref[...]
        )

    return kernel


# ----------------------------------------------------------------------------
# Wrapper
# ----------------------------------------------------------------------------
def _pack_gate_cols(w_t, H, Hp):
    """(K, 4H) with PyTorch gate order [i,f,g,o] -> (K, 4*Hp), lane-aligned blocks."""
    K = w_t.shape[0]
    out = jnp.zeros((K, 4 * Hp), jnp.float32)
    for g in range(4):
        out = out.at[:, g * Hp:g * Hp + H].set(w_t[:, g * H:(g + 1) * H])
    return out


def lstm_model_forward(x, params, *, layer_dim, hidden_dim, output_dim):
    """Runs the full LSTMModel forward pass inside a single Pallas kernel."""
    B, T, D = x.shape
    H = hidden_dim
    Hp = _round_up(H, LANE)
    Op = _round_up(output_dim, LANE)
    Dp = _round_up(D, LANE)

    # Time-major, lane-padded input slab (T*B, Dp).
    x_tm = jnp.transpose(x, (1, 0, 2)).reshape(T * B, D)
    x_pad = jnp.zeros((T * B, Dp), jnp.float32).at[:, :D].set(x_tm)

    inputs = [x_pad]
    for l in range(layer_dim):
        w_ih, w_hh, b_ih, b_hh = params["lstm"][l]
        d_in = w_ih.shape[1]
        d_in_p = Dp if l == 0 else Hp
        w_ih_g = _pack_gate_cols(w_ih.T, H, Hp)                       # (d_in, 4*Hp)
        w_ih_p = jnp.zeros((d_in_p, 4 * Hp), jnp.float32).at[:d_in, :].set(w_ih_g)
        w_hh_g = _pack_gate_cols(w_hh.T, H, Hp)                       # (H, 4*Hp)
        w_hh_p = jnp.zeros((Hp, 4 * Hp), jnp.float32).at[:H, :].set(w_hh_g)
        b_p = _pack_gate_cols((b_ih + b_hh)[None, :], H, Hp)          # (1, 4*Hp)
        inputs += [w_ih_p, w_hh_p, b_p]

    w_sm_p = jnp.zeros((Hp, Hp), jnp.float32).at[:H, :H].set(params["w_sm"].T)
    b_sm_p = jnp.zeros((1, Hp), jnp.float32).at[0, :H].set(params["b_sm"])
    w_fc_p = jnp.zeros((Hp, Op), jnp.float32).at[:H, :output_dim].set(params["w_fc"].T)
    b_fc_p = jnp.zeros((1, Op), jnp.float32).at[0, :output_dim].set(params["b_fc"])
    inputs += [w_sm_p, b_sm_p, w_fc_p, b_fc_p]

    vmem = pl.BlockSpec(memory_space=pltpu.MemorySpace.VMEM)
    out_shapes = (
        jax.ShapeDtypeStruct((B, Op), jnp.float32),                   # out (lane-dense)
        jax.ShapeDtypeStruct((layer_dim, B, Hp), jnp.float32),        # hn  (lane-dense)
        jax.ShapeDtypeStruct((layer_dim, B, Hp), jnp.float32),        # cn  (lane-dense)
    )

    out_p, hn_p, cn_p = pl.pallas_call(
        make_lstm_model_kernel(layer_dim, T, B),
        out_shape=out_shapes,
        in_specs=[vmem] * len(inputs),
        out_specs=(vmem, vmem, vmem),
    )(*inputs)

    # Slice padding back off in the wrapper (cheap XLA slices).
    return out_p[:, :output_dim], hn_p[:, :, :H], cn_p[:, :, :H]


# ----------------------------------------------------------------------------
# Pure-JAX reference (for correctness check)
# ----------------------------------------------------------------------------
def lstm_model_reference(x, params, *, layer_dim, hidden_dim, output_dim):
    B, T, _ = x.shape
    H = hidden_dim
    seq = x
    hn, cn = [], []
    for l in range(layer_dim):
        w_ih, w_hh, b_ih, b_hh = params["lstm"][l]
        h = jnp.zeros((B, H), jnp.float32)
        c = jnp.zeros((B, H), jnp.float32)
        outs = []
        for t in range(T):
            gates = seq[:, t, :] @ w_ih.T + b_ih + h @ w_hh.T + b_hh
            i_g = jax.nn.sigmoid(gates[:, 0 * H:1 * H])
            f_g = jax.nn.sigmoid(gates[:, 1 * H:2 * H])
            g_g = jnp.tanh(gates[:, 2 * H:3 * H])
            o_g = jax.nn.sigmoid(gates[:, 3 * H:4 * H])
            c = f_g * c + i_g * g_g
            h = o_g * jnp.tanh(c)
            outs.append(h)
        seq = jnp.stack(outs, axis=1)
        hn.append(h)
        cn.append(c)
    y = seq[:, -1, :]
    for _ in range(3):
        y = y @ params["w_sm"].T + params["b_sm"]
    out = y @ params["w_fc"].T + params["b_fc"]
    return out, jnp.stack(hn, 0), jnp.stack(cn, 0)


# ----------------------------------------------------------------------------
# Main
# ----------------------------------------------------------------------------
if __name__ == "__main__":
    B, T = 2, 8
    INPUT_DIM, HIDDEN_DIM, LAYER_DIM, OUTPUT_DIM = 16, 32, 2, 4

    key = jax.random.PRNGKey(0)
    keys = jax.random.split(key, 4 * LAYER_DIM + 6)

    bound = 1.0 / jnp.sqrt(HIDDEN_DIM)

    def uni(k, shape):
        return jax.random.uniform(k, shape, jnp.float32, -bound, bound)

    lstm_params = []
    ki = 0
    for l in range(LAYER_DIM):
        d_in = INPUT_DIM if l == 0 else HIDDEN_DIM
        w_ih = uni(keys[ki], (4 * HIDDEN_DIM, d_in)); ki += 1
        w_hh = uni(keys[ki], (4 * HIDDEN_DIM, HIDDEN_DIM)); ki += 1
        b_ih = uni(keys[ki], (4 * HIDDEN_DIM,)); ki += 1
        b_hh = uni(keys[ki], (4 * HIDDEN_DIM,)); ki += 1
        lstm_params.append((w_ih, w_hh, b_ih, b_hh))

    params = {
        "lstm": lstm_params,
        "w_sm": uni(keys[ki + 0], (HIDDEN_DIM, HIDDEN_DIM)),
        "b_sm": uni(keys[ki + 1], (HIDDEN_DIM,)),
        "w_fc": uni(keys[ki + 2], (OUTPUT_DIM, HIDDEN_DIM)),
        "b_fc": uni(keys[ki + 3], (OUTPUT_DIM,)),
    }

    x = jax.random.normal(keys[ki + 4], (B, T, INPUT_DIM), jnp.float32)

    out, hn, cn = lstm_model_forward(
        x, params, layer_dim=LAYER_DIM, hidden_dim=HIDDEN_DIM, output_dim=OUTPUT_DIM
    )
    jax.block_until_ready((out, hn, cn))

    ref_out, ref_hn, ref_cn = lstm_model_reference(
        x, params, layer_dim=LAYER_DIM, hidden_dim=HIDDEN_DIM, output_dim=OUTPUT_DIM
    )
    assert jnp.allclose(out, ref_out, atol=1e-4, rtol=1e-4)
    assert jnp.allclose(hn, ref_hn, atol=1e-4, rtol=1e-4)
    assert jnp.allclose(cn, ref_cn, atol=1e-4, rtol=1e-4)

    print("KERNEL_OK")
</pallas_src>

<mosaic_0001>
module attributes {stable_mosaic.version = 11 : i64} {
  func.func @kernel(%arg0: memref<16x128xf32, #tpu.memory_space<vmem>>, %arg1: memref<128x512xf32, #tpu.memory_space<vmem>>, %arg2: memref<128x512xf32, #tpu.memory_space<vmem>>, %arg3: memref<1x512xf32, #tpu.memory_space<vmem>>, %arg4: memref<128x512xf32, #tpu.memory_space<vmem>>, %arg5: memref<128x512xf32, #tpu.memory_space<vmem>>, %arg6: memref<1x512xf32, #tpu.memory_space<vmem>>, %arg7: memref<128x128xf32, #tpu.memory_space<vmem>>, %arg8: memref<1x128xf32, #tpu.memory_space<vmem>>, %arg9: memref<128x128xf32, #tpu.memory_space<vmem>>, %arg10: memref<1x128xf32, #tpu.memory_space<vmem>>, %arg11: memref<2x128xf32, #tpu.memory_space<vmem>>, %arg12: memref<2x2x128xf32, #tpu.memory_space<vmem>>, %arg13: memref<2x2x128xf32, #tpu.memory_space<vmem>>) attributes {dimension_semantics = [], scalar_prefetch = 0 : i64, scratch_operands = 0 : i64, tpu.core_type = #tpu.core_type<tc>} {
    %c0 = arith.constant 0 : index
    %c0_0 = arith.constant 0 : index
    %0 = vector.load %arg0[%c0, %c0_0] : memref<16x128xf32, #tpu.memory_space<vmem>>, vector<16x128xf32>
    %c0_1 = arith.constant 0 : index
    %c0_2 = arith.constant 0 : index
    %1 = vector.load %arg2[%c0_1, %c0_2] : memref<128x512xf32, #tpu.memory_space<vmem>>, vector<128x512xf32>
    %c0_3 = arith.constant 0 : index
    %c0_4 = arith.constant 0 : index
    %2 = vector.load %arg1[%c0_3, %c0_4] : memref<128x512xf32, #tpu.memory_space<vmem>>, vector<128x512xf32>
    %cst = arith.constant dense<0.000000e+00> : vector<16x512xf32>
    %3 = tpu.matmul %0, %2, %cst {dimension_numbers = #tpu.dot_dimension_numbers<[1], [0], [0], [1], [0, 0, 1, 1], [], []>} : vector<16x128xf32>, vector<128x512xf32>, vector<16x512xf32> -> vector<16x512xf32>
    %c0_5 = arith.constant 0 : index
    %c0_6 = arith.constant 0 : index
    %4 = vector.load %arg3[%c0_5, %c0_6] : memref<1x512xf32, #tpu.memory_space<vmem>>, vector<1x512xf32>
    %5 = vector.broadcast %4 : vector<1x512xf32> to vector<16x512xf32>
    %6 = arith.addf %3, %5 : vector<16x512xf32>
    %7 = vector.extract_strided_slice %6 {offsets = [0, 0], sizes = [2, 512], strides = [1, 1]} : vector<16x512xf32> to vector<2x512xf32>
    %8 = vector.extract_strided_slice %7 {offsets = [0, 0], sizes = [2, 128], strides = [1, 1]} : vector<2x512xf32> to vector<2x128xf32>
    %9 = arith.negf %8 : vector<2x128xf32>
    %10 = math.exp %9 : vector<2x128xf32>
    %cst_7 = arith.constant 1.000000e+00 : f32
    %11 = vector.broadcast %cst_7 : f32 to vector<2x128xf32>
    %12 = arith.addf %11, %10 : vector<2x128xf32>
    %13 = arith.divf %11, %12 : vector<2x128xf32>
    %14 = vector.extract_strided_slice %7 {offsets = [0, 256], sizes = [2, 128], strides = [1, 1]} : vector<2x512xf32> to vector<2x128xf32>
    %15 = math.tanh %14 : vector<2x128xf32>
    %16 = vector.extract_strided_slice %7 {offsets = [0, 384], sizes = [2, 128], strides = [1, 1]} : vector<2x512xf32> to vector<2x128xf32>
    %17 = arith.negf %16 : vector<2x128xf32>
    %18 = math.exp %17 : vector<2x128xf32>
    %cst_8 = arith.constant 1.000000e+00 : f32
    %19 = vector.broadcast %cst_8 : f32 to vector<2x128xf32>
    %20 = arith.addf %19, %18 : vector<2x128xf32>
    %21 = arith.divf %19, %20 : vector<2x128xf32>
    %22 = arith.mulf %13, %15 : vector<2x128xf32>
    %23 = math.tanh %22 : vector<2x128xf32>
    %24 = arith.mulf %21, %23 : vector<2x128xf32>
    %25 = vector.extract_strided_slice %6 {offsets = [2, 0], sizes = [2, 512], strides = [1, 1]} : vector<16x512xf32> to vector<2x512xf32>
    %cst_9 = arith.constant dense<0.000000e+00> : vector<2x512xf32>
    %26 = tpu.matmul %24, %1, %cst_9 {dimension_numbers = #tpu.dot_dimension_numbers<[1], [0], [0], [1], [0, 0, 1, 1], [], []>} : vector<2x128xf32>, vector<128x512xf32>, vector<2x512xf32> -> vector<2x512xf32>
    %27 = arith.addf %25, %26 : vector<2x512xf32>
    %28 = vector.extract_strided_slice %27 {offsets = [0, 0], sizes = [2, 128], strides = [1, 1]} : vector<2x512xf32> to vector<2x128xf32>
    %29 = arith.negf %28 : vector<2x128xf32>
    %30 = math.exp %29 : vector<2x128xf32>
    %cst_10 = arith.constant 1.000000e+00 : f32
    %31 = vector.broadcast %cst_10 : f32 to vector<2x128xf32>
    %32 = arith.addf %31, %30 : vector<2x128xf32>
    %33 = arith.divf %31, %32 : vector<2x128xf32>
    %34 = vector.extract_strided_slice %27 {offsets = [0, 128], sizes = [2, 128], strides = [1, 1]} : vector<2x512xf32> to vector<2x128xf32>
    %35 = arith.negf %34 : vector<2x128xf32>
    %36 = math.exp %35 : vector<2x128xf32>
    %cst_11 = arith.constant 1.000000e+00 : f32
    %37 = vector.broadcast %cst_11 : f32 to vector<2x128xf32>
    %38 = arith.addf %37, %36 : vector<2x128xf32>
    %39 = arith.divf %37, %38 : vector<2x128xf32>
    %40 = vector.extract_strided_slice %27 {offsets = [0, 256], sizes = [2, 128], strides = [1, 1]} : vector<2x512xf32> to vector<2x128xf32>
    %41 = math.tanh %40 : vector<2x128xf32>
    %42 = vector.extract_strided_slice %27 {offsets = [0, 384], sizes = [2, 128], strides = [1, 1]} : vector<2x512xf32> to vector<2x128xf32>
    %43 = arith.negf %42 : vector<2x128xf32>
    %44 = math.exp %43 : vector<2x128xf32>
    %cst_12 = arith.constant 1.000000e+00 : f32
    %45 = vector.broadcast %cst_12 : f32 to vector<2x128xf32>
    %46 = arith.addf %45, %44 : vector<2x128xf32>
    %47 = arith.divf %45, %46 : vector<2x128xf32>
    %48 = arith.mulf %39, %22 : vector<2x128xf32>
    %49 = arith.mulf %33, %41 : vector<2x128xf32>
    %50 = arith.addf %48, %49 : vector<2x128xf32>
    %51 = math.tanh %50 : vector<2x128xf32>
    %52 = arith.mulf %47, %51 : vector<2x128xf32>
    %53 = vector.extract_strided_slice %6 {offsets = [4, 0], sizes = [2, 512], strides = [1, 1]} : vector<16x512xf32> to vector<2x512xf32>
    %cst_13 = arith.constant dense<0.000000e+00> : vector<2x512xf32>
    %54 = tpu.matmul %52, %1, %cst_13 {dimension_numbers = #tpu.dot_dimension_numbers<[1], [0], [0], [1], [0, 0, 1, 1], [], []>} : vector<2x128xf32>, vector<128x512xf32>, vector<2x512xf32> -> vector<2x512xf32>
    %55 = arith.addf %53, %54 : vector<2x512xf32>
    %56 = vector.extract_strided_slice %55 {offsets = [0, 0], sizes = [2, 128], strides = [1, 1]} : vector<2x512xf32> to vector<2x128xf32>
    %57 = arith.negf %56 : vector<2x128xf32>
    %58 = math.exp %57 : vector<2x128xf32>
    %cst_14 = arith.constant 1.000000e+00 : f32
    %59 = vector.broadcast %cst_14 : f32 to vector<2x128xf32>
    %60 = arith.addf %59, %58 : vector<2x128xf32>
    %61 = arith.divf %59, %60 : vector<2x128xf32>
    %62 = vector.extract_strided_slice %55 {offsets = [0, 128], sizes = [2, 128], strides = [1, 1]} : vector<2x512xf32> to vector<2x128xf32>
    %63 = arith.negf %62 : vector<2x128xf32>
    %64 = math.exp %63 : vector<2x128xf32>
    %cst_15 = arith.constant 1.000000e+00 : f32
    %65 = vector.broadcast %cst_15 : f32 to vector<2x128xf32>
    %66 = arith.addf %65, %64 : vector<2x128xf32>
    %67 = arith.divf %65, %66 : vector<2x128xf32>
    %68 = vector.extract_strided_slice %55 {offsets = [0, 256], sizes = [2, 128], strides = [1, 1]} : vector<2x512xf32> to vector<2x128xf32>
    %69 = math.tanh %68 : vector<2x128xf32>
    %70 = vector.extract_strided_slice %55 {offsets = [0, 384], sizes = [2, 128], strides = [1, 1]} : vector<2x512xf32> to vector<2x128xf32>
    %71 = arith.negf %70 : vector<2x128xf32>
    %72 = math.exp %71 : vector<2x128xf32>
    %cst_16 = arith.constant 1.000000e+00 : f32
    %73 = vector.broadcast %cst_16 : f32 to vector<2x128xf32>
    %74 = arith.addf %73, %72 : vector<2x128xf32>
    %75 = arith.divf %73, %74 : vector<2x128xf32>
    %76 = arith.mulf %67, %50 : vector<2x128xf32>
    %77 = arith.mulf %61, %69 : vector<2x128xf32>
    %78 = arith.addf %76, %77 : vector<2x128xf32>
    %79 = math.tanh %78 : vector<2x128xf32>
    %80 = arith.mulf %75, %79 : vector<2x128xf32>
    %81 = vector.extract_strided_slice %6 {offsets = [6, 0], sizes = [2, 512], strides = [1, 1]} : vector<16x512xf32> to vector<2x512xf32>
    %cst_17 = arith.constant dense<0.000000e+00> : vector<2x512xf32>
    %82 = tpu.matmul %80, %1, %cst_17 {dimension_numbers = #tpu.dot_dimension_numbers<[1], [0], [0], [1], [0, 0, 1, 1], [], []>} : vector<2x128xf32>, vector<128x512xf32>, vector<2x512xf32> -> vector<2x512xf32>
    %83 = arith.addf %81, %82 : vector<2x512xf32>
    %84 = vector.extract_strided_slice %83 {offsets = [0, 0], sizes = [2, 128], strides = [1, 1]} : vector<2x512xf32> to vector<2x128xf32>
    %85 = arith.negf %84 : vector<2x128xf32>
    %86 = math.exp %85 : vector<2x128xf32>
    %cst_18 = arith.constant 1.000000e+00 : f32
    %87 = vector.broadcast %cst_18 : f32 to vector<2x128xf32>
    %88 = arith.addf %87, %86 : vector<2x128xf32>
    %89 = arith.divf %87, %88 : vector<2x128xf32>
    %90 = vector.extract_strided_slice %83 {offsets = [0, 128], sizes = [2, 128], strides = [1, 1]} : vector<2x512xf32> to vector<2x128xf32>
    %91 = arith.negf %90 : vector<2x128xf32>
    %92 = math.exp %91 : vector<2x128xf32>
    %cst_19 = arith.constant 1.000000e+00 : f32
    %93 = vector.broadcast %cst_19 : f32 to vector<2x128xf32>
    %94 = arith.addf %93, %92 : vector<2x128xf32>
    %95 = arith.divf %93, %94 : vector<2x128xf32>
    %96 = vector.extract_strided_slice %83 {offsets = [0, 256], sizes = [2, 128], strides = [1, 1]} : vector<2x512xf32> to vector<2x128xf32>
    %97 = math.tanh %96 : vector<2x128xf32>
    %98 = vector.extract_strided_slice %83 {offsets = [0, 384], sizes = [2, 128], strides = [1, 1]} : vector<2x512xf32> to vector<2x128xf32>
    %99 = arith.negf %98 : vector<2x128xf32>
    %100 = math.exp %99 : vector<2x128xf32>
    %cst_20 = arith.constant 1.000000e+00 : f32
    %101 = vector.broadcast %cst_20 : f32 to vector<2x128xf32>
    %102 = arith.addf %101, %100 : vector<2x128xf32>
    %103 = arith.divf %101, %102 : vector<2x128xf32>
    %104 = arith.mulf %95, %78 : vector<2x128xf32>
    %105 = arith.mulf %89, %97 : vector<2x128xf32>
    %106 = arith.addf %104, %105 : vector<2x128xf32>
    %107 = math.tanh %106 : vector<2x128xf32>
    %108 = arith.mulf %103, %107 : vector<2x128xf32>
    %109 = vector.extract_strided_slice %6 {offsets = [8, 0], sizes = [2, 512], strides = [1, 1]} : vector<16x512xf32> to vector<2x512xf32>
    %cst_21 = arith.constant dense<0.000000e+00> : vector<2x512xf32>
    %110 = tpu.matmul %108, %1, %cst_21 {dimension_numbers = #tpu.dot_dimension_numbers<[1], [0], [0], [1], [0, 0, 1, 1], [], []>} : vector<2x128xf32>, vector<128x512xf32>, vector<2x512xf32> -> vector<2x512xf32>
    %111 = arith.addf %109, %110 : vector<2x512xf32>
    %112 = vector.extract_strided_slice %111 {offsets = [0, 0], sizes = [2, 128], strides = [1, 1]} : vector<2x512xf32> to vector<2x128xf32>
    %113 = arith.negf %112 : vector<2x128xf32>
    %114 = math.exp %113 : vector<2x128xf32>
    %cst_22 = arith.constant 1.000000e+00 : f32
    %115 = vector.broadcast %cst_22 : f32 to vector<2x128xf32>
    %116 = arith.addf %115, %114 : vector<2x128xf32>
    %117 = arith.divf %115, %116 : vector<2x128xf32>
    %118 = vector.extract_strided_slice %111 {offsets = [0, 128], sizes = [2, 128], strides = [1, 1]} : vector<2x512xf32> to vector<2x128xf32>
    %119 = arith.negf %118 : vector<2x128xf32>
    %120 = math.exp %119 : vector<2x128xf32>
    %cst_23 = arith.constant 1.000000e+00 : f32
    %121 = vector.broadcast %cst_23 : f32 to vector<2x128xf32>
    %122 = arith.addf %121, %120 : vector<2x128xf32>
    %123 = arith.divf %121, %122 : vector<2x128xf32>
    %124 = vector.extract_strided_slice %111 {offsets = [0, 256], sizes = [2, 128], strides = [1, 1]} : vector<2x512xf32> to vector<2x128xf32>
    %125 = math.tanh %124 : vector<2x128xf32>
    %126 = vector.extract_strided_slice %111 {offsets = [0, 384], sizes = [2, 128], strides = [1, 1]} : vector<2x512xf32> to vector<2x128xf32>
    %127 = arith.negf %126 : vector<2x128xf32>
    %128 = math.exp %127 : vector<2x128xf32>
    %cst_24 = arith.constant 1.000000e+00 : f32
    %129 = vector.broadcast %cst_24 : f32 to vector<2x128xf32>
    %130 = arith.addf %129, %128 : vector<2x128xf32>
    %131 = arith.divf %129, %130 : vector<2x128xf32>
    %132 = arith.mulf %123, %106 : vector<2x128xf32>
    %133 = arith.mulf %117, %125 : vector<2x128xf32>
    %134 = arith.addf %132, %133 : vector<2x128xf32>
    %135 = math.tanh %134 : vector<2x128xf32>
    %136 = arith.mulf %131, %135 : vector<2x128xf32>
    %137 = vector.extract_strided_slice %6 {offsets = [10, 0], sizes = [2, 512], strides = [1, 1]} : vector<16x512xf32> to vector<2x512xf32>
    %cst_25 = arith.constant dense<0.000000e+00> : vector<2x512xf32>
    %138 = tpu.matmul %136, %1, %cst_25 {dimension_numbers = #tpu.dot_dimension_numbers<[1], [0], [0], [1], [0, 0, 1, 1], [], []>} : vector<2x128xf32>, vector<128x512xf32>, vector<2x512xf32> -> vector<2x512xf32>
    %139 = arith.addf %137, %138 : vector<2x512xf32>
    %140 = vector.extract_strided_slice %139 {offsets = [0, 0], sizes = [2, 128], strides = [1, 1]} : vector<2x512xf32> to vector<2x128xf32>
    %141 = arith.negf %140 : vector<2x128xf32>
    %142 = math.exp %141 : vector<2x128xf32>
    %cst_26 = arith.constant 1.000000e+00 : f32
    %143 = vector.broadcast %cst_26 : f32 to vector<2x128xf32>
    %144 = arith.addf %143, %142 : vector<2x128xf32>
    %145 = arith.divf %143, %144 : vector<2x128xf32>
    %146 = vector.extract_strided_slice %139 {offsets = [0, 128], sizes = [2, 128], strides = [1, 1]} : vector<2x512xf32> to vector<2x128xf32>
    %147 = arith.negf %146 : vector<2x128xf32>
    %148 = math.exp %147 : vector<2x128xf32>
    %cst_27 = arith.constant 1.000000e+00 : f32
    %149 = vector.broadcast %cst_27 : f32 to vector<2x128xf32>
    %150 = arith.addf %149, %148 : vector<2x128xf32>
    %151 = arith.divf %149, %150 : vector<2x128xf32>
    %152 = vector.extract_strided_slice %139 {offsets = [0, 256], sizes = [2, 128], strides = [1, 1]} : vector<2x512xf32> to vector<2x128xf32>
    %153 = math.tanh %152 : vector<2x128xf32>
    %154 = vector.extract_strided_slice %139 {offsets = [0, 384], sizes = [2, 128], strides = [1, 1]} : vector<2x512xf32> to vector<2x128xf32>
    %155 = arith.negf %154 : vector<2x128xf32>
    %156 = math.exp %155 : vector<2x128xf32>
    %cst_28 = arith.constant 1.000000e+00 : f32
    %157 = vector.broadcast %cst_28 : f32 to vector<2x128xf32>
    %158 = arith.addf %157, %156 : vector<2x128xf32>
    %159 = arith.divf %157, %158 : vector<2x128xf32>
    %160 = arith.mulf %151, %134 : vector<2x128xf32>
    %161 = arith.mulf %145, %153 : vector<2x128xf32>
    %162 = arith.addf %160, %161 : vector<2x128xf32>
    %163 = math.tanh %162 : vector<2x128xf32>
    %164 = arith.mulf %159, %163 : vector<2x128xf32>
    %165 = vector.extract_strided_slice %6 {offsets = [12, 0], sizes = [2, 512], strides = [1, 1]} : vector<16x512xf32> to vector<2x512xf32>
    %cst_29 = arith.constant dense<0.000000e+00> : vector<2x512xf32>
    %166 = tpu.matmul %164, %1, %cst_29 {dimension_numbers = #tpu.dot_dimension_numbers<[1], [0], [0], [1], [0, 0, 1, 1], [], []>} : vector<2x128xf32>, vector<128x512xf32>, vector<2x512xf32> -> vector<2x512xf32>
    %167 = arith.addf %165, %166 : vector<2x512xf32>
    %168 = vector.extract_strided_slice %167 {offsets = [0, 0], sizes = [2, 128], strides = [1, 1]} : vector<2x512xf32> to vector<2x128xf32>
    %169 = arith.negf %168 : vector<2x128xf32>
    %170 = math.exp %169 : vector<2x128xf32>
    %cst_30 = arith.constant 1.000000e+00 : f32
    %171 = vector.broadcast %cst_30 : f32 to vector<2x128xf32>
    %172 = arith.addf %171, %170 : vector<2x128xf32>
    %173 = arith.divf %171, %172 : vector<2x128xf32>
    %174 = vector.extract_strided_slice %167 {offsets = [0, 128], sizes = [2, 128], strides = [1, 1]} : vector<2x512xf32> to vector<2x128xf32>
    %175 = arith.negf %174 : vector<2x128xf32>
    %176 = math.exp %175 : vector<2x128xf32>
    %cst_31 = arith.constant 1.000000e+00 : f32
    %177 = vector.broadcast %cst_31 : f32 to vector<2x128xf32>
    %178 = arith.addf %177, %176 : vector<2x128xf32>
    %179 = arith.divf %177, %178 : vector<2x128xf32>
    %180 = vector.extract_strided_slice %167 {offsets = [0, 256], sizes = [2, 128], strides = [1, 1]} : vector<2x512xf32> to vector<2x128xf32>
    %181 = math.tanh %180 : vector<2x128xf32>
    %182 = vector.extract_strided_slice %167 {offsets = [0, 384], sizes = [2, 128], strides = [1, 1]} : vector<2x512xf32> to vector<2x128xf32>
    %183 = arith.negf %182 : vector<2x128xf32>
    %184 = math.exp %183 : vector<2x128xf32>
    %cst_32 = arith.constant 1.000000e+00 : f32
    %185 = vector.broadcast %cst_32 : f32 to vector<2x128xf32>
    %186 = arith.addf %185, %184 : vector<2x128xf32>
    %187 = arith.divf %185, %186 : vector<2x128xf32>
    %188 = arith.mulf %179, %162 : vector<2x128xf32>
    %189 = arith.mulf %173, %181 : vector<2x128xf32>
    %190 = arith.addf %188, %189 : vector<2x128xf32>
    %191 = math.tanh %190 : vector<2x128xf32>
    %192 = arith.mulf %187, %191 : vector<2x128xf32>
    %193 = vector.extract_strided_slice %6 {offsets = [14, 0], sizes = [2, 512], strides = [1, 1]} : vector<16x512xf32> to vector<2x512xf32>
    %cst_33 = arith.constant dense<0.000000e+00> : vector<2x512xf32>
    %194 = tpu.matmul %192, %1, %cst_33 {dimension_numbers = #tpu.dot_dimension_numbers<[1], [0], [0], [1], [0, 0, 1, 1], [], []>} : vector<2x128xf32>, vector<128x512xf32>, vector<2x512xf32> -> vector<2x512xf32>
    %195 = arith.addf %193, %194 : vector<2x512xf32>
    %196 = vector.extract_strided_slice %195 {offsets = [0, 0], sizes = [2, 128], strides = [1, 1]} : vector<2x512xf32> to vector<2x128xf32>
    %197 = arith.negf %196 : vector<2x128xf32>
    %198 = math.exp %197 : vector<2x128xf32>
    %cst_34 = arith.constant 1.000000e+00 : f32
    %199 = vector.broadcast %cst_34 : f32 to vector<2x128xf32>
    %200 = arith.addf %199, %198 : vector<2x128xf32>
    %201 = arith.divf %199, %200 : vector<2x128xf32>
    %202 = vector.extract_strided_slice %195 {offsets = [0, 128], sizes = [2, 128], strides = [1, 1]} : vector<2x512xf32> to vector<2x128xf32>
    %203 = arith.negf %202 : vector<2x128xf32>
    %204 = math.exp %203 : vector<2x128xf32>
    %cst_35 = arith.constant 1.000000e+00 : f32
    %205 = vector.broadcast %cst_35 : f32 to vector<2x128xf32>
    %206 = arith.addf %205, %204 : vector<2x128xf32>
    %207 = arith.divf %205, %206 : vector<2x128xf32>
    %208 = vector.extract_strided_slice %195 {offsets = [0, 256], sizes = [2, 128], strides = [1, 1]} : vector<2x512xf32> to vector<2x128xf32>
    %209 = math.tanh %208 : vector<2x128xf32>
    %210 = vector.extract_strided_slice %195 {offsets = [0, 384], sizes = [2, 128], strides = [1, 1]} : vector<2x512xf32> to vector<2x128xf32>
    %211 = arith.negf %210 : vector<2x128xf32>
    %212 = math.exp %211 : vector<2x128xf32>
    %cst_36 = arith.constant 1.000000e+00 : f32
    %213 = vector.broadcast %cst_36 : f32 to vector<2x128xf32>
    %214 = arith.addf %213, %212 : vector<2x128xf32>
    %215 = arith.divf %213, %214 : vector<2x128xf32>
    %216 = arith.mulf %207, %190 : vector<2x128xf32>
    %217 = arith.mulf %201, %209 : vector<2x128xf32>
    %218 = arith.addf %216, %217 : vector<2x128xf32>
    %219 = math.tanh %218 : vector<2x128xf32>
    %220 = arith.mulf %215, %219 : vector<2x128xf32>
    %c0_37 = arith.constant 0 : index
    %c0_38 = arith.constant 0 : index
    %c0_39 = arith.constant 0 : index
    %221 = vector.load %arg12[%c0_37, %c0_38, %c0_39] : memref<2x2x128xf32, #tpu.memory_space<vmem>>, vector<1x2x128xf32>
    %222 = vector.shape_cast %221 : vector<1x2x128xf32> to vector<2x128xf32>
    %223 = vector.shape_cast %220 : vector<2x128xf32> to vector<1x2x128xf32>
    tpu.vector_store %arg12[%c0_37, %c0_38, %c0_39], %223 {strides = array<i32>} : memref<2x2x128xf32, #tpu.memory_space<vmem>>, vector<1x2x128xf32>,
    %c0_40 = arith.constant 0 : index
    %c0_41 = arith.constant 0 : index
    %c0_42 = arith.constant 0 : index
    %224 = vector.load %arg13[%c0_40, %c0_41, %c0_42] : memref<2x2x128xf32, #tpu.memory_space<vmem>>, vector<1x2x128xf32>
    %225 = vector.shape_cast %224 : vector<1x2x128xf32> to vector<2x128xf32>
    %226 = vector.shape_cast %218 : vector<2x128xf32> to vector<1x2x128xf32>
    tpu.vector_store %arg13[%c0_40, %c0_41, %c0_42], %226 {strides = array<i32>} : memref<2x2x128xf32, #tpu.memory_space<vmem>>, vector<1x2x128xf32>,
    %227 = tpu.concatenate %24, %52, %80, %108, %136, %164, %192, %220 in 0 : vector<2x128xf32>, vector<2x128xf32>, vector<2x128xf32>, vector<2x128xf32>, vector<2x128xf32>, vector<2x128xf32>, vector<2x128xf32>, vector<2x128xf32> -> vector<16x128xf32>
    %c0_43 = arith.constant 0 : index
    %c0_44 = arith.constant 0 : index
    %228 = vector.load %arg5[%c0_43, %c0_44] : memref<128x512xf32, #tpu.memory_space<vmem>>, vector<128x512xf32>
    %c0_45 = arith.constant 0 : index
    %c0_46 = arith.constant 0 : index
    %229 = vector.load %arg4[%c0_45, %c0_46] : memref<128x512xf32, #tpu.memory_space<vmem>>, vector<128x512xf32>
    %cst_47 = arith.constant dense<0.000000e+00> : vector<16x512xf32>
    %230 = tpu.matmul %227, %229, %cst_47 {dimension_numbers = #tpu.dot_dimension_numbers<[1], [0], [0], [1], [0, 0, 1, 1], [], []>} : vector<16x128xf32>, vector<128x512xf32>, vector<16x512xf32> -> vector<16x512xf32>
    %c0_48 = arith.constant 0 : index
    %c0_49 = arith.constant 0 : index
    %231 = vector.load %arg6[%c0_48, %c0_49] : memref<1x512xf32, #tpu.memory_space<vmem>>, vector<1x512xf32>
    %232 = vector.broadcast %231 : vector<1x512xf32> to vector<16x512xf32>
    %233 = arith.addf %230, %232 : vector<16x512xf32>
    %234 = vector.extract_strided_slice %233 {offsets = [0, 0], sizes = [2, 512], strides = [1, 1]} : vector<16x512xf32> to vector<2x512xf32>
    %235 = vector.extract_strided_slice %234 {offsets = [0, 0], sizes = [2, 128], strides = [1, 1]} : vector<2x512xf32> to vector<2x128xf32>
    %236 = arith.negf %235 : vector<2x128xf32>
    %237 = math.exp %236 : vector<2x128xf32>
    %cst_50 = arith.constant 1.000000e+00 : f32
    %238 = vector.broadcast %cst_50 : f32 to vector<2x128xf32>
    %239 = arith.addf %238, %237 : vector<2x128xf32>
    %240 = arith.divf %238, %239 : vector<2x128xf32>
    %241 = vector.extract_strided_slice %234 {offsets = [0, 256], sizes = [2, 128], strides = [1, 1]} : vector<2x512xf32> to vector<2x128xf32>
    %242 = math.tanh %241 : vector<2x128xf32>
    %243 = vector.extract_strided_slice %234 {offsets = [0, 384], sizes = [2, 128], strides = [1, 1]} : vector<2x512xf32> to vector<2x128xf32>
    %244 = arith.negf %243 : vector<2x128xf32>
    %245 = math.exp %244 : vector<2x128xf32>
    %cst_51 = arith.constant 1.000000e+00 : f32
    %246 = vector.broadcast %cst_51 : f32 to vector<2x128xf32>
    %247 = arith.addf %246, %245 : vector<2x128xf32>
    %248 = arith.divf %246, %247 : vector<2x128xf32>
    %249 = arith.mulf %240, %242 : vector<2x128xf32>
    %250 = math.tanh %249 : vector<2x128xf32>
    %251 = arith.mulf %248, %250 : vector<2x128xf32>
    %252 = vector.extract_strided_slice %233 {offsets = [2, 0], sizes = [2, 512], strides = [1, 1]} : vector<16x512xf32> to vector<2x512xf32>
    %cst_52 = arith.constant dense<0.000000e+00> : vector<2x512xf32>
    %253 = tpu.matmul %251, %228, %cst_52 {dimension_numbers = #tpu.dot_dimension_numbers<[1], [0], [0], [1], [0, 0, 1, 1], [], []>} : vector<2x128xf32>, vector<128x512xf32>, vector<2x512xf32> -> vector<2x512xf32>
    %254 = arith.addf %252, %253 : vector<2x512xf32>
    %255 = vector.extract_strided_slice %254 {offsets = [0, 0], sizes = [2, 128], strides = [1, 1]} : vector<2x512xf32> to vector<2x128xf32>
    %256 = arith.negf %255 : vector<2x128xf32>
    %257 = math.exp %256 : vector<2x128xf32>
    %cst_53 = arith.constant 1.000000e+00 : f32
    %258 = vector.broadcast %cst_53 : f32 to vector<2x128xf32>
    %259 = arith.addf %258, %257 : vector<2x128xf32>
    %260 = arith.divf %258, %259 : vector<2x128xf32>
    %261 = vector.extract_strided_slice %254 {offsets = [0, 128], sizes = [2, 128], strides = [1, 1]} : vector<2x512xf32> to vector<2x128xf32>
    %262 = arith.negf %261 : vector<2x128xf32>
    %263 = math.exp %262 : vector<2x128xf32>
    %cst_54 = arith.constant 1.000000e+00 : f32
    %264 = vector.broadcast %cst_54 : f32 to vector<2x128xf32>
    %265 = arith.addf %264, %263 : vector<2x128xf32>
    %266 = arith.divf %264, %265 : vector<2x128xf32>
    %267 = vector.extract_strided_slice %254 {offsets = [0, 256], sizes = [2, 128], strides = [1, 1]} : vector<2x512xf32> to vector<2x128xf32>
    %268 = math.tanh %267 : vector<2x128xf32>
    %269 = vector.extract_strided_slice %254 {offsets = [0, 384], sizes = [2, 128], strides = [1, 1]} : vector<2x512xf32> to vector<2x128xf32>
    %270 = arith.negf %269 : vector<2x128xf32>
    %271 = math.exp %270 : vector<2x128xf32>
    %cst_55 = arith.constant 1.000000e+00 : f32
    %272 = vector.broadcast %cst_55 : f32 to vector<2x128xf32>
    %273 = arith.addf %272, %271 : vector<2x128xf32>
    %274 = arith.divf %272, %273 : vector<2x128xf32>
    %275 = arith.mulf %266, %249 : vector<2x128xf32>
    %276 = arith.mulf %260, %268 : vector<2x128xf32>
    %277 = arith.addf %275, %276 : vector<2x128xf32>
    %278 = math.tanh %277 : vector<2x128xf32>
    %279 = arith.mulf %274, %278 : vector<2x128xf32>
    %280 = vector.extract_strided_slice %233 {offsets = [4, 0], sizes = [2, 512], strides = [1, 1]} : vector<16x512xf32> to vector<2x512xf32>
    %cst_56 = arith.constant dense<0.000000e+00> : vector<2x512xf32>
    %281 = tpu.matmul %279, %228, %cst_56 {dimension_numbers = #tpu.dot_dimension_numbers<[1], [0], [0], [1], [0, 0, 1, 1], [], []>} : vector<2x128xf32>, vector<128x512xf32>, vector<2x512xf32> -> vector<2x512xf32>
    %282 = arith.addf %280, %281 : vector<2x512xf32>
    %283 = vector.extract_strided_slice %282 {offsets = [0, 0], sizes = [2, 128], strides = [1, 1]} : vector<2x512xf32> to vector<2x128xf32>
    %284 = arith.negf %283 : vector<2x128xf32>
    %285 = math.exp %284 : vector<2x128xf32>
    %cst_57 = arith.constant 1.000000e+00 : f32
    %286 = vector.broadcast %cst_57 : f32 to vector<2x128xf32>
    %287 = arith.addf %286, %285 : vector<2x128xf32>
    %288 = arith.divf %286, %287 : vector<2x128xf32>
    %289 = vector.extract_strided_slice %282 {offsets = [0, 128], sizes = [2, 128], strides = [1, 1]} : vector<2x512xf32> to vector<2x128xf32>
    %290 = arith.negf %289 : vector<2x128xf32>
    %291 = math.exp %290 : vector<2x128xf32>
    %cst_58 = arith.constant 1.000000e+00 : f32
    %292 = vector.broadcast %cst_58 : f32 to vector<2x128xf32>
    %293 = arith.addf %292, %291 : vector<2x128xf32>
    %294 = arith.divf %292, %293 : vector<2x128xf32>
    %295 = vector.extract_strided_slice %282 {offsets = [0, 256], sizes = [2, 128], strides = [1, 1]} : vector<2x512xf32> to vector<2x128xf32>
    %296 = math.tanh %295 : vector<2x128xf32>
    %297 = vector.extract_strided_slice %282 {offsets = [0, 384], sizes = [2, 128], strides = [1, 1]} : vector<2x512xf32> to vector<2x128xf32>
    %298 = arith.negf %297 : vector<2x128xf32>
    %299 = math.exp %298 : vector<2x128xf32>
    %cst_59 = arith.constant 1.000000e+00 : f32
    %300 = vector.broadcast %cst_59 : f32 to vector<2x128xf32>
    %301 = arith.addf %300, %299 : vector<2x128xf32>
    %302 = arith.divf %300, %301 : vector<2x128xf32>
    %303 = arith.mulf %294, %277 : vector<2x128xf32>
    %304 = arith.mulf %288, %296 : vector<2x128xf32>
    %305 = arith.addf %303, %304 : vector<2x128xf32>
    %306 = math.tanh %305 : vector<2x128xf32>
    %307 = arith.mulf %302, %306 : vector<2x128xf32>
    %308 = vector.extract_strided_slice %233 {offsets = [6, 0], sizes = [2, 512], strides = [1, 1]} : vector<16x512xf32> to vector<2x512xf32>
    %cst_60 = arith.constant dense<0.000000e+00> : vector<2x512xf32>
    %309 = tpu.matmul %307, %228, %cst_60 {dimension_numbers = #tpu.dot_dimension_numbers<[1], [0], [0], [1], [0, 0, 1, 1], [], []>} : vector<2x128xf32>, vector<128x512xf32>, vector<2x512xf32> -> vector<2x512xf32>
    %310 = arith.addf %308, %309 : vector<2x512xf32>
    %311 = vector.extract_strided_slice %310 {offsets = [0, 0], sizes = [2, 128], strides = [1, 1]} : vector<2x512xf32> to vector<2x128xf32>
    %312 = arith.negf %311 : vector<2x128xf32>
    %313 = math.exp %312 : vector<2x128xf32>
    %cst_61 = arith.constant 1.000000e+00 : f32
    %314 = vector.broadcast %cst_61 : f32 to vector<2x128xf32>
    %315 = arith.addf %314, %313 : vector<2x128xf32>
    %316 = arith.divf %314, %315 : vector<2x128xf32>
    %317 = vector.extract_strided_slice %310 {offsets = [0, 128], sizes = [2, 128], strides = [1, 1]} : vector<2x512xf32> to vector<2x128xf32>
    %318 = arith.negf %317 : vector<2x128xf32>
    %319 = math.exp %318 : vector<2x128xf32>
    %cst_62 = arith.constant 1.000000e+00 : f32
    %320 = vector.broadcast %cst_62 : f32 to vector<2x128xf32>
    %321 = arith.addf %320, %319 : vector<2x128xf32>
    %322 = arith.divf %320, %321 : vector<2x128xf32>
    %323 = vector.extract_strided_slice %310 {offsets = [0, 256], sizes = [2, 128], strides = [1, 1]} : vector<2x512xf32> to vector<2x128xf32>
    %324 = math.tanh %323 : vector<2x128xf32>
    %325 = vector.extract_strided_slice %310 {offsets = [0, 384], sizes = [2, 128], strides = [1, 1]} : vector<2x512xf32> to vector<2x128xf32>
    %326 = arith.negf %325 : vector<2x128xf32>
    %327 = math.exp %326 : vector<2x128xf32>
    %cst_63 = arith.constant 1.000000e+00 : f32
    %328 = vector.broadcast %cst_63 : f32 to vector<2x128xf32>
    %329 = arith.addf %328, %327 : vector<2x128xf32>
    %330 = arith.divf %328, %329 : vector<2x128xf32>
    %331 = arith.mulf %322, %305 : vector<2x128xf32>
    %332 = arith.mulf %316, %324 : vector<2x128xf32>
    %333 = arith.addf %331, %332 : vector<2x128xf32>
    %334 = math.tanh %333 : vector<2x128xf32>
    %335 = arith.mulf %330, %334 : vector<2x128xf32>
    %336 = vector.extract_strided_slice %233 {offsets = [8, 0], sizes = [2, 512], strides = [1, 1]} : vector<16x512xf32> to vector<2x512xf32>
    %cst_64 = arith.constant dense<0.000000e+00> : vector<2x512xf32>
    %337 = tpu.matmul %335, %228, %cst_64 {dimension_numbers = #tpu.dot_dimension_numbers<[1], [0], [0], [1], [0, 0, 1, 1], [], []>} : vector<2x128xf32>, vector<128x512xf32>, vector<2x512xf32> -> vector<2x512xf32>
    %338 = arith.addf %336, %337 : vector<2x512xf32>
    %339 = vector.extract_strided_slice %338 {offsets = [0, 0], sizes = [2, 128], strides = [1, 1]} : vector<2x512xf32> to vector<2x128xf32>
    %340 = arith.negf %339 : vector<2x128xf32>
    %341 = math.exp %340 : vector<2x128xf32>
    %cst_65 = arith.constant 1.000000e+00 : f32
    %342 = vector.broadcast %cst_65 : f32 to vector<2x128xf32>
    %343 = arith.addf %342, %341 : vector<2x128xf32>
    %344 = arith.divf %342, %343 : vector<2x128xf32>
    %345 = vector.extract_strided_slice %338 {offsets = [0, 128], sizes = [2, 128], strides = [1, 1]} : vector<2x512xf32> to vector<2x128xf32>
    %346 = arith.negf %345 : vector<2x128xf32>
    %347 = math.exp %346 : vector<2x128xf32>
    %cst_66 = arith.constant 1.000000e+00 : f32
    %348 = vector.broadcast %cst_66 : f32 to vector<2x128xf32>
    %349 = arith.addf %348, %347 : vector<2x128xf32>
    %350 = arith.divf %348, %349 : vector<2x128xf32>
    %351 = vector.extract_strided_slice %338 {offsets = [0, 256], sizes = [2, 128], strides = [1, 1]} : vector<2x512xf32> to vector<2x128xf32>
    %352 = math.tanh %351 : vector<2x128xf32>
    %353 = vector.extract_strided_slice %338 {offsets = [0, 384], sizes = [2, 128], strides = [1, 1]} : vector<2x512xf32> to vector<2x128xf32>
    %354 = arith.negf %353 : vector<2x128xf32>
    %355 = math.exp %354 : vector<2x128xf32>
    %cst_67 = arith.constant 1.000000e+00 : f32
    %356 = vector.broadcast %cst_67 : f32 to vector<2x128xf32>
    %357 = arith.addf %356, %355 : vector<2x128xf32>
    %358 = arith.divf %356, %357 : vector<2x128xf32>
    %359 = arith.mulf %350, %333 : vector<2x128xf32>
    %360 = arith.mulf %344, %352 : vector<2x128xf32>
    %361 = arith.addf %359, %360 : vector<2x128xf32>
    %362 = math.tanh %361 : vector<2x128xf32>
    %363 = arith.mulf %358, %362 : vector<2x128xf32>
    %364 = vector.extract_strided_slice %233 {offsets = [10, 0], sizes = [2, 512], strides = [1, 1]} : vector<16x512xf32> to vector<2x512xf32>
    %cst_68 = arith.constant dense<0.000000e+00> : vector<2x512xf32>
    %365 = tpu.matmul %363, %228, %cst_68 {dimension_numbers = #tpu.dot_dimension_numbers<[1], [0], [0], [1], [0, 0, 1, 1], [], []>} : vector<2x128xf32>, vector<128x512xf32>, vector<2x512xf32> -> vector<2x512xf32>
    %366 = arith.addf %364, %365 : vector<2x512xf32>
    %367 = vector.extract_strided_slice %366 {offsets = [0, 0], sizes = [2, 128], strides = [1, 1]} : vector<2x512xf32> to vector<2x128xf32>
    %368 = arith.negf %367 : vector<2x128xf32>
    %369 = math.exp %368 : vector<2x128xf32>
    %cst_69 = arith.constant 1.000000e+00 : f32
    %370 = vector.broadcast %cst_69 : f32 to vector<2x128xf32>
    %371 = arith.addf %370, %369 : vector<2x128xf32>
    %372 = arith.divf %370, %371 : vector<2x128xf32>
    %373 = vector.extract_strided_slice %366 {offsets = [0, 128], sizes = [2, 128], strides = [1, 1]} : vector<2x512xf32> to vector<2x128xf32>
    %374 = arith.negf %373 : vector<2x128xf32>
    %375 = math.exp %374 : vector<2x128xf32>
    %cst_70 = arith.constant 1.000000e+00 : f32
    %376 = vector.broadcast %cst_70 : f32 to vector<2x128xf32>
    %377 = arith.addf %376, %375 : vector<2x128xf32>
    %378 = arith.divf %376, %377 : vector<2x128xf32>
    %379 = vector.extract_strided_slice %366 {offsets = [0, 256], sizes = [2, 128], strides = [1, 1]} : vector<2x512xf32> to vector<2x128xf32>
    %380 = math.tanh %379 : vector<2x128xf32>
    %381 = vector.extract_strided_slice %366 {offsets = [0, 384], sizes = [2, 128], strides = [1, 1]} : vector<2x512xf32> to vector<2x128xf32>
    %382 = arith.negf %381 : vector<2x128xf32>
    %383 = math.exp %382 : vector<2x128xf32>
    %cst_71 = arith.constant 1.000000e+00 : f32
    %384 = vector.broadcast %cst_71 : f32 to vector<2x128xf32>
    %385 = arith.addf %384, %383 : vector<2x128xf32>
    %386 = arith.divf %384, %385 : vector<2x128xf32>
    %387 = arith.mulf %378, %361 : vector<2x128xf32>
    %388 = arith.mulf %372, %380 : vector<2x128xf32>
    %389 = arith.addf %387, %388 : vector<2x128xf32>
    %390 = math.tanh %389 : vector<2x128xf32>
    %391 = arith.mulf %386, %390 : vector<2x128xf32>
    %392 = vector.extract_strided_slice %233 {offsets = [12, 0], sizes = [2, 512], strides = [1, 1]} : vector<16x512xf32> to vector<2x512xf32>
    %cst_72 = arith.constant dense<0.000000e+00> : vector<2x512xf32>
    %393 = tpu.matmul %391, %228, %cst_72 {dimension_numbers = #tpu.dot_dimension_numbers<[1], [0], [0], [1], [0, 0, 1, 1], [], []>} : vector<2x128xf32>, vector<128x512xf32>, vector<2x512xf32> -> vector<2x512xf32>
    %394 = arith.addf %392, %393 : vector<2x512xf32>
    %395 = vector.extract_strided_slice %394 {offsets = [0, 0], sizes = [2, 128], strides = [1, 1]} : vector<2x512xf32> to vector<2x128xf32>
    %396 = arith.negf %395 : vector<2x128xf32>
    %397 = math.exp %396 : vector<2x128xf32>
    %cst_73 = arith.constant 1.000000e+00 : f32
    %398 = vector.broadcast %cst_73 : f32 to vector<2x128xf32>
    %399 = arith.addf %398, %397 : vector<2x128xf32>
    %400 = arith.divf %398, %399 : vector<2x128xf32>
    %401 = vector.extract_strided_slice %394 {offsets = [0, 128], sizes = [2, 128], strides = [1, 1]} : vector<2x512xf32> to vector<2x128xf32>
    %402 = arith.negf %401 : vector<2x128xf32>
    %403 = math.exp %402 : vector<2x128xf32>
    %cst_74 = arith.constant 1.000000e+00 : f32
    %404 = vector.broadcast %cst_74 : f32 to vector<2x128xf32>
    %405 = arith.addf %404, %403 : vector<2x128xf32>
    %406 = arith.divf %404, %405 : vector<2x128xf32>
    %407 = vector.extract_strided_slice %394 {offsets = [0, 256], sizes = [2, 128], strides = [1, 1]} : vector<2x512xf32> to vector<2x128xf32>
    %408 = math.tanh %407 : vector<2x128xf32>
    %409 = vector.extract_strided_slice %394 {offsets = [0, 384], sizes = [2, 128], strides = [1, 1]} : vector<2x512xf32> to vector<2x128xf32>
    %410 = arith.negf %409 : vector<2x128xf32>
    %411 = math.exp %410 : vector<2x128xf32>
    %cst_75 = arith.constant 1.000000e+00 : f32
    %412 = vector.broadcast %cst_75 : f32 to vector<2x128xf32>
    %413 = arith.addf %412, %411 : vector<2x128xf32>
    %414 = arith.divf %412, %413 : vector<2x128xf32>
    %415 = arith.mulf %406, %389 : vector<2x128xf32>
    %416 = arith.mulf %400, %408 : vector<2x128xf32>
    %417 = arith.addf %415, %416 : vector<2x128xf32>
    %418 = math.tanh %417 : vector<2x128xf32>
    %419 = arith.mulf %414, %418 : vector<2x128xf32>
    %420 = vector.extract_strided_slice %233 {offsets = [14, 0], sizes = [2, 512], strides = [1, 1]} : vector<16x512xf32> to vector<2x512xf32>
    %cst_76 = arith.constant dense<0.000000e+00> : vector<2x512xf32>
    %421 = tpu.matmul %419, %228, %cst_76 {dimension_numbers = #tpu.dot_dimension_numbers<[1], [0], [0], [1], [0, 0, 1, 1], [], []>} : vector<2x128xf32>, vector<128x512xf32>, vector<2x512xf32> -> vector<2x512xf32>
    %422 = arith.addf %420, %421 : vector<2x512xf32>
    %423 = vector.extract_strided_slice %422 {offsets = [0, 0], sizes = [2, 128], strides = [1, 1]} : vector<2x512xf32> to vector<2x128xf32>
    %424 = arith.negf %423 : vector<2x128xf32>
    %425 = math.exp %424 : vector<2x128xf32>
    %cst_77 = arith.constant 1.000000e+00 : f32
    %426 = vector.broadcast %cst_77 : f32 to vector<2x128xf32>
    %427 = arith.addf %426, %425 : vector<2x128xf32>
    %428 = arith.divf %426, %427 : vector<2x128xf32>
    %429 = vector.extract_strided_slice %422 {offsets = [0, 128], sizes = [2, 128], strides = [1, 1]} : vector<2x512xf32> to vector<2x128xf32>
    %430 = arith.negf %429 : vector<2x128xf32>
    %431 = math.exp %430 : vector<2x128xf32>
    %cst_78 = arith.constant 1.000000e+00 : f32
    %432 = vector.broadcast %cst_78 : f32 to vector<2x128xf32>
    %433 = arith.addf %432, %431 : vector<2x128xf32>
    %434 = arith.divf %432, %433 : vector<2x128xf32>
    %435 = vector.extract_strided_slice %422 {offsets = [0, 256], sizes = [2, 128], strides = [1, 1]} : vector<2x512xf32> to vector<2x128xf32>
    %436 = math.tanh %435 : vector<2x128xf32>
    %437 = vector.extract_strided_slice %422 {offsets = [0, 384], sizes = [2, 128], strides = [1, 1]} : vector<2x512xf32> to vector<2x128xf32>
    %438 = arith.negf %437 : vector<2x128xf32>
    %439 = math.exp %438 : vector<2x128xf32>
    %cst_79 = arith.constant 1.000000e+00 : f32
    %440 = vector.broadcast %cst_79 : f32 to vector<2x128xf32>
    %441 = arith.addf %440, %439 : vector<2x128xf32>
    %442 = arith.divf %440, %441 : vector<2x128xf32>
    %443 = arith.mulf %434, %417 : vector<2x128xf32>
    %444 = arith.mulf %428, %436 : vector<2x128xf32>
    %445 = arith.addf %443, %444 : vector<2x128xf32>
    %446 = math.tanh %445 : vector<2x128xf32>
    %447 = arith.mulf %442, %446 : vector<2x128xf32>
    %c1 = arith.constant 1 : index
    %c0_80 = arith.constant 0 : index
    %c0_81 = arith.constant 0 : index
    %448 = vector.load %arg12[%c1, %c0_80, %c0_81] : memref<2x2x128xf32, #tpu.memory_space<vmem>>, vector<1x2x128xf32>
    %449 = vector.shape_cast %448 : vector<1x2x128xf32> to vector<2x128xf32>
    %450 = vector.shape_cast %447 : vector<2x128xf32> to vector<1x2x128xf32>
    tpu.vector_store %arg12[%c1, %c0_80, %c0_81], %450 {strides = array<i32>} : memref<2x2x128xf32, #tpu.memory_space<vmem>>, vector<1x2x128xf32>,
    %c1_82 = arith.constant 1 : index
    %c0_83 = arith.constant 0 : index
    %c0_84 = arith.constant 0 : index
    %451 = vector.load %arg13[%c1_82, %c0_83, %c0_84] : memref<2x2x128xf32, #tpu.memory_space<vmem>>, vector<1x2x128xf32>
    %452 = vector.shape_cast %451 : vector<1x2x128xf32> to vector<2x128xf32>
    %453 = vector.shape_cast %445 : vector<2x128xf32> to vector<1x2x128xf32>
    tpu.vector_store %arg13[%c1_82, %c0_83, %c0_84], %453 {strides = array<i32>} : memref<2x2x128xf32, #tpu.memory_space<vmem>>, vector<1x2x128xf32>,
    %c0_85 = arith.constant 0 : index
    %c0_86 = arith.constant 0 : index
    %454 = vector.load %arg7[%c0_85, %c0_86] : memref<128x128xf32, #tpu.memory_space<vmem>>, vector<128x128xf32>
    %c0_87 = arith.constant 0 : index
    %c0_88 = arith.constant 0 : index
    %455 = vector.load %arg8[%c0_87, %c0_88] : memref<1x128xf32, #tpu.memory_space<vmem>>, vector<1x128xf32>
    %cst_89 = arith.constant dense<0.000000e+00> : vector<2x128xf32>
    %456 = tpu.matmul %447, %454, %cst_89 {dimension_numbers = #tpu.dot_dimension_numbers<[1], [0], [0], [1], [0, 0, 1, 1], [], []>} : vector<2x128xf32>, vector<128x128xf32>, vector<2x128xf32> -> vector<2x128xf32>
    %457 = vector.broadcast %455 : vector<1x128xf32> to vector<2x128xf32>
    %458 = arith.addf %456, %457 : vector<2x128xf32>
    %cst_90 = arith.constant dense<0.000000e+00> : vector<2x128xf32>
    %459 = tpu.matmul %458, %454, %cst_90 {dimension_numbers = #tpu.dot_dimension_numbers<[1], [0], [0], [1], [0, 0, 1, 1], [], []>} : vector<2x128xf32>, vector<128x128xf32>, vector<2x128xf32> -> vector<2x128xf32>
    %460 = vector.broadcast %455 : vector<1x128xf32> to vector<2x128xf32>
    %461 = arith.addf %459, %460 : vector<2x128xf32>
    %cst_91 = arith.constant dense<0.000000e+00> : vector<2x128xf32>
    %462 = tpu.matmul %461, %454, %cst_91 {dimension_numbers = #tpu.dot_dimension_numbers<[1], [0], [0], [1], [0, 0, 1, 1], [], []>} : vector<2x128xf32>, vector<128x128xf32>, vector<2x128xf32> -> vector<2x128xf32>
    %463 = vector.broadcast %455 : vector<1x128xf32> to vector<2x128xf32>
    %464 = arith.addf %462, %463 : vector<2x128xf32>
    %c0_92 = arith.constant 0 : index
    %c0_93 = arith.constant 0 : index
    %465 = vector.load %arg9[%c0_92, %c0_93] : memref<128x128xf32, #tpu.memory_space<vmem>>, vector<128x128xf32>
    %cst_94 = arith.constant dense<0.000000e+00> : vector<2x128xf32>
    %466 = tpu.matmul %464, %465, %cst_94 {dimension_numbers = #tpu.dot_dimension_numbers<[1], [0], [0], [1], [0, 0, 1, 1], [], []>} : vector<2x128xf32>, vector<128x128xf32>, vector<2x128xf32> -> vector<2x128xf32>
    %c0_95 = arith.constant 0 : index
    %c0_96 = arith.constant 0 : index
    %467 = vector.load %arg10[%c0_95, %c0_96] : memref<1x128xf32, #tpu.memory_space<vmem>>, vector<1x128xf32>
    %468 = vector.broadcast %467 : vector<1x128xf32> to vector<2x128xf32>
    %469 = arith.addf %466, %468 : vector<2x128xf32>
    %c0_97 = arith.constant 0 : index
    %c0_98 = arith.constant 0 : index
    %470 = vector.load %arg11[%c0_97, %c0_98] : memref<2x128xf32, #tpu.memory_space<vmem>>, vector<2x128xf32>
    tpu.vector_store %arg11[%c0_97, %c0_98], %469 {strides = array<i32>} : memref<2x128xf32, #tpu.memory_space<vmem>>, vector<2x128xf32>,
    return
  }
}

</mosaic_0001>

<bundles_post_ra>
// kernel: tpu_custom_call.1
= control target key start
LH: loop header
LB: loop body
LE: loop exit
PB: predicated region body
PF: predicated region fallthrough
CT: control target
= control target key end

     0   :  { %19 = vsyncpa [#allocation3], 0  ;;  %s5832_s0 = inlined_call_operand.hbm [shape: f32[16,128], index: 0, kind: input, shape index: {}]   ;;  %s5833_s1 = inlined_call_operand.hbm [shape: f32[128,512], index: 1, kind: input, shape index: {}]   ;;  %s5834_s2 = inlined_call_operand.hbm [shape: f32[128,512], index: 2, kind: input, shape index: {}]   ;;  %s5835_s3 = inlined_call_operand.hbm [shape: f32[1,512], index: 3, kind: input, shape index: {}]   ;;  %s5836_s4 = inlined_call_operand.hbm [shape: f32[128,512], index: 4, kind: input, shape index: {}]   ;;  %s5837_s5 = inlined_call_operand.hbm [shape: f32[128,512], index: 5, kind: input, shape index: {}]   ;;  %s5838_s6 = inlined_call_operand.vmem [shape: f32[1,512], index: 6, kind: input, shape index: {}]   ;;  %s5839_s7 = inlined_call_operand.hbm [shape: f32[128,128], index: 7, kind: input, shape index: {}]   ;;  %s5840_s8 = inlined_call_operand.vmem [shape: f32[1,128], index: 8, kind: input, shape index: {}]   ;;  %s5841_s9 = inlined_call_operand.hbm [shape: f32[128,128], index: 9, kind: input, shape index: {}]   ;;  %s5842_s10 = inlined_call_operand.vmem [shape: f32[1,128], index: 10, kind: input, shape index: {}]   ;;  %s5843_s11 = inlined_call_operand.hbm [shape: f32[2,128], index: 11, kind: output, shape index: {0}]   ;;  %s5844_s12 = inlined_call_operand.hbm [shape: f32[2,2,128], index: 12, kind: output, shape index: {1}]   ;;  %s5845_s13 = inlined_call_operand.hbm [shape: f32[2,2,128], index: 13, kind: output, shape index: {2}]  }
   0x1   :  { %20 = vsyncpa [#allocation6], 0 }
   0x2   :  { %21 = vsyncpa [#allocation9], 0 }
   0x3   :  { %22 = vsyncpa [#allocation12], 0 }
   0x4   :  { %23 = vsyncpa [#allocation15], 0 }
   0x5   :  { %24 = vsyncpa [#allocation4], 0  ;;  %s43_s27 = sshll.u32 %s5833_s1, 4  ;;  %s44_s27 = int_to_ptr.hbm [resolvable:$true] %s43_s27 }
   0x6   :  { %25 = vsyncpa [#allocation18], 0  ;;  %s3899_s28 = smov [#allocation5]   ;;  %s70_s15 = sshll.u32 %s5835_s3, 4  ;;  %s71_s15 = int_to_ptr.hbm [resolvable:$true] %s70_s15 }
   0x7   :  { %s45_s29 = sshll.u32 %s3899_s28, 4  ;;  %s3900_s16 = smov 512   ;;  %s46_s29 = int_to_ptr.vmem [resolvable:$true] %s45_s29 }
   0x8   :  { %s3901_s17 = smov 32   ;;  %s3902_s18 = smov [#allocation8]  }
   0x9   :  { %51 = dma.hbm_to_vmem [thread:$0]  %s44_s27, 8192, %s46_s29, [#allocation6], %s3900_s16, %s3900_s16, %s3901_s17  }
   0xa   :  { %s72_s19 = sshll.u32 %s3902_s18, 4  ;;  %s93_s21 = sshll.u32 %s5837_s5, 4  ;;  %s73_s19 = int_to_ptr.vmem [resolvable:$true] %s72_s19  ;;  %s94_s21 = int_to_ptr.hbm [resolvable:$true] %s93_s21 }
   0xb   :  { %75 = dma.hbm_to_vmem [thread:$0]  %s71_s15, 64, %s73_s19, [#allocation9]  }
   0xc   :  { %s30_s3 = sshll.u32 %s5832_s0, 4  ;;  %s3903_s24 = smov [#allocation11]   ;;  %s31_s3 = int_to_ptr.hbm [resolvable:$true] %s30_s3 }
   0xd   :  { %s95_s25 = sshll.u32 %s3903_s24, 4  ;;  %s3904_s26 = smov [#allocation2]   ;;  %s96_s25 = int_to_ptr.vmem [resolvable:$true] %s95_s25 }
   0xe   :  { %101 = dma.hbm_to_vmem [thread:$0]  %s94_s21, 8192, %s96_s25, [#allocation12], %s3900_s16, %s3900_s16, %s3901_s17  }
   0xf   :  { %s32_s27 = sshll.u32 %s3904_s26, 4  ;;  %s3905_s28 = smov 128   ;;  %s33_s27 = int_to_ptr.vmem [resolvable:$true] %s32_s27 }
  0x10   :  { %s3906_s5 = smov 8   ;;  %s56_s14 = sshll.u32 %s5834_s2, 4  ;;  %s57_s14 = int_to_ptr.hbm [resolvable:$true] %s56_s14 }
  0x11   :  { %38 = dma.hbm_to_vmem [thread:$0]  %s31_s3, 256, %s33_s27, [#allocation3], %s3905_s28, %s3905_s28, %s3906_s5  }
  0x12   :  { %s3907_s0 = smov [#allocation7]   ;;  %s80_s20 = sshll.u32 %s5836_s4, 4  ;;  %s81_s20 = int_to_ptr.hbm [resolvable:$true] %s80_s20 }
  0x13   :  { %s58_s15 = sshll.u32 %s3907_s0, 4  ;;  %s3908_s1 = smov [#allocation10]   ;;  %s59_s15 = int_to_ptr.vmem [resolvable:$true] %s58_s15 }
  0x14   :  { %64 = dma.hbm_to_vmem [thread:$0]  %s57_s14, 8192, %s59_s15, [#allocation6], %s3900_s16, %s3900_s16, %s3901_s17  }
  0x15   :  { %s82_s21 = sshll.u32 %s3908_s1, 4  ;;  %s108_s3 = sshll.u32 %s5839_s7, 4  ;;  %s83_s21 = int_to_ptr.vmem [resolvable:$true] %s82_s21  ;;  %s109_s3 = int_to_ptr.hbm [resolvable:$true] %s108_s3 }
  0x16   :  { %88 = dma.hbm_to_vmem [thread:$0]  %s81_s20, 8192, %s83_s21, [#allocation9], %s3900_s16, %s3900_s16, %s3901_s17  }
  0x17   :  { %s123_s4 = sshll.u32 %s5841_s9, 4  ;;  %s3909_s25 = smov [#allocation13]   ;;  %s124_s4 = int_to_ptr.hbm [resolvable:$true] %s123_s4 }
  0x18   :  { %s110_s26 = sshll.u32 %s3909_s25, 4  ;;  %s3910_s27 = smov [#allocation14]   ;;  %s111_s26 = int_to_ptr.vmem [resolvable:$true] %s110_s26 }
  0x19   :  { %116 = dma.hbm_to_vmem [thread:$0]  %s109_s3, 2048, %s111_s26, [#allocation12], %s3905_s28, %s3905_s28, %s3906_s5  }
  0x1a   :  { %s125_s29 = sshll.u32 %s3910_s27, 4  ;;  %s126_s29 = int_to_ptr.vmem [resolvable:$true] %s125_s29 }
  0x1b   :  { %131 = dma.hbm_to_vmem [thread:$0]  %s124_s4, 2048, %s126_s29, [#allocation15], %s3905_s28, %s3905_s28, %s3906_s5  }
  0x1c   :  { %3885 = dma.done.wait [#allocation3], 256  }
  0x1d   :  { %3886 = vsyncadd [#allocation3], 4294967040 }
  0x1e   :  { %3887 = dma.done.wait [#allocation6], 16384  }
  0x1f   :  { %3888 = vsyncadd [#allocation6], 4294950912 }
  0x20   :  { %3889 = dma.done.wait [#allocation9], 8256  }
  0x21   :  { %3890 = vsyncadd [#allocation9], 4294959040 }
  0x22   :  { %3891 = dma.done.wait [#allocation12], 10240  }
  0x23   :  { %3892 = vsyncadd [#allocation12], 4294957056 }
  0x24   :  { %3893 = dma.done.wait [#allocation15], 2048  }
  0x25   :  { %3894 = vsyncadd [#allocation15], 4294965248  ;;  %v292_v0 = vld [vmem:[#allocation5 + $0x1e0] sm:$0xff]  ;;  %v295_v1 = vld [vmem:[#allocation5 + $0x1f8] sm:$0xff]  ;;  %s3142_s14 = sshll.u32 %s5844_s12, 4  ;;  %s3912_s0 = smov 2   ;;  %s3143_s14 = int_to_ptr.hbm [resolvable:$true] %s3142_s14 }
  0x26   :  { %v288_v2 = vld [vmem:[#allocation5 + $0x1c0] sm:$0xff]  ;;  %306 = vmatpush.msra.mxu0 %v292_v0  ;;  %375 = vmatpush.msra.mxu3 %v295_v1  ;;  %v291_v3 = vld [vmem:[#allocation5 + $0x1d8] sm:$0xff]  ;;  %v294_v8 = vld [vmem:[#allocation5 + $0x1f0] sm:$0xff]  ;;  %s3155_s19 = sshll.u32 %s5845_s13, 4  ;;  %s3913_s20 = smov [#allocation19]   ;;  %s3156_s19 = int_to_ptr.hbm [resolvable:$true] %s3155_s19 }
  0x27   :  { %v284_v4 = vld [vmem:[#allocation5 + $0x1a0] sm:$0xff]  ;;  %v287_v5 = vld [vmem:[#allocation5 + $0x1b8] sm:$0xff]  ;;  %352 = vmatpush.msra.mxu2 %v294_v8  ;;  %v290_v11 = vld [vmem:[#allocation5 + $0x1d0] sm:$0xff]  ;;  %s3153_s1 = sshll.u32 %s3913_s20, 4  ;;  %s3914_s12 = smov [#allocation16]   ;;  %s3154_s1 = int_to_ptr.vmem [resolvable:$true] %s3153_s1 }
  0x28   :  { %307 = vmatpush.msra.mxu0 %v288_v2  ;;  %376 = vmatpush.msra.mxu3 %v291_v3  ;;  %v280_v6 = vld [vmem:[#allocation5 + $0x180] sm:$0xff]  ;;  %v283_v7 = vld [vmem:[#allocation5 + $0x198] sm:$0xff]  ;;  %v286_v12 = vld [vmem:[#allocation5 + $0x1b0] sm:$0xff]  ;;  %s3130_s23 = sshll.u32 %s3914_s12, 4  ;;  %s3132_s24 = sshll.u32 %s5843_s11, 4  ;;  %s3131_s23 = int_to_ptr.vmem [resolvable:$true] %s3130_s23  ;;  %s3133_s24 = int_to_ptr.hbm [resolvable:$true] %s3132_s24 }
  0x29   :  { %v276_v9 = vld [vmem:[#allocation5 + $0x160] sm:$0xff]  ;;  %v279_v10 = vld [vmem:[#allocation5 + $0x178] sm:$0xff]  ;;  %353 = vmatpush.msra.mxu2 %v290_v11  ;;  %v282_v15 = vld [vmem:[#allocation5 + $0x190] sm:$0xff] }
  0x2a   :  { %308 = vmatpush.msra.mxu0 %v284_v4  ;;  %377 = vmatpush.msra.mxu3 %v287_v5  ;;  %v272_v13 = vld [vmem:[#allocation5 + $0x140] sm:$0xff]  ;;  %v275_v14 = vld [vmem:[#allocation5 + $0x158] sm:$0xff]  ;;  %v278_v18 = vld [vmem:[#allocation5 + $0x170] sm:$0xff] }
  0x2b   :  { %v268_v16 = vld [vmem:[#allocation5 + $0x120] sm:$0xff]  ;;  %v271_v17 = vld [vmem:[#allocation5 + $0x138] sm:$0xff]  ;;  %354 = vmatpush.msra.mxu2 %v286_v12  ;;  %v274_v21 = vld [vmem:[#allocation5 + $0x150] sm:$0xff] }
  0x2c   :  { %309 = vmatpush.msra.mxu0 %v280_v6  ;;  %378 = vmatpush.msra.mxu3 %v283_v7  ;;  %v264_v19 = vld [vmem:[#allocation5 + $0x100] sm:$0xff]  ;;  %v267_v20 = vld [vmem:[#allocation5 + $0x118] sm:$0xff]  ;;  %v270_v24 = vld [vmem:[#allocation5 + $0x130] sm:$0xff] }
  0x2d   :  { %355 = vmatpush.msra.mxu2 %v282_v15  ;;  %v260_v22 = vld [vmem:[#allocation5 + $0xe0] sm:$0xff]  ;;  %v263_v23 = vld [vmem:[#allocation5 + $0xf8] sm:$0xff]  ;;  %v293_v27 = vld [vmem:[#allocation5 + $0x1e8] sm:$0xff] }
  0x2e   :  { %310 = vmatpush.msra.mxu0 %v276_v9  ;;  %379 = vmatpush.msra.mxu3 %v279_v10  ;;  %v256_v25 = vld [vmem:[#allocation5 + $0xc0] sm:$0xff]  ;;  %v259_v26 = vld [vmem:[#allocation5 + $0xd8] sm:$0xff]  ;;  %v266_v28 = vld [vmem:[#allocation5 + $0x110] sm:$0xff] }
  0x2f   :  { %356 = vmatpush.msra.mxu2 %v278_v18  ;;  %v289_v29 = vld [vmem:[#allocation5 + $0x1c8] sm:$0xff]  ;;  %v252_v30 = vld [vmem:[#allocation5 + $0xa0] sm:$0xff]  ;;  %v255_v31 = vld [vmem:[#allocation5 + $0xb8] sm:$0xff]  ;;  %329 = vmatpush.msra.mxu1 %v293_v27 }
  0x30   :  { %311 = vmatpush.msra.mxu0 %v272_v13  ;;  %380 = vmatpush.msra.mxu3 %v275_v14  ;;  %v248_v32 = vld [vmem:[#allocation5 + $0x80] sm:$0xff]  ;;  %v262_v33 = vld [vmem:[#allocation5 + $0xf0] sm:$0xff]  ;;  %v285_v34 = vld [vmem:[#allocation5 + $0x1a8] sm:$0xff] }
  0x31   :  { %357 = vmatpush.msra.mxu2 %v274_v21  ;;  %v251_v35 = vld [vmem:[#allocation5 + $0x98] sm:$0xff]  ;;  %330 = vmatpush.msra.mxu1 %v289_v29  ;;  %v258_v36 = vld [vmem:[#allocation5 + $0xd0] sm:$0xff]  ;;  %v281_v37 = vld [vmem:[#allocation5 + $0x188] sm:$0xff] }
  0x32   :  { %312 = vmatpush.msra.mxu0 %v268_v16  ;;  %381 = vmatpush.msra.mxu3 %v271_v17  ;;  %v244_v38 = vld [vmem:[#allocation5 + $0x60] sm:$0xff]  ;;  %v247_v39 = vld [vmem:[#allocation5 + $0x78] sm:$0xff]  ;;  %v254_v40 = vld [vmem:[#allocation5 + $0xb0] sm:$0xff] }
  0x33   :  { %358 = vmatpush.msra.mxu2 %v270_v24  ;;  %331 = vmatpush.msra.mxu1 %v285_v34  ;;  %v277_v41 = vld [vmem:[#allocation5 + $0x168] sm:$0xff]  ;;  %v240_v42 = vld [vmem:[#allocation5 + $0x40] sm:$0xff]  ;;  %v243_v43 = vld [vmem:[#allocation5 + $0x58] sm:$0xff] }
  0x34   :  { %313 = vmatpush.msra.mxu0 %v264_v19  ;;  %382 = vmatpush.msra.mxu3 %v267_v20  ;;  %v250_v44 = vld [vmem:[#allocation5 + $0x90] sm:$0xff]  ;;  %v273_v45 = vld [vmem:[#allocation5 + $0x148] sm:$0xff]  ;;  %v236_v46 = vld [vmem:[#allocation5 + $0x20] sm:$0xff] }
  0x35   :  { %359 = vmatpush.msra.mxu2 %v266_v28  ;;  %332 = vmatpush.msra.mxu1 %v281_v37  ;;  %v239_v47 = vld [vmem:[#allocation5 + $0x38] sm:$0xff]  ;;  %v246_v48 = vld [vmem:[#allocation5 + $0x70] sm:$0xff]  ;;  %v269_v49 = vld [vmem:[#allocation5 + $0x128] sm:$0xff] }
  0x36   :  { %314 = vmatpush.msra.mxu0 %v260_v22  ;;  %383 = vmatpush.msra.mxu3 %v263_v23  ;;  %v232_v50 = vld [vmem:[#allocation5] sm:$0xff]  ;;  %v235_v51 = vld [vmem:[#allocation5 + $0x18] sm:$0xff]  ;;  %v4021_v52 = vld [vmem:[#allocation2] sm:$0xff] }
  0x37   :  { %360 = vmatpush.msra.mxu2 %v262_v33  ;;  %333 = vmatpush.msra.mxu1 %v277_v41  ;;  %v242_v53 = vld [vmem:[#allocation5 + $0x50] sm:$0xff]  ;;  %v265_v54 = vld [vmem:[#allocation5 + $0x108] sm:$0xff]  ;;  %v4026_v1 = vld [vmem:[#allocation7 + $0x1e0] sm:$0xff] }
  0x38   :  { %315 = vmatpush.msra.mxu0 %v256_v25  ;;  %384 = vmatpush.msra.mxu3 %v259_v26  ;;  %v238_v55 = vld [vmem:[#allocation5 + $0x30] sm:$0xff]  ;;  %v261_v56 = vld [vmem:[#allocation5 + $0xe8] sm:$0xff]  ;;  %6127 = vst [vmem:[#allocation27_spill] sm:$0xff] %v4026_v1  ;;  %v4034_v4 = vld [vmem:[#allocation7 + $0x1f8] sm:$0xff] }
  0x39   :  { %361 = vmatpush.msra.mxu2 %v258_v36  ;;  %334 = vmatpush.msra.mxu1 %v273_v45  ;;  %v234_v57 = vld [vmem:[#allocation5 + $0x10] sm:$0xff]  ;;  %v257_v58 = vld [vmem:[#allocation5 + $0xc8] sm:$0xff]  ;;  %v4038_v5 = vld [vmem:[#allocation7 + $0x1c0] sm:$0xff] }
  0x3a   :  { %316 = vmatpush.msra.mxu0 %v252_v30  ;;  %385 = vmatpush.msra.mxu3 %v255_v31  ;;  %v253_v59 = vld [vmem:[#allocation5 + $0xa8] sm:$0xff]  ;;  %v4030_v3 = vld [vmem:[#allocation7 + $0x1f0] sm:$0xff]  ;;  %v4046_v8 = vld [vmem:[#allocation7 + $0x1d8] sm:$0xff] }
  0x3b   :  { %362 = vmatpush.msra.mxu2 %v254_v40  ;;  %335 = vmatpush.msra.mxu1 %v269_v49  ;;  %v249_v60 = vld [vmem:[#allocation5 + $0x88] sm:$0xff]  ;;  %v4042_v7 = vld [vmem:[#allocation7 + $0x1d0] sm:$0xff]  ;;  %v4050_v9 = vld [vmem:[#allocation7 + $0x1a0] sm:$0xff] }
  0x3c   :  { %317 = vmatpush.msra.mxu0 %v248_v32  ;;  %386 = vmatpush.msra.mxu3 %v251_v35  ;;  %v245_v61 = vld [vmem:[#allocation5 + $0x68] sm:$0xff]  ;;  %6129 = vst [vmem:[#allocation29_spill] sm:$0xff] %v4042_v7  ;;  %v4054_v11 = vld [vmem:[#allocation7 + $0x1b0] sm:$0xff]  ;;  %v4058_v12 = vld [vmem:[#allocation7 + $0x1b8] sm:$0xff] }
  0x3d   :  { %363 = vmatpush.msra.mxu2 %v250_v44  ;;  %336 = vmatpush.msra.mxu1 %v265_v54  ;;  %v241_v62 = vld [vmem:[#allocation5 + $0x48] sm:$0xff]  ;;  %v4062_v13 = vld [vmem:[#allocation7 + $0x180] sm:$0xff]  ;;  %v4066_v15 = vld [vmem:[#allocation7 + $0x190] sm:$0xff] }
  0x3e   :  { %318 = vmatpush.msra.mxu0 %v244_v38  ;;  %387 = vmatpush.msra.mxu3 %v247_v39  ;;  %v237_v63 = vld [vmem:[#allocation5 + $0x28] sm:$0xff]  ;;  %v4070_v16 = vld [vmem:[#allocation7 + $0x198] sm:$0xff]  ;;  %v4074_v17 = vld [vmem:[#allocation7 + $0x160] sm:$0xff] }
  0x3f   :  { %364 = vmatpush.msra.mxu2 %v246_v48  ;;  %337 = vmatpush.msra.mxu1 %v261_v56  ;;  %v233_v0 = vld [vmem:[#allocation5 + $0x8] sm:$0xff]  ;;  %6130 = vst [vmem:[#allocation30_spill] sm:$0xff] %v4070_v16  ;;  %v4078_v19 = vld [vmem:[#allocation7 + $0x170] sm:$0xff]  ;;  %v4082_v20 = vld [vmem:[#allocation7 + $0x178] sm:$0xff] }
  0x40   :  { %319 = vmatpush.msra.mxu0 %v240_v42  ;;  %388 = vmatpush.msra.mxu3 %v243_v43  ;;  %v4028_v2 = vld [vmem:[#allocation7 + $0x1e8] sm:$0xff]  ;;  %v4086_v21 = vld [vmem:[#allocation7 + $0x140] sm:$0xff]  ;;  %v4090_v23 = vld [vmem:[#allocation7 + $0x150] sm:$0xff] }
  0x41   :  { %365 = vmatpush.msra.mxu2 %v242_v53  ;;  %338 = vmatpush.msra.mxu1 %v257_v58  ;;  %6128 = vst [vmem:[#allocation28_spill] sm:$0xff] %v4028_v2  ;;  %v4040_v6 = vld [vmem:[#allocation7 + $0x1c8] sm:$0xff]  ;;  %v4094_v24 = vld [vmem:[#allocation7 + $0x158] sm:$0xff]  ;;  %v4098_v25 = vld [vmem:[#allocation7 + $0x120] sm:$0xff] }
  0x42   :  { %320 = vmatpush.msra.mxu0 %v236_v46  ;;  %389 = vmatpush.msra.mxu3 %v239_v47  ;;  %v4052_v10 = vld [vmem:[#allocation7 + $0x1a8] sm:$0xff]  ;;  %6132 = vst [vmem:[#allocation32_spill] sm:$0xff] %v4086_v21  ;;  %v4102_v27 = vld [vmem:[#allocation7 + $0x130] sm:$0xff]  ;;  %v4106_v28 = vld [vmem:[#allocation7 + $0x138] sm:$0xff] }
  0x43   :  { %366 = vmatpush.msra.mxu2 %v238_v55  ;;  %339 = vmatpush.msra.mxu1 %v253_v59  ;;  %v4064_v14 = vld [vmem:[#allocation7 + $0x188] sm:$0xff]  ;;  %6133 = vst [vmem:[#allocation33_spill] sm:$0xff] %v4090_v23  ;;  %v4110_v29 = vld [vmem:[#allocation7 + $0x100] sm:$0xff]  ;;  %v4114_v31 = vld [vmem:[#allocation7 + $0x110] sm:$0xff] }
  0x44   :  { %321 = vmatpush.msra.mxu0 %v232_v50  ;;  %390 = vmatpush.msra.mxu3 %v235_v51  ;;  %v4076_v18 = vld [vmem:[#allocation7 + $0x168] sm:$0xff]  ;;  %6134 = vst [vmem:[#allocation34_spill] sm:$0xff] %v4098_v25  ;;  %v4116_v32 = vld [vmem:[#allocation8] sm:$0xf]  ;;  %v4120_v33 = vld [vmem:[#allocation7 + $0x118] sm:$0xff] }
  0x45   :  { %322 = vmatmul.f32.vlgmr.msra.gmra.mxu0 %v4021_v52  ;;  %391 = vmatmul.f32.vlgmr.msra.gmra.mxu3 %v4021_v52  ;;  %6131 = vst [vmem:[#allocation31_spill] sm:$0xff] %v4076_v18  ;;  %v4088_v22 = vld [vmem:[#allocation7 + $0x148] sm:$0xff]  ;;  %v4124_v34 = vld [vmem:[#allocation7 + $0xe0] sm:$0xff]  ;;  %v4128_v36 = vld [vmem:[#allocation7 + $0xf0] sm:$0xff]  ;;  %v5846_v41 = vperm.slane %v4116_v32, 0  ;;  %v5853_v56 = vperm.slane %v4116_v32, 3 }
  0x46   :  { %367 = vmatpush.msra.mxu2 %v234_v57  ;;  %340 = vmatpush.msra.mxu1 %v249_v60  ;;  %v4100_v26 = vld [vmem:[#allocation7 + $0x128] sm:$0xff]  ;;  %6136 = vst [vmem:[#allocation36_spill] sm:$0xff] %v4110_v29  ;;  %v4132_v37 = vld [vmem:[#allocation7 + $0xf8] sm:$0xff]  ;;  %v4136_v38 = vld [vmem:[#allocation7 + $0xc0] sm:$0xff] }
  0x47   :  { %368 = vmatmul.f32.vlgmr.msra.gmra.mxu2 %v4021_v52  ;;  %440 = vmatpush.msrb.mxu0 %v4026_v1  ;;  %6135 = vst [vmem:[#allocation35_spill] sm:$0xff] %v4100_v26  ;;  %v4112_v30 = vld [vmem:[#allocation7 + $0x108] sm:$0xff]  ;;  %v4140_v40 = vld [vmem:[#allocation7 + $0xd0] sm:$0xff]  ;;  %v4145_v42 = vld [vmem:[#allocation7 + $0xd8] sm:$0xff] }
  0x48   :  { %341 = vmatpush.msra.mxu1 %v245_v61  ;;  %480 = vmatpush.msrb.mxu2 %v4030_v3  ;;  %6137 = vst [vmem:[#allocation37_spill] sm:$0xff] %v4116_v32  ;;  %v4126_v35 = vld [vmem:[#allocation7 + $0xe8] sm:$0xff]  ;;  %v4149_v43 = vld [vmem:[#allocation7 + $0xa0] sm:$0xff]  ;;  %v4153_v45 = vld [vmem:[#allocation7 + $0xb0] sm:$0xff] }
  0x49   :  { %500 = vmatpush.msrb.mxu3 %v4034_v4  ;;  %441 = vmatpush.msrb.mxu0 %v4038_v5  ;;  %v4138_v39 = vld [vmem:[#allocation7 + $0xc8] sm:$0xff]  ;;  %6138 = vst [vmem:[#allocation38_spill] sm:$0xff] %v4145_v42  ;;  %v4157_v46 = vld [vmem:[#allocation7 + $0xb8] sm:$0xff]  ;;  %v4161_v48 = vld [vmem:[#allocation7 + $0x80] sm:$0xff] }
  0x4a   :  { %342 = vmatpush.msra.mxu1 %v241_v62  ;;  %481 = vmatpush.msrb.mxu2 %v4042_v7  ;;  %6139 = vst [vmem:[#allocation39_spill] sm:$0xff] %v4149_v43  ;;  %v4151_v44 = vld [vmem:[#allocation7 + $0xa8] sm:$0xff]  ;;  %v4165_v50 = vld [vmem:[#allocation7 + $0x90] sm:$0xff]  ;;  %v167_v53 = vld [vmem:[#allocation2 + $0x8] sm:$0xff] }
  0x4b   :  { %501 = vmatpush.msrb.mxu3 %v4046_v8  ;;  %442 = vmatpush.msrb.mxu0 %v4050_v9  ;;  %6140 = vst [vmem:[#allocation40_spill] sm:$0xff] %v4151_v44  ;;  %v4163_v49 = vld [vmem:[#allocation7 + $0x88] sm:$0xff]  ;;  %v4177_v54 = vld [vmem:[#allocation7 + $0x60] sm:$0xff]  ;;  %v4184_v58 = vld [vmem:[#allocation7 + $0x70] sm:$0xff] }
  0x4c   :  { %343 = vmatpush.msra.mxu1 %v237_v63  ;;  %482 = vmatpush.msrb.mxu2 %v4054_v11  ;;  %6141 = vst [vmem:[#allocation41_spill] sm:$0xff] %v4153_v45  ;;  %v4182_v57 = vld [vmem:[#allocation7 + $0x68] sm:$0xff]  ;;  %v4186_v59 = vld [vmem:[#allocation7 + $0x78] sm:$0xff]  ;;  %v4188_v60 = vld [vmem:[#allocation7 + $0x40] sm:$0xff] }
  0x4d   :  { %502 = vmatpush.msrb.mxu3 %v4058_v12  ;;  %443 = vmatpush.msrb.mxu0 %v4062_v13  ;;  %6142 = vst [vmem:[#allocation42_spill] sm:$0xff] %v4157_v46  ;;  %v4191_v61 = vld [vmem:[#allocation7 + $0x48] sm:$0xff]  ;;  %v4193_v62 = vld [vmem:[#allocation7 + $0x50] sm:$0xff] }
  0x4e   :  { %344 = vmatpush.msra.mxu1 %v233_v0  ;;  %483 = vmatpush.msrb.mxu2 %v4066_v15  ;;  %6143 = vst [vmem:[#allocation43_spill] sm:$0xff] %v4161_v48  ;;  %v4197_v0 = vld [vmem:[#allocation7 + $0x58] sm:$0xff] }
  0x4f   :  { %503 = vmatpush.msrb.mxu3 %v4070_v16  ;;  %444 = vmatpush.msrb.mxu0 %v4074_v17  ;;  %6144 = vst [vmem:[#allocation44_spill] sm:$0xff] %v4163_v49 }
  0x50   :  { %460 = vmatpush.msrb.mxu1 %v4028_v2  ;;  %484 = vmatpush.msrb.mxu2 %v4078_v19  ;;  %6145 = vst [vmem:[#allocation45_spill] sm:$0xff] %v4165_v50 }
  0x51   :  { %504 = vmatpush.msrb.mxu3 %v4082_v20  ;;  %445 = vmatpush.msrb.mxu0 %v4086_v21  ;;  %6148 = vst [vmem:[#allocation48_spill] sm:$0xff] %v4177_v54 }
  0x52   :  { %461 = vmatpush.msrb.mxu1 %v4040_v6  ;;  %485 = vmatpush.msrb.mxu2 %v4090_v23  ;;  %6149 = vst [vmem:[#allocation49_spill] sm:$0xff] %v4182_v57 }
  0x53   :  { %505 = vmatpush.msrb.mxu3 %v4094_v24  ;;  %446 = vmatpush.msrb.mxu0 %v4098_v25  ;;  %6150 = vst [vmem:[#allocation50_spill] sm:$0xff] %v4184_v58 }
  0x54   :  { %462 = vmatpush.msrb.mxu1 %v4052_v10  ;;  %486 = vmatpush.msrb.mxu2 %v4102_v27  ;;  %6151 = vst [vmem:[#allocation51_spill] sm:$0xff] %v4186_v59 }
  0x55   :  { %506 = vmatpush.msrb.mxu3 %v4106_v28  ;;  %447 = vmatpush.msrb.mxu0 %v4110_v29  ;;  %6152 = vst [vmem:[#allocation52_spill] sm:$0xff] %v4188_v60 }
  0x56   :  { %463 = vmatpush.msrb.mxu1 %v4064_v14  ;;  %487 = vmatpush.msrb.mxu2 %v4114_v31  ;;  %6153 = vst [vmem:[#allocation53_spill] sm:$0xff] %v4191_v61 }
  0x57   :  { %507 = vmatpush.msrb.mxu3 %v4120_v33  ;;  %345 = vmatmul.f32.vlgmr.msra.gmra.mxu1 %v4021_v52  ;;  %v4173_v52 = vld [vmem:[#allocation7 + $0x98] sm:$0xff]  ;;  %6154 = vst [vmem:[#allocation54_spill] sm:$0xff] %v4193_v62 }
  0x58   :  { %464 = vmatpush.msrb.mxu1 %v4076_v18  ;;  %448 = vmatpush.msrb.mxu0 %v4124_v34  ;;  %6147 = vst [vmem:[#allocation47_spill] sm:$0xff] %v4173_v52 }
  0x59   :  { %488 = vmatpush.msrb.mxu2 %v4128_v36  ;;  %508 = vmatpush.msrb.mxu3 %v4132_v37  ;;  %6155 = vst [vmem:[#allocation55_spill] sm:$0xff] %v4197_v0 }
  0x5a   :  { %465 = vmatpush.msrb.mxu1 %v4088_v22  ;;  %449 = vmatpush.msrb.mxu0 %v4136_v38 }
  0x5b   :  { %489 = vmatpush.msrb.mxu2 %v4140_v40  ;;  %509 = vmatpush.msrb.mxu3 %v4145_v42 }
  0x5c   :  { %466 = vmatpush.msrb.mxu1 %v4100_v26  ;;  %450 = vmatpush.msrb.mxu0 %v4149_v43 }
  0x5d   :  { %490 = vmatpush.msrb.mxu2 %v4153_v45  ;;  %510 = vmatpush.msrb.mxu3 %v4157_v46 }
  0x5e   :  { %467 = vmatpush.msrb.mxu1 %v4112_v30  ;;  %451 = vmatpush.msrb.mxu0 %v4161_v48 }
  0x5f   :  { %491 = vmatpush.msrb.mxu2 %v4165_v50  ;;  %511 = vmatpush.msrb.mxu3 %v4173_v52 }
  0x60   :  { %468 = vmatpush.msrb.mxu1 %v4126_v35  ;;  %325 = vmatmul.f32.gmra.mxu0 %v167_v53 }
  0x61   :  { %348 = vmatmul.f32.gmra.mxu1 %v167_v53  ;;  %371 = vmatmul.f32.gmra.mxu2 %v167_v53 }
  0x62   :  { %469 = vmatpush.msrb.mxu1 %v4138_v39  ;;  %394 = vmatmul.f32.gmra.mxu3 %v167_v53  ;;  %v4207_v53 = vld [vmem:[#allocation7 + $0x28] sm:$0xff] }
  0x63   :  { %452 = vmatpush.msrb.mxu0 %v4177_v54  ;;  %492 = vmatpush.msrb.mxu2 %v4184_v58  ;;  %6158 = vst [vmem:[#allocation58_spill] sm:$0xff] %v4207_v53  ;;  %v4215_v58 = vld [vmem:[#allocation7] sm:$0xff] }
  0x64   :  { %470 = vmatpush.msrb.mxu1 %v4151_v44  ;;  %512 = vmatpush.msrb.mxu3 %v4186_v59  ;;  %6161 = vst [vmem:[#allocation61_spill] sm:$0xff] %v4215_v58 }
  0x65   :  { %453 = vmatpush.msrb.mxu0 %v4188_v60  ;;  %493 = vmatpush.msrb.mxu2 %v4193_v62 }
  0x66   :  { %471 = vmatpush.msrb.mxu1 %v4163_v49  ;;  %513 = vmatpush.msrb.mxu3 %v4197_v0 }
  0x68   :  { %472 = vmatpush.msrb.mxu1 %v4182_v57 }
  0x6a   :  { %473 = vmatpush.msrb.mxu1 %v4191_v61  ;;  %v4226_v61 = vld [vmem:[#allocation7 + $0x18] sm:$0xff] }
  0x6b   :  { %6164 = vst [vmem:[#allocation64_spill] sm:$0xff] %v4226_v61 }
  0x6c   :  { %474 = vmatpush.msrb.mxu1 %v4207_v53 }
  0xc2   :  { %v323_v47 = vpop.f32.mrf.mxu0 }
  0xc3   :  { %v4169_v51 = vadd.f32 %v323_v47, %v5846_v41  ;;  %v4199_v47 = vld [vmem:[#allocation7 + $0x20] sm:$0xff] }
  0xc4   :  { %6156 = vst [vmem:[#allocation56_spill] sm:$0xff] %v4199_v47  ;;  %454 = vmatpush.msrb.mxu0 %v4199_v47 }
  0xc5   :  { %6146 = vst [vmem:[#allocation46_spill] sm:$0xff] %v4169_v51  ;;  %v3181_v55 = vmul.f32 -1.442695, %v4169_v51  ;;  %v4213_v51 = vld [vmem:[#allocation7 + $0x38] sm:$0xff] }
  0xc6   :  { %6160 = vst [vmem:[#allocation60_spill] sm:$0xff] %v4213_v51  ;;  %514 = vmatpush.msrb.mxu3 %v4213_v51  ;;  %455 = vmatpush.msrb.mxu0 %v4215_v58 }
  0xc7   :  { %3245 = vpow2.f32 %v3181_v55  ;;  %v4209_v55 = vld [vmem:[#allocation7 + $0x30] sm:$0xff] }
  0xc8   :  { %v392_v63 = vpop.f32.mrf.mxu3  ;;  %6159 = vst [vmem:[#allocation59_spill] sm:$0xff] %v4209_v55  ;;  %494 = vmatpush.msrb.mxu2 %v4209_v55  ;;  %515 = vmatpush.msrb.mxu3 %v4226_v61  ;;  %v5868_v55 = vperm.slane %v4116_v32, 2 }
  0xc9   :  { %v4203_v41 = vadd.f32 %v392_v63, %v5853_v56  ;;  %v4220_v63 = vld [vmem:[#allocation7 + $0x8] sm:$0xff]  ;;  %v4222_v56 = vld [vmem:[#allocation7 + $0x10] sm:$0xff]  ;;  %605 = vmatpush.msra.mxu0 %v4026_v1 }
  0xca   :  { %6162 = vst [vmem:[#allocation62_spill] sm:$0xff] %v4220_v63  ;;  %475 = vmatpush.msrb.mxu1 %v4220_v63  ;;  %495 = vmatpush.msrb.mxu2 %v4222_v56 }
  0xcb   :  { %6157 = vst [vmem:[#allocation57_spill] sm:$0xff] %v4203_v41  ;;  %v3182_v57 = vmul.f32 -1.442695, %v4203_v41  ;;  %665 = vmatpush.msra.mxu3 %v4034_v4  ;;  %606 = vmatpush.msra.mxu0 %v4038_v5 }
  0xcc   :  { %6163 = vst [vmem:[#allocation63_spill] sm:$0xff] %v4222_v56  ;;  %625 = vmatpush.msra.mxu1 %v4028_v2  ;;  %645 = vmatpush.msra.mxu2 %v4030_v3 }
  0xcd   :  { %v3246_v62 = vpop.eup %3245  ;;  %3247 = vpow2.f32 %v3182_v57  ;;  %v369_v57 = vpop.f32.mrf.mxu2  ;;  %666 = vmatpush.msra.mxu3 %v4046_v8  ;;  %607 = vmatpush.msra.mxu0 %v4050_v9 }
  0xce   :  { %v401_v41 = vadd.f32 1.0, %v3246_v62  ;;  %626 = vmatpush.msra.mxu1 %v4040_v6  ;;  %646 = vmatpush.msra.mxu2 %v4042_v7  ;;  %v4247_v2 = vadd.f32 %v369_v57, %v5868_v55 }
  0xcf   :  { %667 = vmatpush.msra.mxu3 %v4058_v12  ;;  %608 = vmatpush.msra.mxu0 %v4062_v13 }
  0xd0   :  { %3249 = vrcp.f32 %v401_v41  ;;  %6165 = vst [vmem:[#allocation65_spill] sm:$0xff] %v4247_v2  ;;  %627 = vmatpush.msra.mxu1 %v4052_v10  ;;  %647 = vmatpush.msra.mxu2 %v4054_v11  ;;  %v413_v55 = vand.u32 2147483648, %v401_v41  ;;  %vm407_vm1 = vweird.f32 %v401_v41 }
  0xd1   :  { %668 = vmatpush.msra.mxu3 %v4070_v16  ;;  %609 = vmatpush.msra.mxu0 %v4074_v17  ;;  %v411_v16 = vand.u32 2147483647, %v401_v41 }
  0xd2   :  { %628 = vmatpush.msra.mxu1 %v4064_v14  ;;  %648 = vmatpush.msra.mxu2 %v4066_v15 }
  0xd3   :  { %v3248_v62 = vpop.eup %3247  ;;  %669 = vmatpush.msra.mxu3 %v4082_v20  ;;  %610 = vmatpush.msra.mxu0 %v4086_v21  ;;  %vm412_vm3 = vcmp.eq.f32.partialorder %v411_v16, 8.507059e+37 }
  0xd4   :  { %v4243_v1 = vadd.f32 1.0, %v3248_v62  ;;  %629 = vmatpush.msra.mxu1 %v4076_v18  ;;  %649 = vmatpush.msra.mxu2 %v4078_v19 }
  0xd5   :  { %670 = vmatpush.msra.mxu3 %v4094_v24  ;;  %611 = vmatpush.msra.mxu0 %v4098_v25 }
  0xd6   :  { %v3250_v7 = vpop.eup %3249  ;;  %3251 = vrcp.f32 %v4243_v1  ;;  %630 = vmatpush.msra.mxu1 %v4088_v22  ;;  %650 = vmatpush.msra.mxu2 %v4090_v23  ;;  %v414_v23 = vor.u32 1.1754944e-38, %v413_v55  ;;  %v433_v16 = vand.u32 2147483648, %v4243_v1  ;;  %vm427_vm5 = vweird.f32 %v4243_v1 }
  0xd7   :  { %v403_v62 = vmul.f32 %v3250_v7, %v401_v41  ;;  %3253 = vtanh.f32 %v4247_v2  ;;  %vm408_vm0 = vweird.f32 %v3250_v7  ;;  %671 = vmatpush.msra.mxu3 %v4106_v28  ;;  %612 = vmatpush.msra.mxu0 %v4110_v29 }
  0xd8   :  { %631 = vmatpush.msra.mxu1 %v4100_v26  ;;  %651 = vmatpush.msra.mxu2 %v4102_v27  ;;  %vm409_vm2 = vmor %vm407_vm1, %vm408_vm0 }
  0xd9   :  { %v404_v57 = vsub.f32 1.0, %v403_v62  ;;  %672 = vmatpush.msra.mxu3 %v4120_v33  ;;  %613 = vmatpush.msra.mxu0 %v4124_v34 }
  0xda   :  { %632 = vmatpush.msra.mxu1 %v4112_v30  ;;  %652 = vmatpush.msra.mxu2 %v4114_v31 }
  0xdb   :  { %v405_v32 = vmul.f32 %v3250_v7, %v404_v57  ;;  %673 = vmatpush.msra.mxu3 %v4132_v37  ;;  %614 = vmatpush.msra.mxu0 %v4136_v38 }
  0xdc   :  { %v3252_v2 = vpop.eup %3251  ;;  %633 = vmatpush.msra.mxu1 %v4126_v35  ;;  %653 = vmatpush.msra.mxu2 %v4128_v36 }
  0xdd   :  { %v423_v62 = vmul.f32 %v3252_v2, %v4243_v1  ;;  %v406_v21 = vadd.f32 %v3250_v7, %v405_v32  ;;  %v3254_v57 = vpop.eup %3253  ;;  %vm428_vm4 = vweird.f32 %v3252_v2  ;;  %674 = vmatpush.msra.mxu3 %v4145_v42  ;;  %615 = vmatpush.msra.mxu0 %v4149_v43 }
  0xde   :  { %634 = vmatpush.msra.mxu1 %v4138_v39  ;;  %654 = vmatpush.msra.mxu2 %v4140_v40  ;;  %vm429_vm6 = vmor %vm427_vm5, %vm428_vm4 }
  0xdf   :  { %v410_v25 = vsel %vm409_vm2, %v3250_v7, %v406_v21  ;;  %v424_v26 = vsub.f32 1.0, %v423_v62  ;;  %v431_v21 = vand.u32 2147483647, %v4243_v1  ;;  %675 = vmatpush.msra.mxu3 %v4157_v46  ;;  %616 = vmatpush.msra.mxu0 %v4161_v48  ;;  %v6166_v1 = vld [vmem:[#allocation49_spill] sm:$0xff] }
  0xe0   :  { %v415_v32 = vsel %vm412_vm3, %v414_v23, %v410_v25  ;;  %635 = vmatpush.msra.mxu1 %v4151_v44  ;;  %655 = vmatpush.msra.mxu2 %v4153_v45  ;;  %v434_v25 = vor.u32 1.1754944e-38, %v433_v16  ;;  %v6169_v62 = vld [vmem:[#allocation53_spill] sm:$0xff]  ;;  %v6173_v16 = vld [vmem:[#allocation28_spill] sm:$0xff] }
  0xe1   :  { %v4278_v41 = vmul.f32 %v3254_v57, %v415_v32  ;;  %v425_v29 = vmul.f32 %v3252_v2, %v424_v26  ;;  %676 = vmatpush.msra.mxu3 %v4173_v52  ;;  %617 = vmatpush.msra.mxu0 %v4177_v54  ;;  %vm432_vm7 = vcmp.eq.f32.partialorder %v431_v21, 8.507059e+37  ;;  %v6167_v26 = vld [vmem:[#allocation50_spill] sm:$0xff]  ;;  %v6171_v32 = vld [vmem:[#allocation59_spill] sm:$0xff]  ;;  %v6174_v21 = vld [vmem:[#allocation29_spill] sm:$0xff] }
  0xe2   :  { %636 = vmatpush.msra.mxu1 %v4163_v49  ;;  %656 = vmatpush.msra.mxu2 %v4165_v50  ;;  %v6170_v57 = vld [vmem:[#allocation54_spill] sm:$0xff] }
  0xe3   :  { %3255 = vtanh.f32 %v4278_v41  ;;  %v426_v7 = vadd.f32 %v3252_v2, %v425_v29  ;;  %677 = vmatpush.msra.mxu3 %v4186_v59  ;;  %618 = vmatpush.msra.mxu0 %v4188_v60 }
  0xe4   :  { %637 = vmatpush.msra.mxu1 %v6166_v1  ;;  %657 = vmatpush.msra.mxu2 %v6167_v26 }
  0xe5   :  { %v430_v23 = vsel %vm429_vm6, %v3252_v2, %v426_v7  ;;  %678 = vmatpush.msra.mxu3 %v4197_v0  ;;  %619 = vmatpush.msra.mxu0 %v4199_v47  ;;  %v6172_v7 = vld [vmem:[#allocation27_spill] sm:$0xff] }
  0xe6   :  { %v435_v55 = vsel %vm432_vm7, %v434_v25, %v430_v23  ;;  %638 = vmatpush.msra.mxu1 %v6169_v62  ;;  %658 = vmatpush.msra.mxu2 %v6170_v57  ;;  %v6175_v23 = vld [vmem:[#allocation30_spill] sm:$0xff]  ;;  %v6176_v25 = vld [vmem:[#allocation32_spill] sm:$0xff] }
  0xe7   :  { %679 = vmatpush.msra.mxu3 %v4213_v51  ;;  %620 = vmatpush.msra.mxu0 %v4215_v58 }
  0xe8   :  { %639 = vmatpush.msra.mxu1 %v4207_v53  ;;  %659 = vmatpush.msra.mxu2 %v6171_v32 }
  0xe9   :  { %v3256_v29 = vpop.eup %3255  ;;  %680 = vmatpush.msra.mxu3 %v4226_v61 }
  0xea   :  { %v4302_v2 = vmul.f32 %v3256_v29, %v435_v55  ;;  %640 = vmatpush.msra.mxu1 %v4220_v63  ;;  %660 = vmatpush.msra.mxu2 %v4222_v56  ;;  %v6177_v29 = vld [vmem:[#allocation33_spill] sm:$0xff]  ;;  %v6178_v55 = vld [vmem:[#allocation34_spill] sm:$0xff] }
  0xec   :  { %6168 = vst [vmem:[#allocation66_spill] sm:$0xff] %v4302_v2  ;;  %456 = vmatmul.f32.vlgmr.msrb.gmra.mxu0 %v4302_v2  ;;  %476 = vmatmul.f32.vlgmr.msrb.gmra.mxu1 %v4302_v2 }
  0xed   :  { %496 = vmatmul.f32.vlgmr.msrb.gmra.mxu2 %v4302_v2  ;;  %516 = vmatmul.f32.vlgmr.msrb.gmra.mxu3 %v4302_v2  ;;  %v6179_v2 = vld [vmem:[#allocation35_spill] sm:$0xff] }
  0xee   :  { %770 = vmatpush.msrb.mxu0 %v6172_v7  ;;  %790 = vmatpush.msrb.mxu1 %v6173_v16 }
  0xef   :  { %810 = vmatpush.msrb.mxu2 %v4030_v3  ;;  %830 = vmatpush.msrb.mxu3 %v4034_v4 }
  0xf0   :  { %771 = vmatpush.msrb.mxu0 %v4038_v5  ;;  %791 = vmatpush.msrb.mxu1 %v4040_v6 }
  0xf1   :  { %811 = vmatpush.msrb.mxu2 %v6174_v21  ;;  %831 = vmatpush.msrb.mxu3 %v4046_v8 }
  0xf2   :  { %772 = vmatpush.msrb.mxu0 %v4050_v9  ;;  %792 = vmatpush.msrb.mxu1 %v4052_v10 }
  0xf3   :  { %812 = vmatpush.msrb.mxu2 %v4054_v11  ;;  %832 = vmatpush.msrb.mxu3 %v4058_v12 }
  0xf4   :  { %773 = vmatpush.msrb.mxu0 %v4062_v13  ;;  %793 = vmatpush.msrb.mxu1 %v4064_v14 }
  0xf5   :  { %813 = vmatpush.msrb.mxu2 %v4066_v15  ;;  %833 = vmatpush.msrb.mxu3 %v6175_v23 }
  0xf6   :  { %774 = vmatpush.msrb.mxu0 %v4074_v17  ;;  %794 = vmatpush.msrb.mxu1 %v4076_v18  ;;  %v6180_v18 = vld [vmem:[#allocation36_spill] sm:$0xff] }
  0xf7   :  { %814 = vmatpush.msrb.mxu2 %v4078_v19  ;;  %834 = vmatpush.msrb.mxu3 %v4082_v20 }
  0xf8   :  { %775 = vmatpush.msrb.mxu0 %v6176_v25  ;;  %795 = vmatpush.msrb.mxu1 %v4088_v22 }
  0xf9   :  { %815 = vmatpush.msrb.mxu2 %v6177_v29  ;;  %835 = vmatpush.msrb.mxu3 %v4094_v24 }
  0xfa   :  { %776 = vmatpush.msrb.mxu0 %v6178_v55  ;;  %796 = vmatpush.msrb.mxu1 %v6179_v2 }
  0xfb   :  { %816 = vmatpush.msrb.mxu2 %v4102_v27  ;;  %836 = vmatpush.msrb.mxu3 %v4106_v28 }
  0xfc   :  { %777 = vmatpush.msrb.mxu0 %v6180_v18  ;;  %797 = vmatpush.msrb.mxu1 %v4112_v30 }
  0xfd   :  { %817 = vmatpush.msrb.mxu2 %v4114_v31  ;;  %837 = vmatpush.msrb.mxu3 %v4120_v33 }
  0xfe   :  { %778 = vmatpush.msrb.mxu0 %v4124_v34  ;;  %798 = vmatpush.msrb.mxu1 %v4126_v35 }
  0xff   :  { %818 = vmatpush.msrb.mxu2 %v4128_v36  ;;  %838 = vmatpush.msrb.mxu3 %v4132_v37 }
 0x100   :  { %779 = vmatpush.msrb.mxu0 %v4136_v38  ;;  %799 = vmatpush.msrb.mxu1 %v4138_v39 }
 0x101   :  { %819 = vmatpush.msrb.mxu2 %v4140_v40  ;;  %839 = vmatpush.msrb.mxu3 %v4145_v42 }
 0x102   :  { %780 = vmatpush.msrb.mxu0 %v4149_v43  ;;  %800 = vmatpush.msrb.mxu1 %v4151_v44 }
 0x103   :  { %820 = vmatpush.msrb.mxu2 %v4153_v45  ;;  %840 = vmatpush.msrb.mxu3 %v4157_v46 }
 0x104   :  { %781 = vmatpush.msrb.mxu0 %v4161_v48  ;;  %801 = vmatpush.msrb.mxu1 %v4163_v49 }
 0x105   :  { %821 = vmatpush.msrb.mxu2 %v4165_v50  ;;  %841 = vmatpush.msrb.mxu3 %v4173_v52 }
 0x106   :  { %782 = vmatpush.msrb.mxu0 %v4177_v54  ;;  %802 = vmatpush.msrb.mxu1 %v6166_v1  ;;  %v6186_v1 = vld [vmem:[#allocation46_spill] sm:$0xff]  ;;  %v4394_v54 = vpop.f32.mrf.mxu2 }
 0x107   :  { %822 = vmatpush.msrb.mxu2 %v6167_v26  ;;  %842 = vmatpush.msrb.mxu3 %v4186_v59  ;;  %6187 = vst [vmem:[#allocation32_spill] sm:$0xff] %v4394_v54 }
 0x108   :  { %783 = vmatpush.msrb.mxu0 %v4188_v60  ;;  %803 = vmatpush.msrb.mxu1 %v6169_v62  ;;  %v346_v62 = vpop.f32.mrf.mxu1 }
 0x109   :  { %823 = vmatpush.msrb.mxu2 %v6170_v57  ;;  %843 = vmatpush.msrb.mxu3 %v4197_v0  ;;  %v6181_v57 = vld [vmem:[#allocation37_spill] sm:$0xff] }
 0x10a   :  { %784 = vmatpush.msrb.mxu0 %v4199_v47  ;;  %804 = vmatpush.msrb.mxu1 %v4207_v53  ;;  %v299_v60 = vperm.slane %v6181_v57, 1  ;;  %v4386_v47 = vpop.f32.mrf.mxu0  ;;  %v4388_v53 = vpop.f32.mrf.mxu3 }
 0x10b   :  { %824 = vmatpush.msrb.mxu2 %v6171_v32  ;;  %844 = vmatpush.msrb.mxu3 %v4213_v51  ;;  %6183 = vst [vmem:[#allocation28_spill] sm:$0xff] %v4386_v47  ;;  %v6188_v47 = vld [vmem:[#allocation57_spill] sm:$0xff] }
 0x10c   :  { %785 = vmatpush.msrb.mxu0 %v4215_v58  ;;  %805 = vmatpush.msrb.mxu1 %v4220_v63  ;;  %6184 = vst [vmem:[#allocation29_spill] sm:$0xff] %v4388_v53  ;;  %v4390_v26 = vadd.f32 %v346_v62, %v299_v60 }
 0x10d   :  { %825 = vmatpush.msrb.mxu2 %v4222_v56  ;;  %845 = vmatpush.msrb.mxu3 %v4226_v61 }
 0x10e   :  { %6185 = vst [vmem:[#allocation30_spill] sm:$0xff] %v4390_v26 }
 0x110   :  { %v349_v0 = vpop.f32.mrf.mxu1 }
 0x111   :  { %v4384_v59 = vadd.f32 %v349_v0, %v299_v60 }
 0x113   :  { %6182 = vst [vmem:[#allocation27_spill] sm:$0xff] %v4384_v59 }
 0x169   :  { %v457_v32 = vpop.f32.mrf.mxu0  ;;  %v477_v51 = vpop.f32.mrf.mxu1 }
 0x16a   :  { %v524_v58 = vrot.slane %v457_v32, 6  ;;  %v525_v63 = vrot.slane %v477_v51, 6 }
 0x16c   :  { %v532_v56 = vadd.f32 %v524_v58, %v6186_v1  ;;  %v533_v61 = vadd.f32 %v525_v63, %v4390_v26 }
 0x16e   :  { %v3183_v57 = vmul.f32 -1.442695, %v532_v56  ;;  %v3184_v52 = vmul.f32 -1.442695, %v533_v61  ;;  %v6189_v61 = vld [vmem:[#allocation65_spill] sm:$0xff] }
 0x170   :  { %3257 = vpow2.f32 %v3183_v57  ;;  %v517_v0 = vpop.f32.mrf.mxu3  ;;  %v497_v32 = vpop.f32.mrf.mxu2 }
 0x171   :  { %3259 = vpow2.f32 %v3184_v52  ;;  %v527_v59 = vrot.slane %v517_v0, 6  ;;  %v526_v58 = vrot.slane %v497_v32, 6 }
 0x173   :  { %v535_v53 = vadd.f32 %v527_v59, %v6188_v47  ;;  %v534_v57 = vadd.f32 %v526_v58, %v6189_v61 }
 0x175   :  { %v3185_v50 = vmul.f32 -1.442695, %v535_v53 }
 0x176   :  { %v3258_v49 = vpop.eup %3257 }
 0x177   :  { %v3260_v60 = vpop.eup %3259  ;;  %v539_v62 = vadd.f32 1.0, %v3258_v49  ;;  %3261 = vpow2.f32 %v3185_v50 }
 0x178   :  { %v558_v51 = vadd.f32 1.0, %v3260_v60 }
 0x179   :  { %3263 = vrcp.f32 %v539_v62  ;;  %v551_v47 = vand.u32 2147483648, %v539_v62  ;;  %v549_v60 = vand.u32 2147483647, %v539_v62  ;;  %vm545_vm10 = vweird.f32 %v539_v62 }
 0x17a   :  { %3265 = vrcp.f32 %v558_v51  ;;  %v570_v49 = vand.u32 2147483648, %v558_v51  ;;  %v568_v32 = vand.u32 2147483647, %v558_v51  ;;  %vm564_vm11 = vweird.f32 %v558_v51 }
 0x17b   :  { %v552_v58 = vor.u32 1.1754944e-38, %v551_v47  ;;  %vm550_vm14 = vcmp.eq.f32.partialorder %v549_v60, 8.507059e+37 }
 0x17c   :  { %vm569_vm15 = vcmp.eq.f32.partialorder %v568_v32, 8.507059e+37 }
 0x17d   :  { %v3262_v63 = vpop.eup %3261 }
 0x17e   :  { %v578_v54 = vadd.f32 1.0, %v3262_v63 }
 0x17f   :  { %v3264_v56 = vpop.eup %3263 }
 0x180   :  { %v3266_v26 = vpop.eup %3265  ;;  %v541_v52 = vmul.f32 %v3264_v56, %v539_v62  ;;  %3267 = vrcp.f32 %v578_v54  ;;  %vm546_vm8 = vweird.f32 %v3264_v56  ;;  %vm584_vm1 = vweird.f32 %v578_v54 }
 0x181   :  { %v560_v0 = vmul.f32 %v3266_v26, %v558_v51  ;;  %3269 = vtanh.f32 %v534_v57  ;;  %vm565_vm9 = vweird.f32 %v3266_v26  ;;  %vm547_vm12 = vmor %vm545_vm10, %vm546_vm8  ;;  %v595_v57 = vrot.slane %v4278_v41, 6 }
 0x182   :  { %v542_v59 = vsub.f32 1.0, %v541_v52  ;;  %vm566_vm13 = vmor %vm564_vm11, %vm565_vm9  ;;  %v571_v52 = vor.u32 1.1754944e-38, %v570_v49 }
 0x183   :  { %v561_v53 = vsub.f32 1.0, %v560_v0 }
 0x184   :  { %v543_v50 = vmul.f32 %v3264_v56, %v542_v59 }
 0x185   :  { %v562_v1 = vmul.f32 %v3266_v26, %v561_v53 }
 0x186   :  { %v3268_v48 = vpop.eup %3267  ;;  %v544_v63 = vadd.f32 %v3264_v56, %v543_v50 }
 0x187   :  { %v563_v61 = vadd.f32 %v3266_v26, %v562_v1  ;;  %v580_v46 = vmul.f32 %v3268_v48, %v578_v54  ;;  %v3270_v59 = vpop.eup %3269  ;;  %vm585_vm0 = vweird.f32 %v3268_v48  ;;  %v590_v1 = vand.u32 2147483648, %v578_v54 }
 0x188   :  { %v548_v0 = vsel %vm547_vm12, %v3264_v56, %v544_v63  ;;  %v588_v56 = vand.u32 2147483647, %v578_v54  ;;  %vm586_vm2 = vmor %vm584_vm1, %vm585_vm0  ;;  %vm1579_vm0 = vcmask 1041408   ;;  %vm1581_vm1 = vcmask 1043456  }
 0x189   :  { %v553_v45 = vsel %vm550_vm14, %v552_v58, %v548_v0  ;;  %v567_v44 = vsel %vm566_vm13, %v3266_v26, %v563_v61  ;;  %v581_v53 = vsub.f32 1.0, %v580_v46  ;;  %v591_v49 = vor.u32 1.1754944e-38, %v590_v1 }
 0x18a   :  { %v572_v43 = vsel %vm569_vm15, %v571_v52, %v567_v44  ;;  %v598_v42 = vmul.f32 %v3270_v59, %v553_v45  ;;  %vm589_vm3 = vcmp.eq.f32.partialorder %v588_v56, 8.507059e+37  ;;  %v6217_v45 = vld [vmem:[#allocation30_spill] sm:$0xff]  ;;  %v6219_v59 = vld [vmem:[#allocation65_spill] sm:$0xff] }
 0x18b   :  { %v597_v50 = vmul.f32 %v595_v57, %v572_v43  ;;  %v582_v62 = vmul.f32 %v3268_v48, %v581_v53 }
 0x18d   :  { %v4399_v51 = vadd.f32 %v598_v42, %v597_v50  ;;  %v583_v47 = vadd.f32 %v3268_v48, %v582_v62  ;;  %v6216_v42 = vld [vmem:[#allocation46_spill] sm:$0xff] }
 0x18f   :  { %3271 = vtanh.f32 %v4399_v51  ;;  %v587_v41 = vsel %vm586_vm2, %v3268_v48, %v583_v47 }
 0x190   :  { %v592_v61 = vsel %vm589_vm3, %v591_v49, %v587_v41 }
 0x195   :  { %v3272_v26 = vpop.eup %3271 }
 0x196   :  { %v4402_v46 = vmul.f32 %v3272_v26, %v592_v61 }
 0x198   :  { %v603_v43 = vrot.slane %v4402_v46, 2 }
 0x19a   :  { %621 = vmatmul.f32.vlgmr.msra.gmra.mxu0 %v603_v43  ;;  %641 = vmatmul.f32.vlgmr.msra.gmra.mxu1 %v603_v43 }
 0x19b   :  { %661 = vmatmul.f32.vlgmr.msra.gmra.mxu2 %v603_v43  ;;  %681 = vmatmul.f32.vlgmr.msra.gmra.mxu3 %v603_v43 }
 0x19c   :  { %935 = vmatpush.msra.mxu0 %v6172_v7  ;;  %955 = vmatpush.msra.mxu1 %v6173_v16 }
 0x19d   :  { %975 = vmatpush.msra.mxu2 %v4030_v3  ;;  %995 = vmatpush.msra.mxu3 %v4034_v4  ;;  %v6190_v3 = vld [vmem:[#allocation31_spill] sm:$0xff]  ;;  %v6191_v4 = vld [vmem:[#allocation38_spill] sm:$0xff] }
 0x19e   :  { %936 = vmatpush.msra.mxu0 %v4038_v5  ;;  %956 = vmatpush.msra.mxu1 %v4040_v6  ;;  %v6192_v5 = vld [vmem:[#allocation39_spill] sm:$0xff]  ;;  %v6193_v6 = vld [vmem:[#allocation40_spill] sm:$0xff] }
 0x19f   :  { %976 = vmatpush.msra.mxu2 %v6174_v21  ;;  %996 = vmatpush.msra.mxu3 %v4046_v8  ;;  %v6194_v8 = vld [vmem:[#allocation41_spill] sm:$0xff] }
 0x1a0   :  { %937 = vmatpush.msra.mxu0 %v4050_v9  ;;  %957 = vmatpush.msra.mxu1 %v4052_v10  ;;  %v6195_v9 = vld [vmem:[#allocation42_spill] sm:$0xff]  ;;  %v6196_v10 = vld [vmem:[#allocation43_spill] sm:$0xff]  ;;  %v6218_v21 = vld [vmem:[#allocation57_spill] sm:$0xff] }
 0x1a1   :  { %977 = vmatpush.msra.mxu2 %v4054_v11  ;;  %997 = vmatpush.msra.mxu3 %v4058_v12  ;;  %v6197_v11 = vld [vmem:[#allocation44_spill] sm:$0xff]  ;;  %v6198_v12 = vld [vmem:[#allocation45_spill] sm:$0xff] }
 0x1a2   :  { %938 = vmatpush.msra.mxu0 %v4062_v13  ;;  %958 = vmatpush.msra.mxu1 %v4064_v14  ;;  %v6199_v13 = vld [vmem:[#allocation47_spill] sm:$0xff]  ;;  %v6200_v14 = vld [vmem:[#allocation48_spill] sm:$0xff] }
 0x1a3   :  { %978 = vmatpush.msra.mxu2 %v4066_v15  ;;  %998 = vmatpush.msra.mxu3 %v6175_v23  ;;  %v6201_v15 = vld [vmem:[#allocation49_spill] sm:$0xff] }
 0x1a4   :  { %939 = vmatpush.msra.mxu0 %v4074_v17  ;;  %959 = vmatpush.msra.mxu1 %v6190_v3  ;;  %v6202_v17 = vld [vmem:[#allocation50_spill] sm:$0xff] }
 0x1a5   :  { %979 = vmatpush.msra.mxu2 %v4078_v19  ;;  %999 = vmatpush.msra.mxu3 %v4082_v20  ;;  %v6204_v19 = vld [vmem:[#allocation52_spill] sm:$0xff]  ;;  %v6205_v20 = vld [vmem:[#allocation53_spill] sm:$0xff] }
 0x1a6   :  { %940 = vmatpush.msra.mxu0 %v6176_v25  ;;  %960 = vmatpush.msra.mxu1 %v4088_v22  ;;  %v6206_v22 = vld [vmem:[#allocation54_spill] sm:$0xff] }
 0x1a7   :  { %980 = vmatpush.msra.mxu2 %v6177_v29  ;;  %1000 = vmatpush.msra.mxu3 %v4094_v24  ;;  %v6207_v24 = vld [vmem:[#allocation55_spill] sm:$0xff] }
 0x1a8   :  { %941 = vmatpush.msra.mxu0 %v6178_v55  ;;  %961 = vmatpush.msra.mxu1 %v6179_v2 }
 0x1a9   :  { %981 = vmatpush.msra.mxu2 %v4102_v27  ;;  %1001 = vmatpush.msra.mxu3 %v4106_v28  ;;  %v6208_v27 = vld [vmem:[#allocation56_spill] sm:$0xff]  ;;  %v6209_v28 = vld [vmem:[#allocation58_spill] sm:$0xff] }
 0x1aa   :  { %942 = vmatpush.msra.mxu0 %v6180_v18  ;;  %962 = vmatpush.msra.mxu1 %v4112_v30  ;;  %v6203_v18 = vld [vmem:[#allocation51_spill] sm:$0xff] }
 0x1ab   :  { %982 = vmatpush.msra.mxu2 %v4114_v31  ;;  %1002 = vmatpush.msra.mxu3 %v4120_v33  ;;  %v6210_v30 = vld [vmem:[#allocation59_spill] sm:$0xff]  ;;  %v6211_v31 = vld [vmem:[#allocation60_spill] sm:$0xff]  ;;  %v6212_v33 = vld [vmem:[#allocation61_spill] sm:$0xff] }
 0x1ac   :  { %943 = vmatpush.msra.mxu0 %v4124_v34  ;;  %963 = vmatpush.msra.mxu1 %v4126_v35  ;;  %v6213_v34 = vld [vmem:[#allocation62_spill] sm:$0xff]  ;;  %v6214_v35 = vld [vmem:[#allocation63_spill] sm:$0xff] }
 0x1ad   :  { %983 = vmatpush.msra.mxu2 %v4128_v36  ;;  %1003 = vmatpush.msra.mxu3 %v4132_v37  ;;  %v6215_v36 = vld [vmem:[#allocation64_spill] sm:$0xff] }
 0x1ae   :  { %944 = vmatpush.msra.mxu0 %v4136_v38  ;;  %964 = vmatpush.msra.mxu1 %v4138_v39 }
 0x1af   :  { %984 = vmatpush.msra.mxu2 %v4140_v40  ;;  %1004 = vmatpush.msra.mxu3 %v6191_v4 }
 0x1b0   :  { %945 = vmatpush.msra.mxu0 %v6192_v5  ;;  %965 = vmatpush.msra.mxu1 %v6193_v6 }
 0x1b1   :  { %985 = vmatpush.msra.mxu2 %v6194_v8  ;;  %1005 = vmatpush.msra.mxu3 %v6195_v9 }
 0x1b2   :  { %946 = vmatpush.msra.mxu0 %v6196_v10  ;;  %966 = vmatpush.msra.mxu1 %v6197_v11  ;;  %v760_v10 = vrot.slane %v4399_v51, 6 }
 0x1b3   :  { %986 = vmatpush.msra.mxu2 %v6198_v12  ;;  %1006 = vmatpush.msra.mxu3 %v6199_v13 }
 0x1b4   :  { %947 = vmatpush.msra.mxu0 %v6200_v14  ;;  %967 = vmatpush.msra.mxu1 %v6201_v15 }
 0x1b5   :  { %987 = vmatpush.msra.mxu2 %v6202_v17  ;;  %1007 = vmatpush.msra.mxu3 %v6203_v18 }
 0x1b6   :  { %948 = vmatpush.msra.mxu0 %v6204_v19  ;;  %968 = vmatpush.msra.mxu1 %v6205_v20 }
 0x1b7   :  { %988 = vmatpush.msra.mxu2 %v6206_v22  ;;  %1008 = vmatpush.msra.mxu3 %v6207_v24 }
 0x1b8   :  { %949 = vmatpush.msra.mxu0 %v6208_v27  ;;  %969 = vmatpush.msra.mxu1 %v6209_v28 }
 0x1b9   :  { %989 = vmatpush.msra.mxu2 %v6210_v30  ;;  %1009 = vmatpush.msra.mxu3 %v6211_v31 }
 0x1ba   :  { %950 = vmatpush.msra.mxu0 %v6212_v33  ;;  %970 = vmatpush.msra.mxu1 %v6213_v34 }
 0x1bb   :  { %990 = vmatpush.msra.mxu2 %v6214_v35  ;;  %1010 = vmatpush.msra.mxu3 %v6215_v36 }
 0x217   :  { %v622_v37 = vpop.f32.mrf.mxu0  ;;  %v642_v38 = vpop.f32.mrf.mxu1 }
 0x218   :  { %v689_v39 = vrot.slane %v622_v37, 4  ;;  %v690_v40 = vrot.slane %v642_v38, 4 }
 0x21a   :  { %v697_v44 = vadd.f32 %v689_v39, %v6216_v42  ;;  %v698_v48 = vadd.f32 %v690_v40, %v6217_v45 }
 0x21c   :  { %v3186_v54 = vmul.f32 -1.442695, %v697_v44  ;;  %v3187_v2 = vmul.f32 -1.442695, %v698_v48 }
 0x21e   :  { %3273 = vpow2.f32 %v3186_v54  ;;  %v682_v7 = vpop.f32.mrf.mxu3  ;;  %v662_v63 = vpop.f32.mrf.mxu2 }
 0x21f   :  { %3275 = vpow2.f32 %v3187_v2  ;;  %v692_v16 = vrot.slane %v682_v7, 4  ;;  %v691_v58 = vrot.slane %v662_v63, 4 }
 0x221   :  { %v700_v23 = vadd.f32 %v692_v16, %v6218_v21  ;;  %v699_v53 = vadd.f32 %v691_v58, %v6219_v59 }
 0x223   :  { %v3188_v25 = vmul.f32 -1.442695, %v700_v23 }
 0x224   :  { %v3274_v29 = vpop.eup %3273 }
 0x225   :  { %v3276_v55 = vpop.eup %3275  ;;  %v704_v60 = vadd.f32 1.0, %v3274_v29  ;;  %3277 = vpow2.f32 %v3188_v25 }
 0x226   :  { %v723_v32 = vadd.f32 1.0, %v3276_v55 }
 0x227   :  { %3279 = vrcp.f32 %v704_v60  ;;  %v716_v41 = vand.u32 2147483648, %v704_v60  ;;  %v714_v61 = vand.u32 2147483647, %v704_v60  ;;  %vm710_vm6 = vweird.f32 %v704_v60 }
 0x228   :  { %3281 = vrcp.f32 %v723_v32  ;;  %v735_v49 = vand.u32 2147483648, %v723_v32  ;;  %v733_v3 = vand.u32 2147483647, %v723_v32  ;;  %vm729_vm7 = vweird.f32 %v723_v32 }
 0x229   :  { %v717_v6 = vor.u32 1.1754944e-38, %v716_v41  ;;  %vm715_vm10 = vcmp.eq.f32.partialorder %v714_v61, 8.507059e+37  ;;  %v4510_v41 = vld [vmem:[#allocation7 + $0x1a8] sm:$0xff]  ;;  %v4519_v61 = vld [vmem:[#allocation7 + $0x180] sm:$0xff] }
 0x22a   :  { %v736_v11 = vor.u32 1.1754944e-38, %v735_v49  ;;  %vm734_vm11 = vcmp.eq.f32.partialorder %v733_v3, 8.507059e+37  ;;  %v4513_v49 = vld [vmem:[#allocation7 + $0x1b0] sm:$0xff] }
 0x22b   :  { %v3278_v52 = vpop.eup %3277  ;;  %v4525_v3 = vld [vmem:[#allocation7 + $0x190] sm:$0xff] }
 0x22c   :  { %v743_v0 = vadd.f32 1.0, %v3278_v52 }
 0x22d   :  { %v3280_v57 = vpop.eup %3279 }
 0x22e   :  { %v3282_v50 = vpop.eup %3281  ;;  %v706_v62 = vmul.f32 %v3280_v57, %v704_v60  ;;  %3283 = vrcp.f32 %v743_v0  ;;  %vm711_vm4 = vweird.f32 %v3280_v57  ;;  %v755_v51 = vand.u32 2147483648, %v743_v0 }
 0x22f   :  { %v725_v47 = vmul.f32 %v3282_v50, %v723_v32  ;;  %3285 = vtanh.f32 %v699_v53  ;;  %vm730_vm5 = vweird.f32 %v3282_v50  ;;  %vm712_vm8 = vmor %vm710_vm6, %vm711_vm4  ;;  %vm749_vm13 = vweird.f32 %v743_v0  ;;  %v6220_v32 = vld [vmem:[#allocation66_spill] sm:$0xff]  ;;  %v4489_v53 = vld [vmem:[#allocation7 + $0x1f0] sm:$0xff] }
 0x230   :  { %v707_v1 = vsub.f32 1.0, %v706_v62  ;;  %vm731_vm9 = vmor %vm729_vm7, %vm730_vm5  ;;  %v753_v16 = vand.u32 2147483647, %v743_v0  ;;  %v756_v25 = vor.u32 1.1754944e-38, %v755_v51  ;;  %v1580_v63 = vsel %vm1579_vm0, %v6220_v32, %v4402_v46  ;;  %v4492_v46 = vld [vmem:[#allocation7 + $0x1f8] sm:$0xff]  ;;  %v4498_v62 = vld [vmem:[#allocation7 + $0x1c8] sm:$0xff] }
 0x231   :  { %v726_v56 = vsub.f32 1.0, %v725_v47  ;;  %v4501_v47 = vld [vmem:[#allocation7 + $0x1d0] sm:$0xff]  ;;  %v4579_v51 = vld [vmem:[#allocation7 + $0xe0] sm:$0xff]  ;;  %v4600_v32 = vld [vmem:[#allocation7 + $0xd8] sm:$0xff] }
 0x232   :  { %v708_v26 = vmul.f32 %v3280_v57, %v707_v1  ;;  %vm754_vm15 = vcmp.eq.f32.partialorder %v753_v16, 8.507059e+37  ;;  %v4504_v1 = vld [vmem:[#allocation7 + $0x1d8] sm:$0xff]  ;;  %v4582_v16 = vld [vmem:[#allocation7 + $0xe8] sm:$0xff]  ;;  %6224 = vst [vmem:[#allocation36_spill] sm:$0xff] %v4600_v32 }
 0x233   :  { %v727_v43 = vmul.f32 %v3282_v50, %v726_v56  ;;  %v4507_v56 = vld [vmem:[#allocation7 + $0x1a0] sm:$0xff] }
 0x234   :  { %v3284_v4 = vpop.eup %3283  ;;  %v709_v5 = vadd.f32 %v3280_v57, %v708_v26  ;;  %v4516_v26 = vld [vmem:[#allocation7 + $0x1b8] sm:$0xff] }
 0x235   :  { %v728_v8 = vadd.f32 %v3282_v50, %v727_v43  ;;  %v745_v9 = vmul.f32 %v3284_v4, %v743_v0  ;;  %v3286_v13 = vpop.eup %3285  ;;  %vm750_vm12 = vweird.f32 %v3284_v4  ;;  %v4483_v0 = vld [vmem:[#allocation7 + $0x1e0] sm:$0xff]  ;;  %v4522_v43 = vld [vmem:[#allocation7 + $0x188] sm:$0xff] }
 0x236   :  { %v713_v12 = vsel %vm712_vm8, %v3280_v57, %v709_v5  ;;  %vm751_vm14 = vmor %vm749_vm13, %vm750_vm12  ;;  %v4486_v57 = vld [vmem:[#allocation7 + $0x1e8] sm:$0xff]  ;;  %v4531_v5 = vld [vmem:[#allocation7 + $0x160] sm:$0xff] }
 0x237   :  { %v718_v37 = vsel %vm715_vm10, %v717_v6, %v713_v12  ;;  %v732_v38 = vsel %vm731_vm9, %v3282_v50, %v728_v8  ;;  %v746_v39 = vsub.f32 1.0, %v745_v9  ;;  %v4495_v50 = vld [vmem:[#allocation7 + $0x1c0] sm:$0xff]  ;;  %v4534_v6 = vld [vmem:[#allocation7 + $0x168] sm:$0xff]  ;;  %v4537_v8 = vld [vmem:[#allocation7 + $0x170] sm:$0xff] }
 0x238   :  { %v737_v40 = vsel %vm734_vm11, %v736_v11, %v732_v38  ;;  %v763_v44 = vmul.f32 %v3286_v13, %v718_v37  ;;  %v4540_v9 = vld [vmem:[#allocation7 + $0x178] sm:$0xff]  ;;  %v4546_v11 = vld [vmem:[#allocation7 + $0x148] sm:$0xff]  ;;  %v4549_v12 = vld [vmem:[#allocation7 + $0x150] sm:$0xff] }
 0x239   :  { %v762_v48 = vmul.f32 %v760_v10, %v737_v40  ;;  %v747_v54 = vmul.f32 %v3284_v4, %v746_v39  ;;  %v4543_v10 = vld [vmem:[#allocation7 + $0x140] sm:$0xff]  ;;  %v4552_v13 = vld [vmem:[#allocation7 + $0x158] sm:$0xff]  ;;  %v4558_v38 = vld [vmem:[#allocation7 + $0x128] sm:$0xff] }
 0x23a   :  { %v4555_v37 = vld [vmem:[#allocation7 + $0x120] sm:$0xff]  ;;  %v4561_v39 = vld [vmem:[#allocation7 + $0x130] sm:$0xff]  ;;  %v4564_v40 = vld [vmem:[#allocation7 + $0x138] sm:$0xff] }
 0x23b   :  { %v4474_v2 = vadd.f32 %v763_v44, %v762_v48  ;;  %v748_v7 = vadd.f32 %v3284_v4, %v747_v54  ;;  %v4567_v44 = vld [vmem:[#allocation7 + $0x100] sm:$0xff]  ;;  %v4570_v48 = vld [vmem:[#allocation7 + $0x108] sm:$0xff]  ;;  %v4573_v54 = vld [vmem:[#allocation7 + $0x110] sm:$0xff] }
 0x23d   :  { %3287 = vtanh.f32 %v4474_v2  ;;  %v752_v23 = vsel %vm751_vm14, %v3284_v4, %v748_v7  ;;  %v4528_v4 = vld [vmem:[#allocation7 + $0x198] sm:$0xff]  ;;  %vm1583_vm14 = vcmask 1045504  }
 0x23e   :  { %v757_v55 = vsel %vm754_vm15, %v756_v25, %v752_v23  ;;  %v4576_v7 = vld [vmem:[#allocation7 + $0x118] sm:$0xff]  ;;  %v4585_v23 = vld [vmem:[#allocation7 + $0xf0] sm:$0xff] }
 0x23f   :  { %v4588_v25 = vld [vmem:[#allocation7 + $0xf8] sm:$0xff] }
 0x243   :  { %v3288_v29 = vpop.eup %3287 }
 0x244   :  { %v766_v60 = vmul.f32 %v3288_v29, %v757_v55  ;;  %v4591_v29 = vld [vmem:[#allocation7 + $0xc0] sm:$0xff]  ;;  %v4594_v55 = vld [vmem:[#allocation7 + $0xc8] sm:$0xff] }
 0x245   :  { %6221 = vst [vmem:[#allocation33_spill] sm:$0xff] %v4591_v29 }
 0x246   :  { %v768_v58 = vrot.slane %v766_v60, 4  ;;  %v4481_v52 = vsel %vm1581_vm1, %v1580_v63, %v766_v60  ;;  %6222 = vst [vmem:[#allocation34_spill] sm:$0xff] %v4594_v55  ;;  %v4597_v60 = vld [vmem:[#allocation7 + $0xd0] sm:$0xff]  ;;  %v4603_v63 = vld [vmem:[#allocation7 + $0xa0] sm:$0xff] }
 0x247   :  { %6223 = vst [vmem:[#allocation35_spill] sm:$0xff] %v4597_v60 }
 0x248   :  { %786 = vmatmul.f32.vlgmr.msrb.gmra.mxu0 %v768_v58  ;;  %806 = vmatmul.f32.vlgmr.msrb.gmra.mxu1 %v768_v58  ;;  %6225 = vst [vmem:[#allocation31_spill] sm:$0xff] %v4603_v63 }
 0x249   :  { %826 = vmatmul.f32.vlgmr.msrb.gmra.mxu2 %v768_v58  ;;  %846 = vmatmul.f32.vlgmr.msrb.gmra.mxu3 %v768_v58  ;;  %v4606_v58 = vld [vmem:[#allocation7 + $0xa8] sm:$0xff] }
 0x24a   :  { %1085 = vmatpush.msrb.mxu0 %v4483_v0  ;;  %1105 = vmatpush.msrb.mxu1 %v4486_v57  ;;  %6226 = vst [vmem:[#allocation38_spill] sm:$0xff] %v4606_v58 }
 0x24b   :  { %1125 = vmatpush.msrb.mxu2 %v4489_v53  ;;  %1145 = vmatpush.msrb.mxu3 %v4492_v46 }
 0x24c   :  { %1086 = vmatpush.msrb.mxu0 %v4495_v50  ;;  %1106 = vmatpush.msrb.mxu1 %v4498_v62 }
 0x24d   :  { %1126 = vmatpush.msrb.mxu2 %v4501_v47  ;;  %1146 = vmatpush.msrb.mxu3 %v4504_v1 }
 0x24e   :  { %1087 = vmatpush.msrb.mxu0 %v4507_v56  ;;  %1107 = vmatpush.msrb.mxu1 %v4510_v41 }
 0x24f   :  { %1127 = vmatpush.msrb.mxu2 %v4513_v49  ;;  %1147 = vmatpush.msrb.mxu3 %v4516_v26 }
 0x250   :  { %1088 = vmatpush.msrb.mxu0 %v4519_v61  ;;  %1108 = vmatpush.msrb.mxu1 %v4522_v43 }
 0x251   :  { %1128 = vmatpush.msrb.mxu2 %v4525_v3  ;;  %1148 = vmatpush.msrb.mxu3 %v4528_v4 }
 0x252   :  { %1089 = vmatpush.msrb.mxu0 %v4531_v5  ;;  %1109 = vmatpush.msrb.mxu1 %v4534_v6 }
 0x253   :  { %1129 = vmatpush.msrb.mxu2 %v4537_v8  ;;  %1149 = vmatpush.msrb.mxu3 %v4540_v9 }
 0x254   :  { %1090 = vmatpush.msrb.mxu0 %v4543_v10  ;;  %1110 = vmatpush.msrb.mxu1 %v4546_v11 }
 0x255   :  { %1130 = vmatpush.msrb.mxu2 %v4549_v12  ;;  %1150 = vmatpush.msrb.mxu3 %v4552_v13 }
 0x256   :  { %1091 = vmatpush.msrb.mxu0 %v4555_v37  ;;  %1111 = vmatpush.msrb.mxu1 %v4558_v38 }
 0x257   :  { %1131 = vmatpush.msrb.mxu2 %v4561_v39  ;;  %1151 = vmatpush.msrb.mxu3 %v4564_v40 }
 0x258   :  { %1092 = vmatpush.msrb.mxu0 %v4567_v44  ;;  %1112 = vmatpush.msrb.mxu1 %v4570_v48 }
 0x259   :  { %1132 = vmatpush.msrb.mxu2 %v4573_v54  ;;  %1152 = vmatpush.msrb.mxu3 %v4576_v7 }
 0x25a   :  { %1093 = vmatpush.msrb.mxu0 %v4579_v51  ;;  %1113 = vmatpush.msrb.mxu1 %v4582_v16 }
 0x25b   :  { %1133 = vmatpush.msrb.mxu2 %v4585_v23  ;;  %1153 = vmatpush.msrb.mxu3 %v4588_v25 }
 0x25c   :  { %1094 = vmatpush.msrb.mxu0 %v4591_v29  ;;  %1114 = vmatpush.msrb.mxu1 %v4594_v55  ;;  %v4609_v29 = vld [vmem:[#allocation7 + $0xb0] sm:$0xff]  ;;  %v4612_v55 = vld [vmem:[#allocation7 + $0xb8] sm:$0xff] }
 0x25d   :  { %1134 = vmatpush.msrb.mxu2 %v4597_v60  ;;  %1154 = vmatpush.msrb.mxu3 %v4600_v32  ;;  %6227 = vst [vmem:[#allocation39_spill] sm:$0xff] %v4609_v29  ;;  %v4615_v60 = vld [vmem:[#allocation7 + $0x80] sm:$0xff]  ;;  %v4618_v32 = vld [vmem:[#allocation7 + $0x88] sm:$0xff] }
 0x25e   :  { %1095 = vmatpush.msrb.mxu0 %v4603_v63  ;;  %1115 = vmatpush.msrb.mxu1 %v4606_v58  ;;  %6228 = vst [vmem:[#allocation40_spill] sm:$0xff] %v4612_v55  ;;  %v4621_v63 = vld [vmem:[#allocation7 + $0x90] sm:$0xff]  ;;  %v4624_v58 = vld [vmem:[#allocation7 + $0x98] sm:$0xff] }
 0x25f   :  { %1135 = vmatpush.msrb.mxu2 %v4609_v29  ;;  %1155 = vmatpush.msrb.mxu3 %v4612_v55  ;;  %6229 = vst [vmem:[#allocation41_spill] sm:$0xff] %v4615_v60 }
 0x260   :  { %1096 = vmatpush.msrb.mxu0 %v4615_v60  ;;  %6230 = vst [vmem:[#allocation42_spill] sm:$0xff] %v4618_v32  ;;  %1116 = vmatpush.msrb.mxu1 %v4618_v32 }
 0x261   :  { %6231 = vst [vmem:[#allocation43_spill] sm:$0xff] %v4621_v63  ;;  %1136 = vmatpush.msrb.mxu2 %v4621_v63  ;;  %1156 = vmatpush.msrb.mxu3 %v4624_v58 }
 0x262   :  { %6232 = vst [vmem:[#allocation44_spill] sm:$0xff] %v4624_v58  ;;  %1097 = vmatpush.msrb.mxu0 %v6200_v14  ;;  %1117 = vmatpush.msrb.mxu1 %v6201_v15 }
 0x263   :  { %1137 = vmatpush.msrb.mxu2 %v6202_v17  ;;  %1157 = vmatpush.msrb.mxu3 %v6203_v18 }
 0x264   :  { %1098 = vmatpush.msrb.mxu0 %v6204_v19  ;;  %1118 = vmatpush.msrb.mxu1 %v6205_v20 }
 0x265   :  { %1138 = vmatpush.msrb.mxu2 %v6206_v22  ;;  %1158 = vmatpush.msrb.mxu3 %v6207_v24 }
 0x266   :  { %1099 = vmatpush.msrb.mxu0 %v6208_v27  ;;  %1119 = vmatpush.msrb.mxu1 %v6209_v28 }
 0x267   :  { %1139 = vmatpush.msrb.mxu2 %v6210_v30  ;;  %1159 = vmatpush.msrb.mxu3 %v6211_v31 }
 0x268   :  { %1100 = vmatpush.msrb.mxu0 %v6212_v33  ;;  %1120 = vmatpush.msrb.mxu1 %v6213_v34 }
 0x269   :  { %1140 = vmatpush.msrb.mxu2 %v6214_v35  ;;  %1160 = vmatpush.msrb.mxu3 %v6215_v36 }
 0x2c5   :  { %v787_v14 = vpop.f32.mrf.mxu0  ;;  %v807_v15 = vpop.f32.mrf.mxu1 }
 0x2c6   :  { %v854_v17 = vrot.slane %v787_v14, 2  ;;  %v855_v18 = vrot.slane %v807_v15, 2 }
 0x2c8   :  { %v862_v19 = vadd.f32 %v854_v17, %v6216_v42  ;;  %v863_v20 = vadd.f32 %v855_v18, %v6217_v45 }
 0x2ca   :  { %v3189_v22 = vmul.f32 -1.442695, %v862_v19  ;;  %v3190_v24 = vmul.f32 -1.442695, %v863_v20 }
 0x2cc   :  { %3289 = vpow2.f32 %v3189_v22  ;;  %v847_v27 = vpop.f32.mrf.mxu3  ;;  %v827_v14 = vpop.f32.mrf.mxu2 }
 0x2cd   :  { %3291 = vpow2.f32 %v3190_v24  ;;  %v857_v28 = vrot.slane %v847_v27, 2  ;;  %v856_v42 = vrot.slane %v827_v14, 2 }
 0x2cf   :  { %v865_v30 = vadd.f32 %v857_v28, %v6218_v21  ;;  %v864_v18 = vadd.f32 %v856_v42, %v6219_v59 }
 0x2d1   :  { %v3191_v31 = vmul.f32 -1.442695, %v865_v30 }
 0x2d2   :  { %v3290_v33 = vpop.eup %3289 }
 0x2d3   :  { %v3292_v34 = vpop.eup %3291  ;;  %v869_v35 = vadd.f32 1.0, %v3290_v33  ;;  %3293 = vpow2.f32 %v3191_v31 }
 0x2d4   :  { %v888_v36 = vadd.f32 1.0, %v3292_v34 }
 0x2d5   :  { %3295 = vrcp.f32 %v869_v35  ;;  %v881_v27 = vand.u32 2147483648, %v869_v35  ;;  %v879_v31 = vand.u32 2147483647, %v869_v35  ;;  %vm875_vm4 = vweird.f32 %v869_v35 }
 0x2d6   :  { %3297 = vrcp.f32 %v888_v36  ;;  %v900_v28 = vand.u32 2147483648, %v888_v36  ;;  %v898_v34 = vand.u32 2147483647, %v888_v36  ;;  %vm894_vm5 = vweird.f32 %v888_v36 }
 0x2d7   :  { %v882_v59 = vor.u32 1.1754944e-38, %v881_v27  ;;  %vm880_vm8 = vcmp.eq.f32.partialorder %v879_v31, 8.507059e+37 }
 0x2d8   :  { %vm899_vm9 = vcmp.eq.f32.partialorder %v898_v34, 8.507059e+37  ;;  %v6238_v34 = vld [vmem:[#allocation31_spill] sm:$0xff] }
 0x2d9   :  { %v3294_v15 = vpop.eup %3293 }
 0x2da   :  { %v908_v45 = vadd.f32 1.0, %v3294_v15 }
 0x2db   :  { %v3296_v17 = vpop.eup %3295 }
 0x2dc   :  { %v3298_v19 = vpop.eup %3297  ;;  %v871_v20 = vmul.f32 %v3296_v17, %v869_v35  ;;  %3299 = vrcp.f32 %v908_v45  ;;  %vm876_vm2 = vweird.f32 %v3296_v17  ;;  %vm914_vm11 = vweird.f32 %v908_v45 }
 0x2dd   :  { %v890_v22 = vmul.f32 %v3298_v19, %v888_v36  ;;  %3301 = vtanh.f32 %v864_v18  ;;  %vm895_vm3 = vweird.f32 %v3298_v19  ;;  %vm877_vm6 = vmor %vm875_vm4, %vm876_vm2 }
 0x2de   :  { %v872_v21 = vsub.f32 1.0, %v871_v20  ;;  %v925_v20 = vrot.slane %v4474_v2, 6  ;;  %vm896_vm7 = vmor %vm894_vm5, %vm895_vm3  ;;  %v920_v2 = vand.u32 2147483648, %v908_v45 }
 0x2df   :  { %v891_v24 = vsub.f32 1.0, %v890_v22  ;;  %v901_v22 = vor.u32 1.1754944e-38, %v900_v28  ;;  %v918_v28 = vand.u32 2147483647, %v908_v45 }
 0x2e0   :  { %v873_v30 = vmul.f32 %v3296_v17, %v872_v21  ;;  %v921_v31 = vor.u32 1.1754944e-38, %v920_v2  ;;  %v4721_v2 = vld [vmem:[#allocation7 + $0x50] sm:$0xff] }
 0x2e1   :  { %v892_v33 = vmul.f32 %v3298_v19, %v891_v24  ;;  %vm919_vm13 = vcmp.eq.f32.partialorder %v918_v28, 8.507059e+37  ;;  %6251 = vst [vmem:[#allocation53_spill] sm:$0xff] %v4721_v2  ;;  %v4724_v28 = vld [vmem:[#allocation7 + $0x58] sm:$0xff] }
 0x2e2   :  { %v3300_v14 = vpop.eup %3299  ;;  %v874_v15 = vadd.f32 %v3296_v17, %v873_v30  ;;  %6252 = vst [vmem:[#allocation54_spill] sm:$0xff] %v4724_v28 }
 0x2e3   :  { %v893_v42 = vadd.f32 %v3298_v19, %v892_v33  ;;  %v910_v58 = vmul.f32 %v3300_v14, %v908_v45  ;;  %v3302_v21 = vpop.eup %3301  ;;  %vm915_vm10 = vweird.f32 %v3300_v14  ;;  %v6237_v45 = vld [vmem:[#allocation36_spill] sm:$0xff] }
 0x2e4   :  { %v878_v18 = vsel %vm877_vm6, %v3296_v17, %v874_v15  ;;  %vm916_vm12 = vmor %vm914_vm11, %vm915_vm10  ;;  %v6240_v15 = vld [vmem:[#allocation40_spill] sm:$0xff] }
 0x2e5   :  { %v883_v63 = vsel %vm880_vm8, %v882_v59, %v878_v18  ;;  %v897_v32 = vsel %vm896_vm7, %v3298_v19, %v893_v42  ;;  %v911_v24 = vsub.f32 1.0, %v910_v58  ;;  %v6236_v58 = vld [vmem:[#allocation35_spill] sm:$0xff]  ;;  %v6241_v59 = vld [vmem:[#allocation41_spill] sm:$0xff]  ;;  %v6242_v42 = vld [vmem:[#allocation42_spill] sm:$0xff] }
 0x2e6   :  { %v902_v60 = vsel %vm899_vm9, %v901_v22, %v897_v32  ;;  %v928_v55 = vmul.f32 %v3302_v21, %v883_v63  ;;  %v6244_v22 = vld [vmem:[#allocation44_spill] sm:$0xff]  ;;  %v4703_v18 = vld [vmem:[#allocation7 + $0x60] sm:$0xff]  ;;  %v4706_v21 = vld [vmem:[#allocation7 + $0x68] sm:$0xff] }
 0x2e7   :  { %v927_v30 = vmul.f32 %v925_v20, %v902_v60  ;;  %v912_v35 = vmul.f32 %v3300_v14, %v911_v24  ;;  %v6235_v60 = vld [vmem:[#allocation34_spill] sm:$0xff]  ;;  %v6243_v20 = vld [vmem:[#allocation43_spill] sm:$0xff]  ;;  %6245 = vst [vmem:[#allocation47_spill] sm:$0xff] %v4703_v18 }
 0x2e8   :  { %6246 = vst [vmem:[#allocation48_spill] sm:$0xff] %v4706_v21  ;;  %v4709_v24 = vld [vmem:[#allocation7 + $0x70] sm:$0xff] }
 0x2e9   :  { %v4648_v36 = vadd.f32 %v928_v55, %v927_v30  ;;  %v913_v27 = vadd.f32 %v3300_v14, %v912_v35  ;;  %6247 = vst [vmem:[#allocation49_spill] sm:$0xff] %v4709_v24  ;;  %v4712_v30 = vld [vmem:[#allocation7 + $0x78] sm:$0xff]  ;;  %v4715_v35 = vld [vmem:[#allocation7 + $0x40] sm:$0xff] }
 0x2ea   :  { %6248 = vst [vmem:[#allocation50_spill] sm:$0xff] %v4712_v30 }
 0x2eb   :  { %3303 = vtanh.f32 %v4648_v36  ;;  %v917_v17 = vsel %vm916_vm12, %v3300_v14, %v913_v27  ;;  %v6239_v14 = vld [vmem:[#allocation38_spill] sm:$0xff]  ;;  %6249 = vst [vmem:[#allocation51_spill] sm:$0xff] %v4715_v35 }
 0x2ec   :  { %v922_v33 = vsel %vm919_vm13, %v921_v31, %v917_v17  ;;  %v4718_v27 = vld [vmem:[#allocation7 + $0x48] sm:$0xff]  ;;  %v4727_v17 = vld [vmem:[#allocation7 + $0x20] sm:$0xff] }
 0x2ed   :  { %6250 = vst [vmem:[#allocation52_spill] sm:$0xff] %v4718_v27  ;;  %v4730_v31 = vld [vmem:[#allocation7 + $0x28] sm:$0xff] }
 0x2ee   :  { %6253 = vst [vmem:[#allocation55_spill] sm:$0xff] %v4727_v17 }
 0x2ef   :  { %6254 = vst [vmem:[#allocation56_spill] sm:$0xff] %v4730_v31 }
 0x2f1   :  { %v3304_v19 = vpop.eup %3303 }
 0x2f2   :  { %v931_v32 = vmul.f32 %v3304_v19, %v922_v33  ;;  %v4733_v19 = vld [vmem:[#allocation7 + $0x30] sm:$0xff]  ;;  %v4736_v33 = vld [vmem:[#allocation7 + $0x38] sm:$0xff] }
 0x2f3   :  { %6255 = vst [vmem:[#allocation58_spill] sm:$0xff] %v4733_v19 }
 0x2f4   :  { %v933_v63 = vrot.slane %v931_v32, 6  ;;  %v4653_v55 = vsel %vm1583_vm14, %v4481_v52, %v931_v32  ;;  %v6234_v52 = vld [vmem:[#allocation33_spill] sm:$0xff]  ;;  %6256 = vst [vmem:[#allocation59_spill] sm:$0xff] %v4736_v33 }
 0x2f5   :  { %6233 = vst [vmem:[#allocation45_spill] sm:$0xff] %v4653_v55  ;;  %v4739_v32 = vld [vmem:[#allocation7] sm:$0xff]  ;;  %v4745_v55 = vld [vmem:[#allocation7 + $0x10] sm:$0xff] }
 0x2f6   :  { %951 = vmatmul.f32.vlgmr.msra.gmra.mxu0 %v933_v63  ;;  %971 = vmatmul.f32.vlgmr.msra.gmra.mxu1 %v933_v63  ;;  %6257 = vst [vmem:[#allocation60_spill] sm:$0xff] %v4739_v32 }
 0x2f7   :  { %991 = vmatmul.f32.vlgmr.msra.gmra.mxu2 %v933_v63  ;;  %1011 = vmatmul.f32.vlgmr.msra.gmra.mxu3 %v933_v63  ;;  %v4742_v63 = vld [vmem:[#allocation7 + $0x8] sm:$0xff]  ;;  %6259 = vst [vmem:[#allocation62_spill] sm:$0xff] %v4745_v55 }
 0x2f8   :  { %1250 = vmatpush.msra.mxu0 %v4483_v0  ;;  %1270 = vmatpush.msra.mxu1 %v4486_v57  ;;  %6258 = vst [vmem:[#allocation61_spill] sm:$0xff] %v4742_v63 }
 0x2f9   :  { %1290 = vmatpush.msra.mxu2 %v4489_v53  ;;  %1310 = vmatpush.msra.mxu3 %v4492_v46 }
 0x2fa   :  { %1251 = vmatpush.msra.mxu0 %v4495_v50  ;;  %1271 = vmatpush.msra.mxu1 %v4498_v62 }
 0x2fb   :  { %1291 = vmatpush.msra.mxu2 %v4501_v47  ;;  %1311 = vmatpush.msra.mxu3 %v4504_v1 }
 0x2fc   :  { %1252 = vmatpush.msra.mxu0 %v4507_v56  ;;  %1272 = vmatpush.msra.mxu1 %v4510_v41 }
 0x2fd   :  { %1292 = vmatpush.msra.mxu2 %v4513_v49  ;;  %1312 = vmatpush.msra.mxu3 %v4516_v26 }
 0x2fe   :  { %1253 = vmatpush.msra.mxu0 %v4519_v61  ;;  %1273 = vmatpush.msra.mxu1 %v4522_v43 }
 0x2ff   :  { %1293 = vmatpush.msra.mxu2 %v4525_v3  ;;  %1313 = vmatpush.msra.mxu3 %v4528_v4 }
 0x300   :  { %1254 = vmatpush.msra.mxu0 %v4531_v5  ;;  %1274 = vmatpush.msra.mxu1 %v4534_v6 }
 0x301   :  { %1294 = vmatpush.msra.mxu2 %v4537_v8  ;;  %1314 = vmatpush.msra.mxu3 %v4540_v9 }
 0x302   :  { %1255 = vmatpush.msra.mxu0 %v4543_v10  ;;  %1275 = vmatpush.msra.mxu1 %v4546_v11 }
 0x303   :  { %1295 = vmatpush.msra.mxu2 %v4549_v12  ;;  %1315 = vmatpush.msra.mxu3 %v4552_v13 }
 0x304   :  { %1256 = vmatpush.msra.mxu0 %v4555_v37  ;;  %1276 = vmatpush.msra.mxu1 %v4558_v38 }
 0x305   :  { %1296 = vmatpush.msra.mxu2 %v4561_v39  ;;  %1316 = vmatpush.msra.mxu3 %v4564_v40 }
 0x306   :  { %1257 = vmatpush.msra.mxu0 %v4567_v44  ;;  %1277 = vmatpush.msra.mxu1 %v4570_v48 }
 0x307   :  { %1297 = vmatpush.msra.mxu2 %v4573_v54  ;;  %1317 = vmatpush.msra.mxu3 %v4576_v7 }
 0x308   :  { %1258 = vmatpush.msra.mxu0 %v4579_v51  ;;  %1278 = vmatpush.msra.mxu1 %v4582_v16 }
 0x309   :  { %1298 = vmatpush.msra.mxu2 %v4585_v23  ;;  %1318 = vmatpush.msra.mxu3 %v4588_v25 }
 0x30a   :  { %1259 = vmatpush.msra.mxu0 %v6234_v52  ;;  %1279 = vmatpush.msra.mxu1 %v6235_v60 }
 0x30b   :  { %1299 = vmatpush.msra.mxu2 %v6236_v58  ;;  %1319 = vmatpush.msra.mxu3 %v6237_v45 }
 0x30c   :  { %1260 = vmatpush.msra.mxu0 %v6238_v34  ;;  %1280 = vmatpush.msra.mxu1 %v6239_v14 }
 0x30d   :  { %1300 = vmatpush.msra.mxu2 %v4609_v29  ;;  %1320 = vmatpush.msra.mxu3 %v6240_v15 }
 0x30e   :  { %1261 = vmatpush.msra.mxu0 %v6241_v59  ;;  %1281 = vmatpush.msra.mxu1 %v6242_v42 }
 0x30f   :  { %1301 = vmatpush.msra.mxu2 %v6243_v20  ;;  %1321 = vmatpush.msra.mxu3 %v6244_v22 }
 0x310   :  { %1262 = vmatpush.msra.mxu0 %v4703_v18  ;;  %1282 = vmatpush.msra.mxu1 %v4706_v21  ;;  %v6267_v21 = vld [vmem:[#allocation29_spill] sm:$0xff] }
 0x311   :  { %1302 = vmatpush.msra.mxu2 %v4709_v24  ;;  %1322 = vmatpush.msra.mxu3 %v4712_v30 }
 0x312   :  { %1263 = vmatpush.msra.mxu0 %v4715_v35  ;;  %1283 = vmatpush.msra.mxu1 %v4718_v27  ;;  %v6265_v35 = vld [vmem:[#allocation27_spill] sm:$0xff] }
 0x313   :  { %1303 = vmatpush.msra.mxu2 %v4721_v2  ;;  %1323 = vmatpush.msra.mxu3 %v4724_v28  ;;  %v6263_v28 = vld [vmem:[#allocation28_spill] sm:$0xff] }
 0x314   :  { %1264 = vmatpush.msra.mxu0 %v4727_v17  ;;  %1284 = vmatpush.msra.mxu1 %v4730_v31  ;;  %v4748_v31 = vld [vmem:[#allocation7 + $0x18] sm:$0xff] }
 0x315   :  { %1304 = vmatpush.msra.mxu2 %v4733_v19  ;;  %1324 = vmatpush.msra.mxu3 %v4736_v33  ;;  %6260 = vst [vmem:[#allocation63_spill] sm:$0xff] %v4748_v31  ;;  %v6261_v19 = vld [vmem:[#allocation37_spill] sm:$0xff] }
 0x316   :  { %1265 = vmatpush.msra.mxu0 %v4739_v32  ;;  %1285 = vmatpush.msra.mxu1 %v4742_v63  ;;  %v6262_v17 = vperm.slane %v6261_v19, 0 }
 0x317   :  { %1305 = vmatpush.msra.mxu2 %v4745_v55  ;;  %1325 = vmatpush.msra.mxu3 %v4748_v31  ;;  %v6266_v55 = vperm.slane %v6261_v19, 3 }
 0x318   :  { %v4754_v33 = vadd.f32 %v6263_v28, %v6262_v17 }
 0x319   :  { %v4761_v18 = vadd.f32 %v6267_v21, %v6266_v55 }
 0x31a   :  { %6264 = vst [vmem:[#allocation64_spill] sm:$0xff] %v4754_v33 }
 0x31b   :  { %6268 = vst [vmem:[#allocation46_spill] sm:$0xff] %v4761_v18 }
 0x373   :  { %v952_v2 = vpop.f32.mrf.mxu0  ;;  %v972_v27 = vpop.f32.mrf.mxu1 }
 0x374   :  { %v1015_v32 = vadd.f32 %v952_v2, %v4754_v33  ;;  %v1016_v30 = vadd.f32 %v972_v27, %v6265_v35 }
 0x376   :  { %v3192_v63 = vmul.f32 -1.442695, %v1015_v32  ;;  %v3193_v24 = vmul.f32 -1.442695, %v1016_v30  ;;  %v6269_v32 = vperm.slane %v6261_v19, 2 }
 0x378   :  { %3305 = vpow2.f32 %v3192_v63  ;;  %v6270_v63 = vld [vmem:[#allocation32_spill] sm:$0xff] }
 0x379   :  { %3307 = vpow2.f32 %v3193_v24  ;;  %v4767_v35 = vadd.f32 %v6270_v63, %v6269_v32 }
 0x37a   :  { %v1012_v31 = vpop.f32.mrf.mxu3  ;;  %v992_v27 = vpop.f32.mrf.mxu2 }
 0x37b   :  { %v1018_v22 = vadd.f32 %v1012_v31, %v4761_v18  ;;  %6271 = vst [vmem:[#allocation30_spill] sm:$0xff] %v4767_v35  ;;  %v1017_v24 = vadd.f32 %v992_v27, %v4767_v35 }
 0x37d   :  { %v3194_v28 = vmul.f32 -1.442695, %v1018_v22 }
 0x37e   :  { %v3306_v17 = vpop.eup %3305 }
 0x37f   :  { %v3308_v20 = vpop.eup %3307  ;;  %v1022_v42 = vadd.f32 1.0, %v3306_v17  ;;  %3309 = vpow2.f32 %v3194_v28 }
 0x380   :  { %v1041_v2 = vadd.f32 1.0, %v3308_v20 }
 0x381   :  { %3311 = vrcp.f32 %v1022_v42  ;;  %v1034_v20 = vand.u32 2147483648, %v1022_v42  ;;  %v1032_v15 = vand.u32 2147483647, %v1022_v42  ;;  %vm1028_vm3 = vweird.f32 %v1022_v42 }
 0x382   :  { %3313 = vrcp.f32 %v1041_v2  ;;  %v1053_v33 = vand.u32 2147483648, %v1041_v2  ;;  %v1051_v32 = vand.u32 2147483647, %v1041_v2  ;;  %vm1047_vm4 = vweird.f32 %v1041_v2 }
 0x383   :  { %v1035_v27 = vor.u32 1.1754944e-38, %v1034_v20  ;;  %vm1033_vm7 = vcmp.eq.f32.partialorder %v1032_v15, 8.507059e+37 }
 0x384   :  { %vm1052_vm8 = vcmp.eq.f32.partialorder %v1051_v32, 8.507059e+37 }
 0x385   :  { %v3310_v30 = vpop.eup %3309 }
 0x386   :  { %v1061_v55 = vadd.f32 1.0, %v3310_v30 }
 0x387   :  { %v3312_v21 = vpop.eup %3311 }
 0x388   :  { %v3314_v31 = vpop.eup %3313  ;;  %v1024_v22 = vmul.f32 %v3312_v21, %v1022_v42  ;;  %3315 = vrcp.f32 %v1061_v55  ;;  %vm1029_vm15 = vweird.f32 %v3312_v21  ;;  %vm1067_vm10 = vweird.f32 %v1061_v55 }
 0x389   :  { %v1043_v18 = vmul.f32 %v3314_v31, %v1041_v2  ;;  %3317 = vtanh.f32 %v1017_v24  ;;  %vm1048_vm2 = vweird.f32 %v3314_v31  ;;  %vm1030_vm5 = vmor %vm1028_vm3, %vm1029_vm15  ;;  %v1078_v24 = vrot.slane %v4648_v36, 6 }
 0x38a   :  { %v1025_v17 = vsub.f32 1.0, %v1024_v22  ;;  %vm1049_vm6 = vmor %vm1047_vm4, %vm1048_vm2  ;;  %v1054_v22 = vor.u32 1.1754944e-38, %v1053_v33  ;;  %v1073_v33 = vand.u32 2147483648, %v1061_v55  ;;  %v1071_v15 = vand.u32 2147483647, %v1061_v55 }
 0x38b   :  { %v1044_v28 = vsub.f32 1.0, %v1043_v18 }
 0x38c   :  { %v1026_v59 = vmul.f32 %v3312_v21, %v1025_v17  ;;  %vm1072_vm12 = vcmp.eq.f32.partialorder %v1071_v15, 8.507059e+37 }
 0x38d   :  { %v1045_v19 = vmul.f32 %v3314_v31, %v1044_v28 }
 0x38e   :  { %v3316_v63 = vpop.eup %3315  ;;  %v1027_v30 = vadd.f32 %v3312_v21, %v1026_v59 }
 0x38f   :  { %v1046_v35 = vadd.f32 %v3314_v31, %v1045_v19  ;;  %v1063_v29 = vmul.f32 %v3316_v63, %v1061_v55  ;;  %v3318_v17 = vpop.eup %3317  ;;  %vm1068_vm9 = vweird.f32 %v3316_v63 }
 0x390   :  { %v1031_v18 = vsel %vm1030_vm5, %v3312_v21, %v1027_v30  ;;  %vm1069_vm11 = vmor %vm1067_vm10, %vm1068_vm9  ;;  %v1074_v21 = vor.u32 1.1754944e-38, %v1073_v33 }
 0x391   :  { %v1036_v14 = vsel %vm1033_vm7, %v1035_v27, %v1031_v18  ;;  %v1050_v34 = vsel %vm1049_vm6, %v3314_v31, %v1046_v35  ;;  %v1064_v28 = vsub.f32 1.0, %v1063_v29 }
 0x392   :  { %v1055_v45 = vsel %vm1052_vm8, %v1054_v22, %v1050_v34  ;;  %v1081_v58 = vmul.f32 %v3318_v17, %v1036_v14 }
 0x393   :  { %v1080_v59 = vmul.f32 %v1078_v24, %v1055_v45  ;;  %v1065_v42 = vmul.f32 %v3316_v63, %v1064_v28  ;;  %v6301_v24 = vld [vmem:[#allocation30_spill] sm:$0xff] }
 0x395   :  { %v4771_v2 = vadd.f32 %v1081_v58, %v1080_v59  ;;  %v1066_v20 = vadd.f32 %v3316_v63, %v1065_v42  ;;  %v6300_v58 = vld [vmem:[#allocation46_spill] sm:$0xff] }
 0x397   :  { %3319 = vtanh.f32 %v4771_v2  ;;  %v1070_v36 = vsel %vm1069_vm11, %v3316_v63, %v1066_v20 }
 0x398   :  { %v1075_v31 = vsel %vm1072_vm12, %v1074_v21, %v1070_v36 }
 0x39d   :  { %v3320_v35 = vpop.eup %3319 }
 0x39e   :  { %v4774_v29 = vmul.f32 %v3320_v35, %v1075_v31 }
 0x3a0   :  { %1101 = vmatmul.f32.vlgmr.msrb.gmra.mxu0 %v4774_v29  ;;  %1121 = vmatmul.f32.vlgmr.msrb.gmra.mxu1 %v4774_v29 }
 0x3a1   :  { %1141 = vmatmul.f32.vlgmr.msrb.gmra.mxu2 %v4774_v29  ;;  %1161 = vmatmul.f32.vlgmr.msrb.gmra.mxu3 %v4774_v29 }
 0x3a2   :  { %1415 = vmatpush.msrb.mxu0 %v4483_v0  ;;  %1435 = vmatpush.msrb.mxu1 %v4486_v57  ;;  %v6272_v0 = vld [vmem:[#allocation35_spill] sm:$0xff]  ;;  %v6273_v57 = vld [vmem:[#allocation36_spill] sm:$0xff] }
 0x3a3   :  { %1455 = vmatpush.msrb.mxu2 %v4489_v53  ;;  %1475 = vmatpush.msrb.mxu3 %v4492_v46  ;;  %v6274_v53 = vld [vmem:[#allocation31_spill] sm:$0xff]  ;;  %v6275_v46 = vld [vmem:[#allocation38_spill] sm:$0xff] }
 0x3a4   :  { %1416 = vmatpush.msrb.mxu0 %v4495_v50  ;;  %1436 = vmatpush.msrb.mxu1 %v4498_v62  ;;  %v6276_v50 = vld [vmem:[#allocation39_spill] sm:$0xff]  ;;  %v6277_v62 = vld [vmem:[#allocation40_spill] sm:$0xff] }
 0x3a5   :  { %1456 = vmatpush.msrb.mxu2 %v4501_v47  ;;  %1476 = vmatpush.msrb.mxu3 %v4504_v1  ;;  %v6278_v47 = vld [vmem:[#allocation41_spill] sm:$0xff]  ;;  %v6279_v1 = vld [vmem:[#allocation42_spill] sm:$0xff] }
 0x3a6   :  { %1417 = vmatpush.msrb.mxu0 %v4507_v56  ;;  %1437 = vmatpush.msrb.mxu1 %v4510_v41  ;;  %v6280_v56 = vld [vmem:[#allocation43_spill] sm:$0xff]  ;;  %v6281_v41 = vld [vmem:[#allocation44_spill] sm:$0xff] }
 0x3a7   :  { %1457 = vmatpush.msrb.mxu2 %v4513_v49  ;;  %1477 = vmatpush.msrb.mxu3 %v4516_v26  ;;  %v6282_v49 = vld [vmem:[#allocation47_spill] sm:$0xff]  ;;  %v6283_v26 = vld [vmem:[#allocation48_spill] sm:$0xff] }
 0x3a8   :  { %1418 = vmatpush.msrb.mxu0 %v4519_v61  ;;  %1438 = vmatpush.msrb.mxu1 %v4522_v43  ;;  %v6284_v61 = vld [vmem:[#allocation49_spill] sm:$0xff]  ;;  %v6285_v43 = vld [vmem:[#allocation50_spill] sm:$0xff] }
 0x3a9   :  { %1458 = vmatpush.msrb.mxu2 %v4525_v3  ;;  %1478 = vmatpush.msrb.mxu3 %v4528_v4  ;;  %v6286_v3 = vld [vmem:[#allocation51_spill] sm:$0xff]  ;;  %v6287_v4 = vld [vmem:[#allocation52_spill] sm:$0xff] }
 0x3aa   :  { %1419 = vmatpush.msrb.mxu0 %v4531_v5  ;;  %1439 = vmatpush.msrb.mxu1 %v4534_v6  ;;  %v6288_v5 = vld [vmem:[#allocation53_spill] sm:$0xff]  ;;  %v6289_v6 = vld [vmem:[#allocation54_spill] sm:$0xff] }
 0x3ab   :  { %1459 = vmatpush.msrb.mxu2 %v4537_v8  ;;  %1479 = vmatpush.msrb.mxu3 %v4540_v9  ;;  %v6290_v8 = vld [vmem:[#allocation55_spill] sm:$0xff]  ;;  %v6291_v9 = vld [vmem:[#allocation56_spill] sm:$0xff] }
 0x3ac   :  { %1420 = vmatpush.msrb.mxu0 %v4543_v10  ;;  %1440 = vmatpush.msrb.mxu1 %v4546_v11  ;;  %v6292_v10 = vld [vmem:[#allocation58_spill] sm:$0xff]  ;;  %v6293_v11 = vld [vmem:[#allocation59_spill] sm:$0xff] }
 0x3ad   :  { %1460 = vmatpush.msrb.mxu2 %v4549_v12  ;;  %1480 = vmatpush.msrb.mxu3 %v4552_v13  ;;  %v6294_v12 = vld [vmem:[#allocation60_spill] sm:$0xff]  ;;  %v6295_v13 = vld [vmem:[#allocation61_spill] sm:$0xff] }
 0x3ae   :  { %1421 = vmatpush.msrb.mxu0 %v4555_v37  ;;  %1441 = vmatpush.msrb.mxu1 %v4558_v38  ;;  %v6296_v37 = vld [vmem:[#allocation62_spill] sm:$0xff]  ;;  %v6297_v38 = vld [vmem:[#allocation63_spill] sm:$0xff] }
 0x3af   :  { %1461 = vmatpush.msrb.mxu2 %v4561_v39  ;;  %1481 = vmatpush.msrb.mxu3 %v4564_v40 }
 0x3b0   :  { %1422 = vmatpush.msrb.mxu0 %v4567_v44  ;;  %1442 = vmatpush.msrb.mxu1 %v4570_v48 }
 0x3b1   :  { %1462 = vmatpush.msrb.mxu2 %v4573_v54  ;;  %1482 = vmatpush.msrb.mxu3 %v4576_v7  ;;  %v6298_v54 = vld [vmem:[#allocation64_spill] sm:$0xff] }
 0x3b2   :  { %1423 = vmatpush.msrb.mxu0 %v4579_v51  ;;  %1443 = vmatpush.msrb.mxu1 %v4582_v16  ;;  %v6299_v51 = vld [vmem:[#allocation27_spill] sm:$0xff] }
 0x3b3   :  { %1463 = vmatpush.msrb.mxu2 %v4585_v23  ;;  %1483 = vmatpush.msrb.mxu3 %v4588_v25 }
 0x3b4   :  { %1424 = vmatpush.msrb.mxu0 %v6234_v52  ;;  %1444 = vmatpush.msrb.mxu1 %v6235_v60 }
 0x3b5   :  { %1464 = vmatpush.msrb.mxu2 %v6272_v0  ;;  %1484 = vmatpush.msrb.mxu3 %v6273_v57 }
 0x3b6   :  { %1425 = vmatpush.msrb.mxu0 %v6274_v53  ;;  %1445 = vmatpush.msrb.mxu1 %v6275_v46 }
 0x3b7   :  { %1465 = vmatpush.msrb.mxu2 %v6276_v50  ;;  %1485 = vmatpush.msrb.mxu3 %v6277_v62 }
 0x3b8   :  { %1426 = vmatpush.msrb.mxu0 %v6278_v47  ;;  %1446 = vmatpush.msrb.mxu1 %v6279_v1  ;;  %v1240_v47 = vrot.slane %v4771_v2, 6 }
 0x3b9   :  { %1466 = vmatpush.msrb.mxu2 %v6280_v56  ;;  %1486 = vmatpush.msrb.mxu3 %v6281_v41 }
 0x3ba   :  { %1427 = vmatpush.msrb.mxu0 %v6282_v49  ;;  %1447 = vmatpush.msrb.mxu1 %v6283_v26 }
 0x3bb   :  { %1467 = vmatpush.msrb.mxu2 %v6284_v61  ;;  %1487 = vmatpush.msrb.mxu3 %v6285_v43 }
 0x3bc   :  { %1428 = vmatpush.msrb.mxu0 %v6286_v3  ;;  %1448 = vmatpush.msrb.mxu1 %v6287_v4 }
 0x3bd   :  { %1468 = vmatpush.msrb.mxu2 %v6288_v5  ;;  %1488 = vmatpush.msrb.mxu3 %v6289_v6 }
 0x3be   :  { %1429 = vmatpush.msrb.mxu0 %v6290_v8  ;;  %1449 = vmatpush.msrb.mxu1 %v6291_v9 }
 0x3bf   :  { %1469 = vmatpush.msrb.mxu2 %v6292_v10  ;;  %1489 = vmatpush.msrb.mxu3 %v6293_v11 }
 0x3c0   :  { %1430 = vmatpush.msrb.mxu0 %v6294_v12  ;;  %1450 = vmatpush.msrb.mxu1 %v6295_v13 }
 0x3c1   :  { %1470 = vmatpush.msrb.mxu2 %v6296_v37  ;;  %1490 = vmatpush.msrb.mxu3 %v6297_v38 }
 0x41d   :  { %v1102_v39 = vpop.f32.mrf.mxu0  ;;  %v1122_v40 = vpop.f32.mrf.mxu1 }
 0x41e   :  { %v1169_v44 = vrot.slane %v1102_v39, 6  ;;  %v1170_v48 = vrot.slane %v1122_v40, 6  ;;  %v1712_v39 = vld [vmem:[#allocation10 + $0x1e0] sm:$0xff]  ;;  %v1713_v40 = vld [vmem:[#allocation10 + $0x1e8] sm:$0xff] }
 0x420   :  { %v1177_v7 = vadd.f32 %v1169_v44, %v6298_v54  ;;  %v1178_v16 = vadd.f32 %v1170_v48, %v6299_v51  ;;  %v1714_v44 = vld [vmem:[#allocation10 + $0x1f0] sm:$0xff]  ;;  %v1715_v48 = vld [vmem:[#allocation10 + $0x1f8] sm:$0xff] }
 0x422   :  { %v3195_v23 = vmul.f32 -1.442695, %v1177_v7  ;;  %v3196_v25 = vmul.f32 -1.442695, %v1178_v16  ;;  %v1708_v7 = vld [vmem:[#allocation10 + $0x1c0] sm:$0xff]  ;;  %v1709_v16 = vld [vmem:[#allocation10 + $0x1c8] sm:$0xff] }
 0x424   :  { %3321 = vpow2.f32 %v3195_v23  ;;  %v1162_v52 = vpop.f32.mrf.mxu3  ;;  %v1142_v63 = vpop.f32.mrf.mxu2  ;;  %v1710_v23 = vld [vmem:[#allocation10 + $0x1d0] sm:$0xff] }
 0x425   :  { %3323 = vpow2.f32 %v3196_v25  ;;  %v1172_v60 = vrot.slane %v1162_v52, 6  ;;  %v1171_v30 = vrot.slane %v1142_v63, 6  ;;  %v1711_v25 = vld [vmem:[#allocation10 + $0x1d8] sm:$0xff]  ;;  %v1704_v52 = vld [vmem:[#allocation10 + $0x1a0] sm:$0xff] }
 0x427   :  { %v1180_v45 = vadd.f32 %v1172_v60, %v6300_v58  ;;  %v1179_v17 = vadd.f32 %v1171_v30, %v6301_v24  ;;  %v1705_v60 = vld [vmem:[#allocation10 + $0x1a8] sm:$0xff]  ;;  %v1703_v30 = vld [vmem:[#allocation10 + $0x198] sm:$0xff] }
 0x429   :  { %v3197_v34 = vmul.f32 -1.442695, %v1180_v45  ;;  %v1706_v45 = vld [vmem:[#allocation10 + $0x1b0] sm:$0xff] }
 0x42a   :  { %v3322_v14 = vpop.eup %3321 }
 0x42b   :  { %v3324_v55 = vpop.eup %3323  ;;  %v1184_v19 = vadd.f32 1.0, %v3322_v14  ;;  %3325 = vpow2.f32 %v3197_v34  ;;  %v1707_v34 = vld [vmem:[#allocation10 + $0x1b8] sm:$0xff]  ;;  %v1700_v14 = vld [vmem:[#allocation10 + $0x180] sm:$0xff] }
 0x42c   :  { %v1203_v32 = vadd.f32 1.0, %v3324_v55  ;;  %v1701_v55 = vld [vmem:[#allocation10 + $0x188] sm:$0xff] }
 0x42d   :  { %3327 = vrcp.f32 %v1184_v19  ;;  %v1196_v15 = vand.u32 2147483648, %v1184_v19  ;;  %v1194_v35 = vand.u32 2147483647, %v1184_v19  ;;  %vm1190_vm2 = vweird.f32 %v1184_v19 }
 0x42e   :  { %3329 = vrcp.f32 %v1203_v32  ;;  %v1215_v36 = vand.u32 2147483648, %v1203_v32  ;;  %v1213_v0 = vand.u32 2147483647, %v1203_v32  ;;  %vm1209_vm3 = vweird.f32 %v1203_v32 }
 0x42f   :  { %v1197_v46 = vor.u32 1.1754944e-38, %v1196_v15  ;;  %vm1195_vm6 = vcmp.eq.f32.partialorder %v1194_v35, 8.507059e+37  ;;  %v1693_v15 = vld [vmem:[#allocation10 + $0x148] sm:$0xff] }
 0x430   :  { %v1216_v1 = vor.u32 1.1754944e-38, %v1215_v36  ;;  %vm1214_vm7 = vcmp.eq.f32.partialorder %v1213_v0, 8.507059e+37  ;;  %v1694_v36 = vld [vmem:[#allocation10 + $0x150] sm:$0xff]  ;;  %v1688_v0 = vld [vmem:[#allocation10 + $0x120] sm:$0xff] }
 0x431   :  { %v3326_v27 = vpop.eup %3325 }
 0x432   :  { %v1223_v22 = vadd.f32 1.0, %v3326_v27 }
 0x433   :  { %v3328_v18 = vpop.eup %3327 }
 0x434   :  { %v3330_v28 = vpop.eup %3329  ;;  %v1186_v59 = vmul.f32 %v3328_v18, %v1184_v19  ;;  %3331 = vrcp.f32 %v1223_v22  ;;  %vm1191_vm13 = vweird.f32 %v3328_v18  ;;  %v1235_v2 = vand.u32 2147483648, %v1223_v22  ;;  %v1702_v19 = vld [vmem:[#allocation10 + $0x190] sm:$0xff] }
 0x435   :  { %v1205_v42 = vmul.f32 %v3330_v28, %v1203_v32  ;;  %3333 = vtanh.f32 %v1179_v17  ;;  %vm1210_vm15 = vweird.f32 %v3330_v28  ;;  %vm1192_vm4 = vmor %vm1190_vm2, %vm1191_vm13  ;;  %vm1229_vm9 = vweird.f32 %v1223_v22  ;;  %v1697_v17 = vld [vmem:[#allocation10 + $0x168] sm:$0xff] }
 0x436   :  { %v1187_v20 = vsub.f32 1.0, %v1186_v59  ;;  %vm1211_vm5 = vmor %vm1209_vm3, %vm1210_vm15  ;;  %v1233_v9 = vand.u32 2147483647, %v1223_v22  ;;  %v1236_v11 = vor.u32 1.1754944e-38, %v1235_v2  ;;  %v1699_v59 = vld [vmem:[#allocation10 + $0x178] sm:$0xff] }
 0x437   :  { %v1206_v33 = vsub.f32 1.0, %v1205_v42  ;;  %v1679_v2 = vld [vmem:[#allocation10 + $0xd8] sm:$0xff] }
 0x438   :  { %v1188_v21 = vmul.f32 %v3328_v18, %v1187_v20  ;;  %vm1234_vm11 = vcmp.eq.f32.partialorder %v1233_v9, 8.507059e+37  ;;  %v1672_v9 = vld [vmem:[#allocation10 + $0xa0] sm:$0xff] }
 0x439   :  { %v1207_v31 = vmul.f32 %v3330_v28, %v1206_v33  ;;  %v1692_v33 = vld [vmem:[#allocation10 + $0x140] sm:$0xff] }
 0x43a   :  { %v3332_v57 = vpop.eup %3331  ;;  %v1189_v53 = vadd.f32 %v3328_v18, %v1188_v21  ;;  %v1695_v21 = vld [vmem:[#allocation10 + $0x158] sm:$0xff] }
 0x43b   :  { %v1208_v50 = vadd.f32 %v3330_v28, %v1207_v31  ;;  %v1225_v62 = vmul.f32 %v3332_v57, %v1223_v22  ;;  %v3334_v41 = vpop.eup %3333  ;;  %vm1230_vm8 = vweird.f32 %v3332_v57 }
 0x43c   :  { %v1193_v56 = vsel %vm1192_vm4, %v3328_v18, %v1189_v53  ;;  %vm1231_vm10 = vmor %vm1229_vm9, %vm1230_vm8  ;;  %v1696_v18 = vld [vmem:[#allocation10 + $0x160] sm:$0xff]  ;;  %v1690_v53 = vld [vmem:[#allocation10 + $0x130] sm:$0xff] }
 0x43d   :  { %v1198_v49 = vsel %vm1195_vm6, %v1197_v46, %v1193_v56  ;;  %v1212_v26 = vsel %vm1211_vm5, %v3330_v28, %v1208_v50  ;;  %v1226_v61 = vsub.f32 1.0, %v1225_v62  ;;  %v1698_v28 = vld [vmem:[#allocation10 + $0x170] sm:$0xff]  ;;  %v1691_v46 = vld [vmem:[#allocation10 + $0x138] sm:$0xff]  ;;  %v1684_v50 = vld [vmem:[#allocation10 + $0x100] sm:$0xff] }
 0x43e   :  { %v1217_v43 = vsel %vm1214_vm7, %v1216_v1, %v1212_v26  ;;  %v1243_v3 = vmul.f32 %v3334_v41, %v1198_v49  ;;  %v1686_v1 = vld [vmem:[#allocation10 + $0x110] sm:$0xff]  ;;  %v1687_v56 = vld [vmem:[#allocation10 + $0x118] sm:$0xff]  ;;  %v1680_v49 = vld [vmem:[#allocation10 + $0xe0] sm:$0xff] }
 0x43f   :  { %v1242_v4 = vmul.f32 %v1240_v47, %v1217_v43  ;;  %v1227_v5 = vmul.f32 %v3332_v57, %v1226_v61  ;;  %v1685_v47 = vld [vmem:[#allocation10 + $0x108] sm:$0xff]  ;;  %v1682_v61 = vld [vmem:[#allocation10 + $0xf0] sm:$0xff]  ;;  %v1683_v43 = vld [vmem:[#allocation10 + $0xf8] sm:$0xff] }
 0x440   :  { %v1681_v26 = vld [vmem:[#allocation10 + $0xe8] sm:$0xff] }
 0x441   :  { %v4849_v6 = vadd.f32 %v1243_v3, %v1242_v4  ;;  %v1228_v8 = vadd.f32 %v3332_v57, %v1227_v5  ;;  %v1676_v3 = vld [vmem:[#allocation10 + $0xc0] sm:$0xff]  ;;  %v1677_v4 = vld [vmem:[#allocation10 + $0xc8] sm:$0xff] }
 0x443   :  { %3335 = vtanh.f32 %v4849_v6  ;;  %v1232_v10 = vsel %vm1231_vm10, %v3332_v57, %v1228_v8  ;;  %v1689_v57 = vld [vmem:[#allocation10 + $0x128] sm:$0xff]  ;;  %v1678_v8 = vld [vmem:[#allocation10 + $0xd0] sm:$0xff] }
 0x444   :  { %v1237_v13 = vsel %vm1234_vm11, %v1236_v11, %v1232_v10  ;;  %v1673_v10 = vld [vmem:[#allocation10 + $0xa8] sm:$0xff] }
 0x449   :  { %v3336_v12 = vpop.eup %3335 }
 0x44a   :  { %v4852_v37 = vmul.f32 %v3336_v12, %v1237_v13  ;;  %v1674_v12 = vld [vmem:[#allocation10 + $0xb0] sm:$0xff]  ;;  %v1675_v13 = vld [vmem:[#allocation10 + $0xb8] sm:$0xff] }
 0x44c   :  { %v1248_v38 = vrot.slane %v4852_v37, 2 }
 0x44e   :  { %1266 = vmatmul.f32.vlgmr.msra.gmra.mxu0 %v1248_v38  ;;  %1286 = vmatmul.f32.vlgmr.msra.gmra.mxu1 %v1248_v38 }
 0x44f   :  { %1306 = vmatmul.f32.vlgmr.msra.gmra.mxu2 %v1248_v38  ;;  %1326 = vmatmul.f32.vlgmr.msra.gmra.mxu3 %v1248_v38 }
 0x450   :  { %1726 = vmatpush.msra.mxu0 %v1712_v39  ;;  %1749 = vmatpush.msra.mxu1 %v1713_v40  ;;  %v1668_v39 = vld [vmem:[#allocation10 + $0x80] sm:$0xff]  ;;  %v1669_v40 = vld [vmem:[#allocation10 + $0x88] sm:$0xff] }
 0x451   :  { %1772 = vmatpush.msra.mxu2 %v1714_v44  ;;  %1795 = vmatpush.msra.mxu3 %v1715_v48 }
 0x452   :  { %1727 = vmatpush.msra.mxu0 %v1708_v7  ;;  %1750 = vmatpush.msra.mxu1 %v1709_v16  ;;  %v1670_v7 = vld [vmem:[#allocation10 + $0x90] sm:$0xff]  ;;  %v1671_v16 = vld [vmem:[#allocation10 + $0x98] sm:$0xff] }
 0x453   :  { %1773 = vmatpush.msra.mxu2 %v1710_v23  ;;  %1796 = vmatpush.msra.mxu3 %v1711_v25 }
 0x454   :  { %1728 = vmatpush.msra.mxu0 %v1704_v52  ;;  %1751 = vmatpush.msra.mxu1 %v1705_v60  ;;  %v1664_v60 = vld [vmem:[#allocation10 + $0x60] sm:$0xff] }
 0x455   :  { %1774 = vmatpush.msra.mxu2 %v1706_v45  ;;  %1797 = vmatpush.msra.mxu3 %v1707_v34  ;;  %v1665_v45 = vld [vmem:[#allocation10 + $0x68] sm:$0xff]  ;;  %v1666_v34 = vld [vmem:[#allocation10 + $0x70] sm:$0xff] }
 0x456   :  { %1729 = vmatpush.msra.mxu0 %v1700_v14  ;;  %1752 = vmatpush.msra.mxu1 %v1701_v55  ;;  %v1667_v14 = vld [vmem:[#allocation10 + $0x78] sm:$0xff]  ;;  %v1660_v55 = vld [vmem:[#allocation10 + $0x40] sm:$0xff] }
 0x457   :  { %1775 = vmatpush.msra.mxu2 %v1702_v19  ;;  %1798 = vmatpush.msra.mxu3 %v1703_v30  ;;  %v1661_v19 = vld [vmem:[#allocation10 + $0x48] sm:$0xff]  ;;  %v1663_v30 = vld [vmem:[#allocation10 + $0x58] sm:$0xff] }
 0x458   :  { %1730 = vmatpush.msra.mxu0 %v1696_v18  ;;  %1753 = vmatpush.msra.mxu1 %v1697_v17  ;;  %v1657_v18 = vld [vmem:[#allocation10 + $0x28] sm:$0xff]  ;;  %v1658_v17 = vld [vmem:[#allocation10 + $0x30] sm:$0xff] }
 0x459   :  { %1776 = vmatpush.msra.mxu2 %v1698_v28  ;;  %1799 = vmatpush.msra.mxu3 %v1699_v59  ;;  %v1659_v28 = vld [vmem:[#allocation10 + $0x38] sm:$0xff] }
 0x45a   :  { %1731 = vmatpush.msra.mxu0 %v1692_v33  ;;  %1754 = vmatpush.msra.mxu1 %v1693_v15  ;;  %v1653_v33 = vld [vmem:[#allocation10 + $0x8] sm:$0xff] }
 0x45b   :  { %1777 = vmatpush.msra.mxu2 %v1694_v36  ;;  %1800 = vmatpush.msra.mxu3 %v1695_v21  ;;  %v1654_v21 = vld [vmem:[#allocation10 + $0x10] sm:$0xff] }
 0x45c   :  { %1732 = vmatpush.msra.mxu0 %v1688_v0  ;;  %1755 = vmatpush.msra.mxu1 %v1689_v57 }
 0x45d   :  { %1778 = vmatpush.msra.mxu2 %v1690_v53  ;;  %1801 = vmatpush.msra.mxu3 %v1691_v46 }
 0x45e   :  { %1733 = vmatpush.msra.mxu0 %v1684_v50  ;;  %1756 = vmatpush.msra.mxu1 %v1685_v47 }
 0x45f   :  { %1779 = vmatpush.msra.mxu2 %v1686_v1  ;;  %1802 = vmatpush.msra.mxu3 %v1687_v56 }
 0x460   :  { %1734 = vmatpush.msra.mxu0 %v1680_v49  ;;  %1757 = vmatpush.msra.mxu1 %v1681_v26 }
 0x461   :  { %1780 = vmatpush.msra.mxu2 %v1682_v61  ;;  %1803 = vmatpush.msra.mxu3 %v1683_v43  ;;  %v1405_v43 = vrot.slane %v4849_v6, 6 }
 0x462   :  { %1735 = vmatpush.msra.mxu0 %v1676_v3  ;;  %1758 = vmatpush.msra.mxu1 %v1677_v4 }
 0x463   :  { %1781 = vmatpush.msra.mxu2 %v1678_v8  ;;  %1804 = vmatpush.msra.mxu3 %v1679_v2 }
 0x464   :  { %1736 = vmatpush.msra.mxu0 %v1672_v9  ;;  %1759 = vmatpush.msra.mxu1 %v1673_v10 }
 0x465   :  { %1782 = vmatpush.msra.mxu2 %v1674_v12  ;;  %1805 = vmatpush.msra.mxu3 %v1675_v13 }
 0x466   :  { %1737 = vmatpush.msra.mxu0 %v1668_v39  ;;  %1760 = vmatpush.msra.mxu1 %v1669_v40 }
 0x467   :  { %1783 = vmatpush.msra.mxu2 %v1670_v7  ;;  %1806 = vmatpush.msra.mxu3 %v1671_v16 }
 0x468   :  { %1738 = vmatpush.msra.mxu0 %v1664_v60  ;;  %1761 = vmatpush.msra.mxu1 %v1665_v45  ;;  %v6302_v45 = vld [vmem:[#allocation45_spill] sm:$0xff] }
 0x469   :  { %1784 = vmatpush.msra.mxu2 %v1666_v34  ;;  %1807 = vmatpush.msra.mxu3 %v1667_v14  ;;  %v4894_v34 = vld [vmem:[#allocation11 + $0x1e0] sm:$0xff]  ;;  %v4896_v14 = vld [vmem:[#allocation11 + $0x1e8] sm:$0xff] }
 0x46a   :  { %1739 = vmatpush.msra.mxu0 %v1660_v55  ;;  %1762 = vmatpush.msra.mxu1 %v1661_v19  ;;  %6303 = vst [vmem:[#allocation57_spill] sm:$0xff] %v4894_v34  ;;  %v4906_v55 = vld [vmem:[#allocation11 + $0x1c0] sm:$0xff]  ;;  %v4908_v19 = vld [vmem:[#allocation11 + $0x1c8] sm:$0xff] }
 0x46b   :  { %1808 = vmatpush.msra.mxu3 %v1663_v30  ;;  %6304 = vst [vmem:[#allocation65_spill] sm:$0xff] %v4896_v14 }
 0x46c   :  { %1763 = vmatpush.msra.mxu1 %v1657_v18 }
 0x46d   :  { %1809 = vmatpush.msra.mxu3 %v1659_v28  ;;  %v4923_v28 = vld [vmem:[#allocation11 + $0x1a0] sm:$0xff] }
 0x46e   :  { %1764 = vmatpush.msra.mxu1 %v1653_v33 }
 0x4cb   :  { %v1267_v32 = vpop.f32.mrf.mxu0  ;;  %v1287_v63 = vpop.f32.mrf.mxu1 }
 0x4cc   :  { %v1334_v27 = vrot.slane %v1267_v32, 4  ;;  %v1335_v22 = vrot.slane %v1287_v63, 4  ;;  %v1662_v63 = vld [vmem:[#allocation10 + $0x50] sm:$0xff] }
 0x4cd   :  { %1785 = vmatpush.msra.mxu2 %v1662_v63 }
 0x4ce   :  { %v1342_v42 = vadd.f32 %v1334_v27, %v6298_v54  ;;  %v1343_v20 = vadd.f32 %v1335_v22, %v6299_v51  ;;  %v1656_v27 = vld [vmem:[#allocation10 + $0x20] sm:$0xff] }
 0x4cf   :  { %1740 = vmatpush.msra.mxu0 %v1656_v27  ;;  %1786 = vmatpush.msra.mxu2 %v1658_v17  ;;  %v4915_v27 = vld [vmem:[%s5838_s6] sm:$0xf] }
 0x4d0   :  { %v3198_v35 = vmul.f32 -1.442695, %v1342_v42  ;;  %v3199_v31 = vmul.f32 -1.442695, %v1343_v20  ;;  %v1652_v20 = vld [vmem:[#allocation10] sm:$0xff]  ;;  %6305 = vst [vmem:[#allocation66_spill] sm:$0xff] %v4915_v27 }
 0x4d1   :  { %1741 = vmatpush.msra.mxu0 %v1652_v20  ;;  %1787 = vmatpush.msra.mxu2 %v1654_v21  ;;  %v4931_v20 = vld [vmem:[#allocation11 + $0x1b8] sm:$0xff]  ;;  %v4939_v21 = vld [vmem:[#allocation11 + $0x188] sm:$0xff] }
 0x4d2   :  { %3337 = vpow2.f32 %v3198_v35  ;;  %v1327_v62 = vpop.f32.mrf.mxu3  ;;  %v1307_v25 = vpop.f32.mrf.mxu2  ;;  %v1655_v35 = vld [vmem:[#allocation10 + $0x18] sm:$0xff] }
 0x4d3   :  { %3339 = vpow2.f32 %v3199_v31  ;;  %v1337_v41 = vrot.slane %v1327_v62, 4  ;;  %v1336_v52 = vrot.slane %v1307_v25, 4  ;;  %1810 = vmatpush.msra.mxu3 %v1655_v35  ;;  %v1585_v25 = vsel %vm1579_vm0, %v4774_v29, %v4852_v37  ;;  %v4898_v29 = vld [vmem:[#allocation11 + $0x1f0] sm:$0xff]  ;;  %v4902_v37 = vld [vmem:[#allocation11 + $0x1f8] sm:$0xff] }
 0x4d4   :  { %v4941_v35 = vld [vmem:[#allocation11 + $0x190] sm:$0xff] }
 0x4d5   :  { %v1345_v5 = vadd.f32 %v1337_v41, %v6300_v58  ;;  %v1344_v42 = vadd.f32 %v1336_v52, %v6301_v24 }
 0x4d7   :  { %v3200_v11 = vmul.f32 -1.442695, %v1345_v5 }
 0x4d8   :  { %v3338_v38 = vpop.eup %3337 }
 0x4d9   :  { %v3340_v44 = vpop.eup %3339  ;;  %v4858_v48 = vadd.f32 1.0, %v3338_v38  ;;  %3341 = vpow2.f32 %v3200_v11 }
 0x4da   :  { %v4860_v23 = vadd.f32 1.0, %v3340_v44 }
 0x4db   :  { %3343 = vrcp.f32 %v4858_v48  ;;  %v1361_v53 = vand.u32 2147483648, %v4858_v48  ;;  %v1359_v62 = vand.u32 2147483647, %v4858_v48  ;;  %vm1355_vm15 = vweird.f32 %v4858_v48 }
 0x4dc   :  { %3345 = vrcp.f32 %v4860_v23  ;;  %v1380_v46 = vand.u32 2147483648, %v4860_v23  ;;  %v1378_v1 = vand.u32 2147483647, %v4860_v23  ;;  %vm1374_vm2 = vweird.f32 %v4860_v23 }
 0x4dd   :  { %v1362_v49 = vor.u32 1.1754944e-38, %v1361_v53  ;;  %vm1360_vm5 = vcmp.eq.f32.partialorder %v1359_v62, 8.507059e+37  ;;  %v4952_v53 = vld [vmem:[#allocation11 + $0x168] sm:$0xff] }
 0x4de   :  { %v1381_v3 = vor.u32 1.1754944e-38, %v1380_v46  ;;  %vm1379_vm6 = vcmp.eq.f32.partialorder %v1378_v1, 8.507059e+37  ;;  %v4956_v46 = vld [vmem:[#allocation11 + $0x170] sm:$0xff]  ;;  %v4964_v1 = vld [vmem:[#allocation11 + $0x148] sm:$0xff] }
 0x4df   :  { %v3342_v32 = vpop.eup %3341 }
 0x4e0   :  { %v4864_v22 = vadd.f32 1.0, %v3342_v32  ;;  %v4910_v32 = vld [vmem:[#allocation11 + $0x1d0] sm:$0xff] }
 0x4e1   :  { %v3344_v59 = vpop.eup %3343 }
 0x4e2   :  { %v3346_v15 = vpop.eup %3345  ;;  %v1351_v36 = vmul.f32 %v3344_v59, %v4858_v48  ;;  %3347 = vrcp.f32 %v4864_v22  ;;  %vm1356_vm12 = vweird.f32 %v3344_v59  ;;  %v1400_v6 = vand.u32 2147483648, %v4864_v22 }
 0x4e3   :  { %v1370_v31 = vmul.f32 %v3346_v15, %v4860_v23  ;;  %3349 = vtanh.f32 %v1344_v42  ;;  %vm1375_vm13 = vweird.f32 %v3346_v15  ;;  %vm1357_vm3 = vmor %vm1355_vm15, %vm1356_vm12  ;;  %vm1394_vm8 = vweird.f32 %v4864_v22  ;;  %v4927_v42 = vld [vmem:[#allocation11 + $0x1b0] sm:$0xff] }
 0x4e4   :  { %v1352_v0 = vsub.f32 1.0, %v1351_v36  ;;  %vm1376_vm4 = vmor %vm1374_vm2, %vm1375_vm13  ;;  %v1398_v40 = vand.u32 2147483647, %v4864_v22  ;;  %v1401_v48 = vor.u32 1.1754944e-38, %v1400_v6  ;;  %v4937_v36 = vld [vmem:[#allocation11 + $0x180] sm:$0xff]  ;;  %v5006_v6 = vld [vmem:[#allocation11 + $0xf0] sm:$0xff] }
 0x4e5   :  { %v1371_v57 = vsub.f32 1.0, %v1370_v31  ;;  %v5973_v31 = vperm.slane %v4915_v27, 0  ;;  %6307 = vst [vmem:[#allocation34_spill] sm:$0xff] %v5006_v6 }
 0x4e6   :  { %v1353_v50 = vmul.f32 %v3344_v59, %v1352_v0  ;;  %vm1399_vm10 = vcmp.eq.f32.partialorder %v1398_v40, 8.507059e+37  ;;  %v4946_v0 = vld [vmem:[#allocation11 + $0x198] sm:$0xff] }
 0x4e7   :  { %v1372_v47 = vmul.f32 %v3346_v15, %v1371_v57  ;;  %v4950_v57 = vld [vmem:[#allocation11 + $0x160] sm:$0xff]  ;;  %v5008_v40 = vld [vmem:[#allocation11 + $0xf8] sm:$0xff] }
 0x4e8   :  { %v3348_v56 = vpop.eup %3347  ;;  %v1354_v41 = vadd.f32 %v3344_v59, %v1353_v50  ;;  %v4958_v50 = vld [vmem:[#allocation11 + $0x178] sm:$0xff]  ;;  %6308 = vst [vmem:[#allocation37_spill] sm:$0xff] %v5008_v40 }
 0x4e9   :  { %v1373_v26 = vadd.f32 %v3346_v15, %v1372_v47  ;;  %v1390_v61 = vmul.f32 %v3348_v56, %v4864_v22  ;;  %v3350_v5 = vpop.eup %3349  ;;  %vm1395_vm7 = vweird.f32 %v3348_v56  ;;  %v4919_v22 = vld [vmem:[#allocation11 + $0x1d8] sm:$0xff]  ;;  %v4962_v47 = vld [vmem:[#allocation11 + $0x140] sm:$0xff] }
 0x4ea   :  { %v1358_v4 = vsel %vm1357_vm3, %v3344_v59, %v1354_v41  ;;  %vm1396_vm9 = vmor %vm1394_vm8, %vm1395_vm7  ;;  %v4925_v59 = vld [vmem:[#allocation11 + $0x1a8] sm:$0xff] }
 0x4eb   :  { %v1363_v8 = vsel %vm1360_vm5, %v1362_v49, %v1358_v4  ;;  %v1377_v2 = vsel %vm1376_vm4, %v3346_v15, %v1373_v26  ;;  %v1391_v9 = vsub.f32 1.0, %v1390_v61  ;;  %v4970_v26 = vld [vmem:[#allocation11 + $0x158] sm:$0xff]  ;;  %v4972_v61 = vld [vmem:[#allocation11 + $0x120] sm:$0xff]  ;;  %v4982_v4 = vld [vmem:[#allocation11 + $0x130] sm:$0xff] }
 0x4ec   :  { %v1382_v10 = vsel %vm1379_vm6, %v1381_v3, %v1377_v2  ;;  %v1408_v11 = vmul.f32 %v3350_v5, %v1363_v8  ;;  %v4984_v5 = vld [vmem:[#allocation11 + $0x138] sm:$0xff]  ;;  %v4986_v8 = vld [vmem:[#allocation11 + $0x100] sm:$0xff] }
 0x4ed   :  { %v1407_v12 = vmul.f32 %v1405_v43, %v1382_v10  ;;  %v1392_v13 = vmul.f32 %v3348_v56, %v1391_v9  ;;  %v4974_v43 = vld [vmem:[#allocation11 + $0x128] sm:$0xff]  ;;  %v4993_v10 = vld [vmem:[#allocation11 + $0x110] sm:$0xff] }
 0x4ee   :  { %v4991_v9 = vld [vmem:[#allocation11 + $0x108] sm:$0xff] }
 0x4ef   :  { %v4878_v38 = vadd.f32 %v1408_v11, %v1407_v12  ;;  %v1393_v39 = vadd.f32 %v3348_v56, %v1392_v13  ;;  %v4995_v11 = vld [vmem:[#allocation11 + $0x118] sm:$0xff]  ;;  %v5000_v13 = vld [vmem:[#allocation11 + $0xe0] sm:$0xff] }
 0x4f1   :  { %3351 = vtanh.f32 %v4878_v38  ;;  %v1397_v44 = vsel %vm1396_vm9, %v3348_v56, %v1393_v39  ;;  %v4966_v56 = vld [vmem:[#allocation11 + $0x150] sm:$0xff]  ;;  %v5002_v39 = vld [vmem:[#allocation11 + $0xe8] sm:$0xff] }
 0x4f2   :  { %v1402_v16 = vsel %vm1399_vm10, %v1401_v48, %v1397_v44 }
 0x4f7   :  { %v3352_v7 = vpop.eup %3351 }
 0x4f8   :  { %v1411_v23 = vmul.f32 %v3352_v7, %v1402_v16  ;;  %v5012_v7 = vld [vmem:[#allocation11 + $0xc0] sm:$0xff]  ;;  %v5014_v16 = vld [vmem:[#allocation11 + $0xc8] sm:$0xff] }
 0x4f9   :  { %6309 = vst [vmem:[#allocation28_spill] sm:$0xff] %v5012_v7 }
 0x4fa   :  { %v1413_v52 = vrot.slane %v1411_v23, 4  ;;  %v4888_v60 = vsel %vm1581_vm1, %v1585_v25, %v1411_v23  ;;  %6310 = vst [vmem:[#allocation29_spill] sm:$0xff] %v5014_v16 }
 0x4fc   :  { %1431 = vmatmul.f32.vlgmr.msrb.gmra.mxu0 %v1413_v52  ;;  %1451 = vmatmul.f32.vlgmr.msrb.gmra.mxu1 %v1413_v52 }
 0x4fd   :  { %1471 = vmatmul.f32.vlgmr.msrb.gmra.mxu2 %v1413_v52  ;;  %1491 = vmatmul.f32.vlgmr.msrb.gmra.mxu3 %v1413_v52  ;;  %v5972_v52 = vperm.slane %v4915_v27, 3 }
 0x4fe   :  { %1860 = vmatpush.msrb.mxu0 %v4894_v34  ;;  %1880 = vmatpush.msrb.mxu1 %v4896_v14 }
 0x4ff   :  { %1900 = vmatpush.msrb.mxu2 %v4898_v29  ;;  %1920 = vmatpush.msrb.mxu3 %v4902_v37 }
 0x500   :  { %1861 = vmatpush.msrb.mxu0 %v4906_v55  ;;  %1881 = vmatpush.msrb.mxu1 %v4908_v19 }
 0x501   :  { %1901 = vmatpush.msrb.mxu2 %v4910_v32  ;;  %1921 = vmatpush.msrb.mxu3 %v4919_v22 }
 0x502   :  { %1862 = vmatpush.msrb.mxu0 %v4923_v28  ;;  %1882 = vmatpush.msrb.mxu1 %v4925_v59 }
 0x503   :  { %1902 = vmatpush.msrb.mxu2 %v4927_v42  ;;  %1922 = vmatpush.msrb.mxu3 %v4931_v20 }
 0x504   :  { %1742 = vmatmul.f32.vlgmr.msra.gmra.mxu0 %v6302_v45  ;;  %1765 = vmatmul.f32.vlgmr.msra.gmra.mxu1 %v6302_v45 }
 0x505   :  { %1788 = vmatmul.f32.vlgmr.msra.gmra.mxu2 %v6302_v45  ;;  %1811 = vmatmul.f32.vlgmr.msra.gmra.mxu3 %v6302_v45  ;;  %v5021_v45 = vld [vmem:[#allocation11 + $0xd0] sm:$0xff] }
 0x506   :  { %1863 = vmatpush.msrb.mxu0 %v4937_v36  ;;  %1883 = vmatpush.msrb.mxu1 %v4939_v21  ;;  %6311 = vst [vmem:[#allocation32_spill] sm:$0xff] %v5021_v45 }
 0x507   :  { %1903 = vmatpush.msrb.mxu2 %v4941_v35  ;;  %1923 = vmatpush.msrb.mxu3 %v4946_v0 }
 0x508   :  { %1864 = vmatpush.msrb.mxu0 %v4950_v57  ;;  %1884 = vmatpush.msrb.mxu1 %v4952_v53 }
 0x509   :  { %1904 = vmatpush.msrb.mxu2 %v4956_v46  ;;  %1924 = vmatpush.msrb.mxu3 %v4958_v50 }
 0x50a   :  { %1865 = vmatpush.msrb.mxu0 %v4962_v47  ;;  %1885 = vmatpush.msrb.mxu1 %v4964_v1 }
 0x50b   :  { %1905 = vmatpush.msrb.mxu2 %v4966_v56  ;;  %1925 = vmatpush.msrb.mxu3 %v4970_v26 }
 0x50c   :  { %1866 = vmatpush.msrb.mxu0 %v4972_v61  ;;  %1886 = vmatpush.msrb.mxu1 %v4974_v43 }
 0x50d   :  { %1906 = vmatpush.msrb.mxu2 %v4982_v4  ;;  %1926 = vmatpush.msrb.mxu3 %v4984_v5 }
 0x50e   :  { %1867 = vmatpush.msrb.mxu0 %v4986_v8  ;;  %1887 = vmatpush.msrb.mxu1 %v4991_v9 }
 0x50f   :  { %1907 = vmatpush.msrb.mxu2 %v4993_v10  ;;  %1927 = vmatpush.msrb.mxu3 %v4995_v11 }
 0x510   :  { %1868 = vmatpush.msrb.mxu0 %v5000_v13  ;;  %1888 = vmatpush.msrb.mxu1 %v5002_v39 }
 0x511   :  { %1908 = vmatpush.msrb.mxu2 %v5006_v6  ;;  %1928 = vmatpush.msrb.mxu3 %v5008_v40  ;;  %v6336_v40 = vperm.slane %v4915_v27, 2 }
 0x512   :  { %1869 = vmatpush.msrb.mxu0 %v5012_v7  ;;  %1889 = vmatpush.msrb.mxu1 %v5014_v16  ;;  %v5115_v16 = vld [vmem:[#allocation11] sm:$0xff]  ;;  %v5117_v7 = vld [vmem:[#allocation11 + $0x8] sm:$0xff] }
 0x513   :  { %1909 = vmatpush.msrb.mxu2 %v5021_v45  ;;  %6334 = vst [vmem:[#allocation60_spill] sm:$0xff] %v5115_v16 }
 0x514   :  { %6335 = vst [vmem:[#allocation61_spill] sm:$0xff] %v5117_v7 }
 0x579   :  { %v1432_v63 = vpop.f32.mrf.mxu0  ;;  %v1452_v30 = vpop.f32.mrf.mxu1 }
 0x57a   :  { %v1499_v18 = vrot.slane %v1432_v63, 2  ;;  %v1500_v17 = vrot.slane %v1452_v30, 2  ;;  %v5023_v63 = vld [vmem:[#allocation11 + $0xd8] sm:$0xff] }
 0x57b   :  { %6312 = vst [vmem:[#allocation35_spill] sm:$0xff] %v5023_v63  ;;  %1929 = vmatpush.msrb.mxu3 %v5023_v63  ;;  %v5109_v63 = vld [vmem:[#allocation11 + $0x38] sm:$0xff] }
 0x57c   :  { %v1507_v33 = vadd.f32 %v1499_v18, %v6298_v54  ;;  %v1508_v15 = vadd.f32 %v1500_v17, %v6299_v51  ;;  %v5029_v17 = vld [vmem:[#allocation11 + $0xa0] sm:$0xff]  ;;  %6333 = vst [vmem:[#allocation59_spill] sm:$0xff] %v5109_v63 }
 0x57d   :  { %6313 = vst [vmem:[#allocation36_spill] sm:$0xff] %v5029_v17  ;;  %1870 = vmatpush.msrb.mxu0 %v5029_v17  ;;  %v5107_v17 = vld [vmem:[#allocation11 + $0x30] sm:$0xff] }
 0x57e   :  { %v3201_v54 = vmul.f32 -1.442695, %v1507_v33  ;;  %v3202_v51 = vmul.f32 -1.442695, %v1508_v15  ;;  %v5031_v33 = vld [vmem:[#allocation11 + $0xa8] sm:$0xff]  ;;  %v5036_v15 = vld [vmem:[#allocation11 + $0xb0] sm:$0xff] }
 0x57f   :  { %6314 = vst [vmem:[#allocation31_spill] sm:$0xff] %v5031_v33  ;;  %1890 = vmatpush.msrb.mxu1 %v5031_v33  ;;  %1910 = vmatpush.msrb.mxu2 %v5036_v15 }
 0x580   :  { %3353 = vpow2.f32 %v3201_v54  ;;  %v1492_v62 = vpop.f32.mrf.mxu3  ;;  %v1472_v48 = vpop.f32.mrf.mxu2  ;;  %6315 = vst [vmem:[#allocation38_spill] sm:$0xff] %v5036_v15  ;;  %v5038_v54 = vld [vmem:[#allocation11 + $0xb8] sm:$0xff] }
 0x581   :  { %3355 = vpow2.f32 %v3202_v51  ;;  %v1502_v41 = vrot.slane %v1492_v62, 2  ;;  %v1743_v49 = vpop.f32.mrf.mxu0  ;;  %6316 = vst [vmem:[#allocation39_spill] sm:$0xff] %v5038_v54  ;;  %v5043_v51 = vld [vmem:[#allocation11 + $0x80] sm:$0xff]  ;;  %v5045_v62 = vld [vmem:[#allocation11 + $0x88] sm:$0xff]  ;;  %1930 = vmatpush.msrb.mxu3 %v5038_v54 }
 0x582   :  { %v4978_v3 = vadd.f32 %v1743_v49, %v5973_v31  ;;  %6317 = vst [vmem:[#allocation40_spill] sm:$0xff] %v5043_v51  ;;  %1871 = vmatpush.msrb.mxu0 %v5043_v51  ;;  %1891 = vmatpush.msrb.mxu1 %v5045_v62  ;;  %v5069_v31 = vld [vmem:[#allocation11 + $0x78] sm:$0xff]  ;;  %v5076_v54 = vld [vmem:[#allocation11 + $0x40] sm:$0xff]  ;;  %v5100_v51 = vld [vmem:[#allocation11 + $0x28] sm:$0xff] }
 0x583   :  { %v1510_v2 = vadd.f32 %v1502_v41, %v6300_v58  ;;  %6318 = vst [vmem:[#allocation41_spill] sm:$0xff] %v5045_v62  ;;  %v1501_v41 = vrot.slane %v1472_v48, 2  ;;  %v5061_v48 = vld [vmem:[#allocation11 + $0x68] sm:$0xff] }
 0x584   :  { %6306 = vst [vmem:[#allocation33_spill] sm:$0xff] %v4978_v3  ;;  %v3204_v12 = vmul.f32 -1.442695, %v4978_v3  ;;  %1892 = vmatpush.msrb.mxu1 %v5061_v48 }
 0x585   :  { %v3203_v58 = vmul.f32 -1.442695, %v1510_v2  ;;  %v5053_v2 = vld [vmem:[#allocation11 + $0x90] sm:$0xff]  ;;  %6323 = vst [vmem:[#allocation48_spill] sm:$0xff] %v5061_v48  ;;  %v1509_v62 = vadd.f32 %v1501_v41, %v6301_v24  ;;  %v5098_v41 = vld [vmem:[#allocation11 + $0x20] sm:$0xff] }
 0x586   :  { %v3354_v44 = vpop.eup %3353  ;;  %3357 = vpow2.f32 %v3204_v12  ;;  %6320 = vst [vmem:[#allocation43_spill] sm:$0xff] %v5053_v2  ;;  %v5055_v12 = vld [vmem:[#allocation11 + $0x98] sm:$0xff]  ;;  %1911 = vmatpush.msrb.mxu2 %v5053_v2 }
 0x587   :  { %v3356_v23 = vpop.eup %3355  ;;  %v5016_v25 = vadd.f32 1.0, %v3354_v44  ;;  %3359 = vpow2.f32 %v3203_v58  ;;  %6321 = vst [vmem:[#allocation44_spill] sm:$0xff] %v5055_v12  ;;  %v5059_v44 = vld [vmem:[#allocation11 + $0x60] sm:$0xff]  ;;  %1931 = vmatpush.msrb.mxu3 %v5055_v12 }
 0x588   :  { %v5025_v30 = vadd.f32 1.0, %v3356_v23  ;;  %v1812_v18 = vpop.f32.mrf.mxu3  ;;  %6322 = vst [vmem:[#allocation47_spill] sm:$0xff] %v5059_v44  ;;  %1872 = vmatpush.msrb.mxu0 %v5059_v44  ;;  %v1789_v24 = vpop.f32.mrf.mxu2 }
 0x589   :  { %3361 = vrcp.f32 %v5016_v25  ;;  %v5049_v49 = vadd.f32 %v1812_v18, %v5972_v52  ;;  %v5067_v52 = vld [vmem:[#allocation11 + $0x70] sm:$0xff]  ;;  %6325 = vst [vmem:[#allocation50_spill] sm:$0xff] %v5069_v31  ;;  %1932 = vmatpush.msrb.mxu3 %v5069_v31  ;;  %v1524_v44 = vand.u32 2147483647, %v5016_v25  ;;  %v1526_v45 = vand.u32 2147483648, %v5016_v25 }
 0x58a   :  { %3363 = vrcp.f32 %v5025_v30  ;;  %6324 = vst [vmem:[#allocation49_spill] sm:$0xff] %v5067_v52  ;;  %1912 = vmatpush.msrb.mxu2 %v5067_v52  ;;  %1873 = vmatpush.msrb.mxu0 %v5076_v54  ;;  %v1545_v31 = vand.u32 2147483648, %v5025_v30  ;;  %vm1520_vm0 = vweird.f32 %v5016_v25  ;;  %vm1539_vm11 = vweird.f32 %v5025_v30 }
 0x58b   :  { %6319 = vst [vmem:[#allocation42_spill] sm:$0xff] %v5049_v49  ;;  %v3205_v15 = vmul.f32 -1.442695, %v5049_v49  ;;  %v5089_v49 = vld [vmem:[#allocation11 + $0x58] sm:$0xff]  ;;  %vm5141_vm13 = vcmp.eq.f32.partialorder %v1524_v44, 8.507059e+37  ;;  %v1527_v27 = vor.u32 1.1754944e-38, %v1526_v45 }
 0x58c   :  { %v3358_v58 = vpop.eup %3357  ;;  %6326 = vst [vmem:[#allocation51_spill] sm:$0xff] %v5076_v54  ;;  %1933 = vmatpush.msrb.mxu3 %v5089_v49  ;;  %1874 = vmatpush.msrb.mxu0 %v5098_v41  ;;  %v6357_v44 = vld [vmem:[#allocation38_spill] sm:$0xff] }
 0x58d   :  { %v3360_v23 = vpop.eup %3359  ;;  %v5063_v18 = vadd.f32 1.0, %v3358_v58  ;;  %v5078_v58 = vld [vmem:[#allocation11 + $0x48] sm:$0xff]  ;;  %6329 = vst [vmem:[#allocation54_spill] sm:$0xff] %v5089_v49  ;;  %v1570_v49 = vrot.slane %v4878_v38, 6 }
 0x58e   :  { %v5071_v3 = vadd.f32 1.0, %v3360_v23  ;;  %6327 = vst [vmem:[#allocation52_spill] sm:$0xff] %v5078_v58  ;;  %v5087_v23 = vld [vmem:[#allocation11 + $0x50] sm:$0xff]  ;;  %1893 = vmatpush.msrb.mxu1 %v5078_v58  ;;  %v1543_v58 = vand.u32 2147483647, %v5025_v30  ;;  %1934 = vmatpush.msrb.mxu3 %v5109_v63 }
 0x58f   :  { %v5080_v33 = vpop.eup %3361  ;;  %3365 = vrcp.f32 %v5063_v18  ;;  %6328 = vst [vmem:[#allocation53_spill] sm:$0xff] %v5087_v23  ;;  %1913 = vmatpush.msrb.mxu2 %v5087_v23  ;;  %v5128_v23 = vld [vmem:[#allocation11 + $0x18] sm:$0xff]  ;;  %1875 = vmatpush.msrb.mxu0 %v5115_v16  ;;  %vm1827_vm5 = vweird.f32 %v5063_v18 }
 0x590   :  { %v5091_v12 = vpop.eup %3363  ;;  %v1516_v2 = vmul.f32 %v5080_v33, %v5016_v25  ;;  %3367 = vrcp.f32 %v5071_v3  ;;  %6330 = vst [vmem:[#allocation55_spill] sm:$0xff] %v5098_v41  ;;  %1894 = vmatpush.msrb.mxu1 %v5100_v51  ;;  %vm1521_vm1 = vweird.f32 %v5080_v33  ;;  %1935 = vmatpush.msrb.mxu3 %v5128_v23  ;;  %vm5163_vm2 = vcmp.eq.f32.partialorder %v1543_v58, 8.507059e+37 }
 0x591   :  { %6331 = vst [vmem:[#allocation56_spill] sm:$0xff] %v5100_v51  ;;  %v1535_v48 = vmul.f32 %v5091_v12, %v5025_v30  ;;  %3369 = vpow2.f32 %v3205_v15  ;;  %v5126_v15 = vld [vmem:[#allocation11 + $0x10] sm:$0xff]  ;;  %1914 = vmatpush.msrb.mxu2 %v5107_v17  ;;  %vm1540_vm12 = vweird.f32 %v5091_v12  ;;  %vm5158_vm15 = vmor %vm1520_vm0, %vm1521_vm1  ;;  %2025 = vmatpush.msra.mxu0 %v4894_v34  ;;  %vm1559_vm9 = vweird.f32 %v5071_v3 }
 0x592   :  { %6332 = vst [vmem:[#allocation58_spill] sm:$0xff] %v5107_v17  ;;  %v1517_v52 = vsub.f32 1.0, %v1516_v2  ;;  %3371 = vtanh.f32 %v1509_v62  ;;  %v5122_v2 = vadd.f32 %v1789_v24, %v6336_v40  ;;  %1895 = vmatpush.msrb.mxu1 %v5117_v7  ;;  %vm1541_vm3 = vmor %vm1539_vm11, %vm1540_vm12  ;;  %2085 = vmatpush.msra.mxu3 %v4902_v37 }
 0x593   :  { %v1536_v54 = vsub.f32 1.0, %v1535_v48  ;;  %6338 = vst [vmem:[#allocation63_spill] sm:$0xff] %v5126_v15  ;;  %v1546_v48 = vor.u32 1.1754944e-38, %v1545_v31  ;;  %1915 = vmatpush.msrb.mxu2 %v5126_v15  ;;  %v1833_v15 = vand.u32 2147483648, %v5063_v18  ;;  %2026 = vmatpush.msra.mxu0 %v4906_v55 }
 0x594   :  { %6337 = vst [vmem:[#allocation62_spill] sm:$0xff] %v5122_v2  ;;  %v1518_v6 = vmul.f32 %v5080_v33, %v1517_v52  ;;  %3373 = vtanh.f32 %v5122_v2  ;;  %2045 = vmatpush.msra.mxu1 %v4896_v14  ;;  %2086 = vmatpush.msra.mxu3 %v4919_v22 }
 0x595   :  { %6339 = vst [vmem:[#allocation64_spill] sm:$0xff] %v5128_v23  ;;  %v5136_v40 = vpop.eup %3365  ;;  %v1537_v62 = vmul.f32 %v5091_v12, %v1536_v54  ;;  %v1831_v23 = vand.u32 2147483647, %v5063_v18  ;;  %2065 = vmatpush.msra.mxu2 %v4898_v29  ;;  %2027 = vmatpush.msra.mxu0 %v4923_v28 }
 0x596   :  { %v5147_v52 = vpop.eup %3367  ;;  %v1519_v24 = vadd.f32 %v5080_v33, %v1518_v6  ;;  %v1823_v54 = vmul.f32 %v5136_v40, %v5063_v18  ;;  %2046 = vmatpush.msra.mxu1 %v4908_v19  ;;  %vm1828_vm4 = vweird.f32 %v5136_v40  ;;  %2087 = vmatpush.msra.mxu3 %v4931_v20 }
 0x597   :  { %v1538_v31 = vadd.f32 %v5091_v12, %v1537_v62  ;;  %v1555_v45 = vmul.f32 %v5147_v52, %v5071_v3  ;;  %v3370_v25 = vpop.eup %3369  ;;  %2066 = vmatpush.msra.mxu2 %v4910_v32  ;;  %vm1829_vm6 = vmor %vm1827_vm5, %vm1828_vm4  ;;  %2028 = vmatpush.msra.mxu0 %v4937_v36  ;;  %vm1832_vm7 = vcmp.eq.f32.partialorder %v1831_v23, 8.507059e+37  ;;  %vm1560_vm8 = vweird.f32 %v5147_v52 }
 0x598   :  { %v1523_v58 = vsel %vm5158_vm15, %v5080_v33, %v1519_v24  ;;  %v1824_v62 = vsub.f32 1.0, %v1823_v54  ;;  %v3372_v2 = vpop.eup %3371  ;;  %v5186_v7 = vadd.f32 1.0, %v3370_v25  ;;  %2047 = vmatpush.msra.mxu1 %v4925_v59  ;;  %2088 = vmatpush.msra.mxu3 %v4946_v0  ;;  %v1563_v23 = vand.u32 2147483647, %v5071_v3  ;;  %vm5218_vm10 = vmor %vm1559_vm9, %vm1560_vm8 }
 0x599   :  { %v1528_v14 = vsel %vm5141_vm13, %v1527_v27, %v1523_v58  ;;  %v1542_v30 = vsel %vm1541_vm3, %v5091_v12, %v1538_v31  ;;  %v1556_v34 = vsub.f32 1.0, %v1555_v45  ;;  %2067 = vmatpush.msra.mxu2 %v4927_v42  ;;  %2029 = vmatpush.msra.mxu0 %v4950_v57 }
 0x59a   :  { %v1547_v33 = vsel %vm5163_vm2, %v1546_v48, %v1542_v30  ;;  %v1573_v24 = vmul.f32 %v3372_v2, %v1528_v14  ;;  %v1825_v54 = vmul.f32 %v5136_v40, %v1824_v62  ;;  %3375 = vrcp.f32 %v5186_v7  ;;  %v3374_v14 = vpop.eup %3373  ;;  %2048 = vmatpush.msra.mxu1 %v4939_v21  ;;  %2089 = vmatpush.msra.mxu3 %v4958_v50 }
 0x59b   :  { %v1572_v27 = vmul.f32 %v1570_v49, %v1547_v33  ;;  %v1557_v12 = vmul.f32 %v5147_v52, %v1556_v34  ;;  %v1834_v49 = vor.u32 1.1754944e-38, %v1833_v15  ;;  %2068 = vmatpush.msra.mxu2 %v4941_v35  ;;  %v1565_v15 = vand.u32 2147483648, %v5071_v3  ;;  %2030 = vmatpush.msra.mxu0 %v4962_v47 }
 0x59c   :  { %v1826_v38 = vadd.f32 %v5136_v40, %v1825_v54  ;;  %2049 = vmatpush.msra.mxu1 %v4952_v53  ;;  %2090 = vmatpush.msra.mxu3 %v4970_v26  ;;  %vm1564_vm0 = vcmp.eq.f32.partialorder %v1563_v23, 8.507059e+37  ;;  %v1853_v54 = vand.u32 2147483648, %v5186_v7  ;;  %vm1847_vm11 = vweird.f32 %v5186_v7  ;;  %v6356_v23 = vld [vmem:[#allocation31_spill] sm:$0xff] }
 0x59d   :  { %v1574_v2 = vadd.f32 %v1573_v24, %v1572_v27  ;;  %v1558_v48 = vadd.f32 %v5147_v52, %v1557_v12  ;;  %2069 = vmatpush.msra.mxu2 %v4956_v46  ;;  %v1566_v45 = vor.u32 1.1754944e-38, %v1565_v15  ;;  %2031 = vmatpush.msra.mxu0 %v4972_v61  ;;  %v6349_v27 = vld [vmem:[#allocation34_spill] sm:$0xff]  ;;  %v6350_v12 = vld [vmem:[#allocation37_spill] sm:$0xff]  ;;  %v6355_v15 = vld [vmem:[#allocation36_spill] sm:$0xff] }
 0x59e   :  { %v1830_v34 = vsel %vm1829_vm6, %v5136_v40, %v1826_v38  ;;  %2050 = vmatpush.msra.mxu1 %v4964_v1  ;;  %2091 = vmatpush.msra.mxu3 %v4984_v5  ;;  %v1851_v38 = vand.u32 2147483647, %v5186_v7 }
 0x59f   :  { %3377 = vtanh.f32 %v1574_v2  ;;  %1578 = vst [vmem:[#allocation19 - $0x6] sm:$0xc0] %v1574_v2  ;;  %v1835_v18 = vsel %vm1832_vm7, %v1834_v49, %v1830_v34  ;;  %v1562_v6 = vsel %vm5218_vm10, %v5147_v52, %v1558_v48  ;;  %2070 = vmatpush.msra.mxu2 %v4966_v56  ;;  %2032 = vmatpush.msra.mxu0 %v4986_v8  ;;  %v6352_v2 = vld [vmem:[#allocation29_spill] sm:$0xff]  ;;  %v1854_v34 = vor.u32 1.1754944e-38, %v1853_v54  ;;  %v6353_v48 = vld [vmem:[#allocation32_spill] sm:$0xff] }
 0x5a0   :  { %v3376_v40 = vpop.eup %3375  ;;  %v5224_v31 = vmul.f32 %v3374_v14, %v1835_v18  ;;  %2051 = vmatpush.msra.mxu1 %v4974_v43  ;;  %v1567_v62 = vsel %vm1564_vm0, %v1566_v45, %v1562_v6  ;;  %2092 = vmatpush.msra.mxu3 %v4995_v11  ;;  %v6354_v18 = vld [vmem:[#allocation35_spill] sm:$0xff]  ;;  %v6360_v45 = vld [vmem:[#allocation41_spill] sm:$0xff]  ;;  %v6368_v54 = vld [vmem:[#allocation52_spill] sm:$0xff] }
 0x5a1   :  { %v1843_v3 = vmul.f32 %v3376_v40, %v5186_v7  ;;  %2071 = vmatpush.msra.mxu2 %v4982_v4  ;;  %vm1848_vm1 = vweird.f32 %v3376_v40  ;;  %2033 = vmatpush.msra.mxu0 %v5000_v13  ;;  %v6358_v6 = vld [vmem:[#allocation39_spill] sm:$0xff] }
 0x5a2   :  { %6348 = vst [vmem:[#allocation27_spill] sm:$0xff] %v5224_v31  ;;  %2052 = vmatpush.msra.mxu1 %v4991_v9  ;;  %3379 = vtanh.f32 %v5224_v31  ;;  %2093 = vmatpush.msra.mxu3 %v6350_v12  ;;  %vm1849_vm12 = vmor %vm1847_vm11, %vm1848_vm1  ;;  %v6375_v31 = vld [vmem:[#allocation65_spill] sm:$0xff] }
 0x5a3   :  { %v1844_v25 = vsub.f32 1.0, %v1843_v3  ;;  %2072 = vmatpush.msra.mxu2 %v4993_v10  ;;  %v6359_v3 = vld [vmem:[#allocation40_spill] sm:$0xff] }
 0x5a4   :  { %2053 = vmatpush.msra.mxu1 %v5002_v39  ;;  %2094 = vmatpush.msra.mxu3 %v6354_v18 }
 0x5a5   :  { %v3378_v58 = vpop.eup %3377  ;;  %v1845_v30 = vmul.f32 %v3376_v40, %v1844_v25  ;;  %2073 = vmatpush.msra.mxu2 %v6349_v27  ;;  %v6361_v25 = vld [vmem:[#allocation43_spill] sm:$0xff] }
 0x5a6   :  { %v1576_v52 = vmul.f32 %v3378_v58, %v1567_v62  ;;  %2054 = vmatpush.msra.mxu1 %v6352_v2  ;;  %2095 = vmatpush.msra.mxu3 %v6358_v6  ;;  %v6362_v58 = vld [vmem:[#allocation44_spill] sm:$0xff]  ;;  %v6363_v62 = vld [vmem:[#allocation47_spill] sm:$0xff] }
 0x5a7   :  { %v1846_v24 = vadd.f32 %v3376_v40, %v1845_v30  ;;  %2074 = vmatpush.msra.mxu2 %v6353_v48  ;;  %v6365_v30 = vld [vmem:[#allocation49_spill] sm:$0xff] }
 0x5a8   :  { %v1587_v33 = vsel %vm1583_vm14, %v4888_v60, %v1576_v52  ;;  %1577 = vst [vmem:[#allocation17 - $0x6] sm:$0xc0] %v1576_v52  ;;  %v6351_v60 = vld [vmem:[#allocation28_spill] sm:$0xff]  ;;  %v3380_v49 = vpop.eup %3379  ;;  %vm1852_vm14 = vcmp.eq.f32.partialorder %v1851_v38, 8.507059e+37  ;;  %2055 = vmatpush.msra.mxu1 %v6356_v23  ;;  %2096 = vmatpush.msra.mxu3 %v6362_v58  ;;  %v6369_v38 = vld [vmem:[#allocation53_spill] sm:$0xff] }
 0x5a9   :  { %1745 = vmatmul.f32.gmra.mxu0 %v1587_v33  ;;  %1768 = vmatmul.f32.gmra.mxu1 %v1587_v33  ;;  %v1850_v14 = vsel %vm1849_vm12, %v3376_v40, %v1846_v24  ;;  %v6364_v52 = vld [vmem:[#allocation48_spill] sm:$0xff]  ;;  %v6367_v24 = vld [vmem:[#allocation51_spill] sm:$0xff] }
 0x5aa   :  { %1791 = vmatmul.f32.gmra.mxu2 %v1587_v33  ;;  %1814 = vmatmul.f32.gmra.mxu3 %v1587_v33  ;;  %v1855_v7 = vsel %vm1852_vm14, %v1854_v34, %v1850_v14  ;;  %v6366_v33 = vld [vmem:[#allocation50_spill] sm:$0xff]  ;;  %v6372_v34 = vld [vmem:[#allocation63_spill] sm:$0xff] }
 0x5ab   :  { %2034 = vmatpush.msra.mxu0 %v6351_v60  ;;  %2075 = vmatpush.msra.mxu2 %v6357_v44  ;;  %v1859_v40 = vmul.f32 %v3380_v49, %v1855_v7  ;;  %v6370_v14 = vld [vmem:[#allocation54_spill] sm:$0xff]  ;;  %v6371_v49 = vld [vmem:[#allocation61_spill] sm:$0xff]  ;;  %v6373_v7 = vld [vmem:[#allocation64_spill] sm:$0xff] }
 0x5ac   :  { %2056 = vmatpush.msra.mxu1 %v6360_v45  ;;  %2097 = vmatpush.msra.mxu3 %v6366_v33 }
 0x5ad   :  { %2035 = vmatpush.msra.mxu0 %v6355_v15  ;;  %2076 = vmatpush.msra.mxu2 %v6361_v25 }
 0x5ae   :  { %2057 = vmatpush.msra.mxu1 %v6364_v52  ;;  %2098 = vmatpush.msra.mxu3 %v6370_v14 }
 0x5af   :  { %2036 = vmatpush.msra.mxu0 %v6359_v3  ;;  %2077 = vmatpush.msra.mxu2 %v6365_v30 }
 0x5b0   :  { %2058 = vmatpush.msra.mxu1 %v6368_v54  ;;  %2099 = vmatpush.msra.mxu3 %v5109_v63 }
 0x5b1   :  { %1876 = vmatmul.f32.vlgmr.msrb.gmra.mxu0 %v1859_v40  ;;  %1896 = vmatmul.f32.vlgmr.msrb.gmra.mxu1 %v1859_v40 }
 0x5b2   :  { %1916 = vmatmul.f32.vlgmr.msrb.gmra.mxu2 %v1859_v40  ;;  %1936 = vmatmul.f32.vlgmr.msrb.gmra.mxu3 %v1859_v40  ;;  %v6374_v40 = vld [vmem:[#allocation57_spill] sm:$0xff] }
 0x5b3   :  { %2037 = vmatpush.msra.mxu0 %v6363_v62  ;;  %2078 = vmatpush.msra.mxu2 %v6369_v38 }
 0x5b4   :  { %2059 = vmatpush.msra.mxu1 %v5100_v51  ;;  %2100 = vmatpush.msra.mxu3 %v6373_v7 }
 0x5b5   :  { %2038 = vmatpush.msra.mxu0 %v6367_v24  ;;  %2079 = vmatpush.msra.mxu2 %v5107_v17 }
 0x5b6   :  { %2060 = vmatpush.msra.mxu1 %v6371_v49  ;;  %2250 = vmatpush.msrb.mxu3 %v4902_v37 }
 0x5b7   :  { %2039 = vmatpush.msra.mxu0 %v5098_v41  ;;  %2080 = vmatpush.msra.mxu2 %v6372_v34 }
 0x5b8   :  { %2210 = vmatpush.msrb.mxu1 %v6375_v31  ;;  %2251 = vmatpush.msrb.mxu3 %v4919_v22 }
 0x5b9   :  { %2040 = vmatpush.msra.mxu0 %v5115_v16  ;;  %2230 = vmatpush.msrb.mxu2 %v4898_v29 }
 0x5ba   :  { %2211 = vmatpush.msrb.mxu1 %v4908_v19  ;;  %2252 = vmatpush.msrb.mxu3 %v4931_v20 }
 0x5bb   :  { %2190 = vmatpush.msrb.mxu0 %v6374_v40  ;;  %2231 = vmatpush.msrb.mxu2 %v4910_v32 }
 0x5bc   :  { %2212 = vmatpush.msrb.mxu1 %v4925_v59  ;;  %2253 = vmatpush.msrb.mxu3 %v4946_v0 }
 0x5bd   :  { %2191 = vmatpush.msrb.mxu0 %v4906_v55  ;;  %2232 = vmatpush.msrb.mxu2 %v4927_v42 }
 0x5be   :  { %2213 = vmatpush.msrb.mxu1 %v4939_v21  ;;  %2254 = vmatpush.msrb.mxu3 %v4958_v50 }
 0x5bf   :  { %2192 = vmatpush.msrb.mxu0 %v4923_v28  ;;  %2233 = vmatpush.msrb.mxu2 %v4941_v35 }
 0x5c0   :  { %2214 = vmatpush.msrb.mxu1 %v4952_v53  ;;  %2255 = vmatpush.msrb.mxu3 %v4970_v26 }
 0x5c1   :  { %2193 = vmatpush.msrb.mxu0 %v4937_v36  ;;  %2234 = vmatpush.msrb.mxu2 %v4956_v46 }
 0x5c2   :  { %2215 = vmatpush.msrb.mxu1 %v4964_v1  ;;  %2256 = vmatpush.msrb.mxu3 %v4984_v5 }
 0x5c3   :  { %2194 = vmatpush.msrb.mxu0 %v4950_v57  ;;  %2235 = vmatpush.msrb.mxu2 %v4966_v56 }
 0x5c4   :  { %2216 = vmatpush.msrb.mxu1 %v4974_v43  ;;  %2257 = vmatpush.msrb.mxu3 %v4995_v11 }
 0x5c5   :  { %2195 = vmatpush.msrb.mxu0 %v4962_v47  ;;  %2236 = vmatpush.msrb.mxu2 %v4982_v4 }
 0x5c6   :  { %2217 = vmatpush.msrb.mxu1 %v4991_v9  ;;  %2258 = vmatpush.msrb.mxu3 %v6350_v12 }
 0x5c7   :  { %2196 = vmatpush.msrb.mxu0 %v4972_v61  ;;  %2237 = vmatpush.msrb.mxu2 %v4993_v10 }
 0x5c8   :  { %2218 = vmatpush.msrb.mxu1 %v5002_v39  ;;  %2259 = vmatpush.msrb.mxu3 %v6354_v18 }
 0x5c9   :  { %2197 = vmatpush.msrb.mxu0 %v4986_v8  ;;  %2238 = vmatpush.msrb.mxu2 %v6349_v27 }
 0x5ca   :  { %2219 = vmatpush.msrb.mxu1 %v6352_v2  ;;  %2260 = vmatpush.msrb.mxu3 %v6358_v6 }
 0x5cb   :  { %2198 = vmatpush.msrb.mxu0 %v5000_v13  ;;  %2239 = vmatpush.msrb.mxu2 %v6353_v48 }
 0x5cc   :  { %2220 = vmatpush.msrb.mxu1 %v6356_v23  ;;  %2261 = vmatpush.msrb.mxu3 %v6362_v58  ;;  %v6383_v58 = vld [vmem:[#allocation42_spill] sm:$0xff] }
 0x5cd   :  { %2199 = vmatpush.msrb.mxu0 %v6351_v60  ;;  %2240 = vmatpush.msrb.mxu2 %v6357_v44 }
 0x5ce   :  { %2221 = vmatpush.msrb.mxu1 %v6360_v45  ;;  %2262 = vmatpush.msrb.mxu3 %v6366_v33 }
 0x5cf   :  { %2200 = vmatpush.msrb.mxu0 %v6355_v15  ;;  %2241 = vmatpush.msrb.mxu2 %v6361_v25 }
 0x5d0   :  { %2222 = vmatpush.msrb.mxu1 %v6364_v52  ;;  %2263 = vmatpush.msrb.mxu3 %v6370_v14 }
 0x5d1   :  { %2201 = vmatpush.msrb.mxu0 %v6359_v3  ;;  %2242 = vmatpush.msrb.mxu2 %v6365_v30 }
 0x5d2   :  { %2223 = vmatpush.msrb.mxu1 %v6368_v54  ;;  %2264 = vmatpush.msrb.mxu3 %v5109_v63  ;;  %v1766_v54 = vpop.f32.mrf.mxu1 }
 0x5d3   :  { %2202 = vmatpush.msrb.mxu0 %v6363_v62  ;;  %2243 = vmatpush.msrb.mxu2 %v6369_v38 }
 0x5d4   :  { %2224 = vmatpush.msrb.mxu1 %v5100_v51  ;;  %2265 = vmatpush.msrb.mxu3 %v6373_v7 }
 0x5d5   :  { %2203 = vmatpush.msrb.mxu0 %v6367_v24  ;;  %2244 = vmatpush.msrb.mxu2 %v5107_v17 }
 0x5d6   :  { %2225 = vmatpush.msrb.mxu1 %v6371_v49 }
 0x5d7   :  { %2204 = vmatpush.msrb.mxu0 %v5098_v41  ;;  %2245 = vmatpush.msrb.mxu2 %v6372_v34  ;;  %v6378_v41 = vld [vmem:[#allocation66_spill] sm:$0xff]  ;;  %v6381_v34 = vld [vmem:[#allocation33_spill] sm:$0xff] }
 0x5d8   :  { %v6057_v24 = vperm.slane %v6378_v41, 1 }
 0x5d9   :  { %2205 = vmatpush.msrb.mxu0 %v5115_v16 }
 0x5da   :  { %v5352_v16 = vadd.f32 %v1766_v54, %v6057_v24 }
 0x5dc   :  { %6380 = vst [vmem:[#allocation34_spill] sm:$0xff] %v5352_v16 }
 0x626   :  { %v5343_v38 = vpop.f32.mrf.mxu0  ;;  %v5345_v14 = vpop.f32.mrf.mxu1 }
 0x627   :  { %6376 = vst [vmem:[#allocation46_spill] sm:$0xff] %v5343_v38 }
 0x628   :  { %6377 = vst [vmem:[#allocation30_spill] sm:$0xff] %v5345_v14 }
 0x62d   :  { %v5348_v51 = vpop.f32.mrf.mxu3  ;;  %v5356_v52 = vpop.f32.mrf.mxu2 }
 0x62e   :  { %6379 = vst [vmem:[#allocation45_spill] sm:$0xff] %v5348_v51  ;;  %v1877_v17 = vpop.f32.mrf.mxu0  ;;  %v1897_v33 = vpop.f32.mrf.mxu1 }
 0x62f   :  { %v1944_v49 = vrot.slane %v1877_v17, 6  ;;  %v1945_v63 = vrot.slane %v1897_v33, 6  ;;  %6382 = vst [vmem:[#allocation37_spill] sm:$0xff] %v5356_v52 }
 0x631   :  { %v1952_v30 = vadd.f32 %v1944_v49, %v6381_v34  ;;  %v1953_v7 = vadd.f32 %v1945_v63, %v5352_v16 }
 0x633   :  { %v3206_v38 = vmul.f32 -1.442695, %v1952_v30  ;;  %v3207_v14 = vmul.f32 -1.442695, %v1953_v7  ;;  %v6384_v7 = vld [vmem:[#allocation62_spill] sm:$0xff] }
 0x635   :  { %3381 = vpow2.f32 %v3206_v38  ;;  %v1937_v62 = vpop.f32.mrf.mxu3  ;;  %v1917_v33 = vpop.f32.mrf.mxu2 }
 0x636   :  { %3383 = vpow2.f32 %v3207_v14  ;;  %v1947_v51 = vrot.slane %v1937_v62, 6  ;;  %v1946_v63 = vrot.slane %v1917_v33, 6 }
 0x638   :  { %v1955_v25 = vadd.f32 %v1947_v51, %v6383_v58  ;;  %v1954_v38 = vadd.f32 %v1946_v63, %v6384_v7 }
 0x63a   :  { %v3208_v45 = vmul.f32 -1.442695, %v1955_v25 }
 0x63b   :  { %v3382_v41 = vpop.eup %3381 }
 0x63c   :  { %v3384_v54 = vpop.eup %3383  ;;  %v1959_v24 = vadd.f32 1.0, %v3382_v41  ;;  %3385 = vpow2.f32 %v3208_v45 }
 0x63d   :  { %v1978_v17 = vadd.f32 1.0, %v3384_v54 }
 0x63e   :  { %3387 = vrcp.f32 %v1959_v24  ;;  %v1971_v58 = vand.u32 2147483648, %v1959_v24  ;;  %v1969_v54 = vand.u32 2147483647, %v1959_v24  ;;  %vm1965_vm2 = vweird.f32 %v1959_v24 }
 0x63f   :  { %3389 = vrcp.f32 %v1978_v17  ;;  %v1990_v41 = vand.u32 2147483648, %v1978_v17  ;;  %v1988_v33 = vand.u32 2147483647, %v1978_v17  ;;  %vm1984_vm3 = vweird.f32 %v1978_v17 }
 0x640   :  { %v1972_v63 = vor.u32 1.1754944e-38, %v1971_v58  ;;  %vm1970_vm6 = vcmp.eq.f32.partialorder %v1969_v54, 8.507059e+37 }
 0x641   :  { %vm1989_vm7 = vcmp.eq.f32.partialorder %v1988_v33, 8.507059e+37 }
 0x642   :  { %v3386_v49 = vpop.eup %3385 }
 0x643   :  { %v1998_v52 = vadd.f32 1.0, %v3386_v49 }
 0x644   :  { %v3388_v30 = vpop.eup %3387 }
 0x645   :  { %v3390_v16 = vpop.eup %3389  ;;  %v1961_v14 = vmul.f32 %v3388_v30, %v1959_v24  ;;  %3391 = vrcp.f32 %v1998_v52  ;;  %vm1966_vm13 = vweird.f32 %v3388_v30  ;;  %vm2004_vm9 = vweird.f32 %v1998_v52 }
 0x646   :  { %v1980_v62 = vmul.f32 %v3390_v16, %v1978_v17  ;;  %3393 = vtanh.f32 %v1954_v38  ;;  %vm1985_vm15 = vweird.f32 %v3390_v16  ;;  %vm1967_vm4 = vmor %vm1965_vm2, %vm1966_vm13  ;;  %v6385_v38 = vld [vmem:[#allocation27_spill] sm:$0xff] }
 0x647   :  { %v1962_v51 = vsub.f32 1.0, %v1961_v14  ;;  %vm1986_vm5 = vmor %vm1984_vm3, %vm1985_vm15  ;;  %v1991_v14 = vor.u32 1.1754944e-38, %v1990_v41  ;;  %v2015_v44 = vrot.slane %v6385_v38, 6 }
 0x648   :  { %v1981_v25 = vsub.f32 1.0, %v1980_v62 }
 0x649   :  { %v1963_v45 = vmul.f32 %v3388_v30, %v1962_v51 }
 0x64a   :  { %v1982_v34 = vmul.f32 %v3390_v16, %v1981_v25 }
 0x64b   :  { %v3392_v3 = vpop.eup %3391  ;;  %v1964_v49 = vadd.f32 %v3388_v30, %v1963_v45 }
 0x64c   :  { %v1983_v7 = vadd.f32 %v3390_v16, %v1982_v34  ;;  %v2000_v6 = vmul.f32 %v3392_v3, %v1998_v52  ;;  %v3394_v51 = vpop.eup %3393  ;;  %vm2005_vm8 = vweird.f32 %v3392_v3  ;;  %v2010_v34 = vand.u32 2147483648, %v1998_v52 }
 0x64d   :  { %v1968_v62 = vsel %vm1967_vm4, %v3388_v30, %v1964_v49  ;;  %v2008_v30 = vand.u32 2147483647, %v1998_v52  ;;  %vm2006_vm10 = vmor %vm2004_vm9, %vm2005_vm8 }
 0x64e   :  { %v1973_v23 = vsel %vm1970_vm6, %v1972_v63, %v1968_v62  ;;  %v1987_v15 = vsel %vm1986_vm5, %v3390_v16, %v1983_v7  ;;  %v2001_v25 = vsub.f32 1.0, %v2000_v6  ;;  %v2011_v54 = vor.u32 1.1754944e-38, %v2010_v34 }
 0x64f   :  { %v1992_v18 = vsel %vm1989_vm7, %v1991_v14, %v1987_v15  ;;  %v2018_v48 = vmul.f32 %v3394_v51, %v1973_v23  ;;  %vm2009_vm0 = vcmp.eq.f32.partialorder %v2008_v30, 8.507059e+37  ;;  %v6415_v51 = vld [vmem:[#allocation62_spill] sm:$0xff] }
 0x650   :  { %v2017_v45 = vmul.f32 %v2015_v44, %v1992_v18  ;;  %v2002_v24 = vmul.f32 %v3392_v3, %v2001_v25  ;;  %v6414_v18 = vld [vmem:[#allocation42_spill] sm:$0xff] }
 0x652   :  { %v5361_v17 = vadd.f32 %v2018_v48, %v2017_v45  ;;  %v2003_v58 = vadd.f32 %v3392_v3, %v2002_v24 }
 0x654   :  { %3395 = vtanh.f32 %v5361_v17  ;;  %v2007_v41 = vsel %vm2006_vm10, %v3392_v3, %v2003_v58 }
 0x655   :  { %v2012_v7 = vsel %vm2009_vm0, %v2011_v54, %v2007_v41 }
 0x65a   :  { %v3396_v16 = vpop.eup %3395 }
 0x65b   :  { %v2021_v6 = vmul.f32 %v3396_v16, %v2012_v7 }
 0x65d   :  { %v2023_v15 = vrot.slane %v2021_v6, 2 }
 0x65f   :  { %2041 = vmatmul.f32.vlgmr.msra.gmra.mxu0 %v2023_v15  ;;  %2061 = vmatmul.f32.vlgmr.msra.gmra.mxu1 %v2023_v15 }
 0x660   :  { %2081 = vmatmul.f32.vlgmr.msra.gmra.mxu2 %v2023_v15  ;;  %2101 = vmatmul.f32.vlgmr.msra.gmra.mxu3 %v2023_v15 }
 0x661   :  { %2355 = vmatpush.msra.mxu0 %v6374_v40  ;;  %2375 = vmatpush.msra.mxu1 %v6375_v31  ;;  %v6413_v31 = vld [vmem:[#allocation34_spill] sm:$0xff] }
 0x662   :  { %2395 = vmatpush.msra.mxu2 %v4898_v29  ;;  %2415 = vmatpush.msra.mxu3 %v4902_v37  ;;  %v6386_v29 = vld [vmem:[#allocation32_spill] sm:$0xff]  ;;  %v6387_v37 = vld [vmem:[#allocation35_spill] sm:$0xff] }
 0x663   :  { %2356 = vmatpush.msra.mxu0 %v4906_v55  ;;  %2376 = vmatpush.msra.mxu1 %v4908_v19  ;;  %v6388_v55 = vld [vmem:[#allocation36_spill] sm:$0xff]  ;;  %v6389_v19 = vld [vmem:[#allocation31_spill] sm:$0xff] }
 0x664   :  { %2396 = vmatpush.msra.mxu2 %v4910_v32  ;;  %2416 = vmatpush.msra.mxu3 %v4919_v22  ;;  %v6390_v32 = vld [vmem:[#allocation38_spill] sm:$0xff]  ;;  %v6391_v22 = vld [vmem:[#allocation39_spill] sm:$0xff] }
 0x665   :  { %2357 = vmatpush.msra.mxu0 %v4923_v28  ;;  %2377 = vmatpush.msra.mxu1 %v4925_v59  ;;  %v6392_v28 = vld [vmem:[#allocation40_spill] sm:$0xff]  ;;  %v6393_v59 = vld [vmem:[#allocation41_spill] sm:$0xff] }
 0x666   :  { %2397 = vmatpush.msra.mxu2 %v4927_v42  ;;  %2417 = vmatpush.msra.mxu3 %v4931_v20  ;;  %v6394_v42 = vld [vmem:[#allocation43_spill] sm:$0xff]  ;;  %v6395_v20 = vld [vmem:[#allocation44_spill] sm:$0xff] }
 0x667   :  { %2358 = vmatpush.msra.mxu0 %v4937_v36  ;;  %2378 = vmatpush.msra.mxu1 %v4939_v21  ;;  %v6396_v36 = vld [vmem:[#allocation47_spill] sm:$0xff]  ;;  %v6397_v21 = vld [vmem:[#allocation48_spill] sm:$0xff] }
 0x668   :  { %2398 = vmatpush.msra.mxu2 %v4941_v35  ;;  %2418 = vmatpush.msra.mxu3 %v4946_v0  ;;  %v6398_v35 = vld [vmem:[#allocation49_spill] sm:$0xff]  ;;  %v6399_v0 = vld [vmem:[#allocation50_spill] sm:$0xff] }
 0x669   :  { %2359 = vmatpush.msra.mxu0 %v4950_v57  ;;  %2379 = vmatpush.msra.mxu1 %v4952_v53  ;;  %v6400_v57 = vld [vmem:[#allocation51_spill] sm:$0xff]  ;;  %v6401_v53 = vld [vmem:[#allocation52_spill] sm:$0xff] }
 0x66a   :  { %2399 = vmatpush.msra.mxu2 %v4956_v46  ;;  %2419 = vmatpush.msra.mxu3 %v4958_v50  ;;  %v6402_v46 = vld [vmem:[#allocation53_spill] sm:$0xff]  ;;  %v6403_v50 = vld [vmem:[#allocation54_spill] sm:$0xff] }
 0x66b   :  { %2360 = vmatpush.msra.mxu0 %v4962_v47  ;;  %2380 = vmatpush.msra.mxu1 %v4964_v1  ;;  %v6404_v47 = vld [vmem:[#allocation55_spill] sm:$0xff]  ;;  %v6405_v1 = vld [vmem:[#allocation56_spill] sm:$0xff] }
 0x66c   :  { %2400 = vmatpush.msra.mxu2 %v4966_v56  ;;  %2420 = vmatpush.msra.mxu3 %v4970_v26  ;;  %v6406_v56 = vld [vmem:[#allocation58_spill] sm:$0xff]  ;;  %v6407_v26 = vld [vmem:[#allocation59_spill] sm:$0xff] }
 0x66d   :  { %2361 = vmatpush.msra.mxu0 %v4972_v61  ;;  %2381 = vmatpush.msra.mxu1 %v4974_v43  ;;  %v6408_v61 = vld [vmem:[#allocation60_spill] sm:$0xff]  ;;  %v6409_v43 = vld [vmem:[#allocation61_spill] sm:$0xff] }
 0x66e   :  { %2401 = vmatpush.msra.mxu2 %v4982_v4  ;;  %2421 = vmatpush.msra.mxu3 %v4984_v5  ;;  %v6410_v4 = vld [vmem:[#allocation63_spill] sm:$0xff]  ;;  %v6411_v5 = vld [vmem:[#allocation64_spill] sm:$0xff] }
 0x66f   :  { %2362 = vmatpush.msra.mxu0 %v4986_v8  ;;  %2382 = vmatpush.msra.mxu1 %v4991_v9 }
 0x670   :  { %2402 = vmatpush.msra.mxu2 %v4993_v10  ;;  %2422 = vmatpush.msra.mxu3 %v4995_v11 }
 0x671   :  { %2363 = vmatpush.msra.mxu0 %v5000_v13  ;;  %2383 = vmatpush.msra.mxu1 %v5002_v39  ;;  %v6412_v13 = vld [vmem:[#allocation33_spill] sm:$0xff] }
 0x672   :  { %2403 = vmatpush.msra.mxu2 %v6349_v27  ;;  %2423 = vmatpush.msra.mxu3 %v6350_v12 }
 0x673   :  { %2364 = vmatpush.msra.mxu0 %v6351_v60  ;;  %2384 = vmatpush.msra.mxu1 %v6352_v2 }
 0x674   :  { %2404 = vmatpush.msra.mxu2 %v6386_v29  ;;  %2424 = vmatpush.msra.mxu3 %v6387_v37 }
 0x675   :  { %2365 = vmatpush.msra.mxu0 %v6388_v55  ;;  %2385 = vmatpush.msra.mxu1 %v6389_v19 }
 0x676   :  { %2405 = vmatpush.msra.mxu2 %v6390_v32  ;;  %2425 = vmatpush.msra.mxu3 %v6391_v22  ;;  %v2180_v22 = vrot.slane %v5361_v17, 6 }
 0x677   :  { %2366 = vmatpush.msra.mxu0 %v6392_v28  ;;  %2386 = vmatpush.msra.mxu1 %v6393_v59 }
 0x678   :  { %2406 = vmatpush.msra.mxu2 %v6394_v42  ;;  %2426 = vmatpush.msra.mxu3 %v6395_v20 }
 0x679   :  { %2367 = vmatpush.msra.mxu0 %v6396_v36  ;;  %2387 = vmatpush.msra.mxu1 %v6397_v21 }
 0x67a   :  { %2407 = vmatpush.msra.mxu2 %v6398_v35  ;;  %2427 = vmatpush.msra.mxu3 %v6399_v0 }
 0x67b   :  { %2368 = vmatpush.msra.mxu0 %v6400_v57  ;;  %2388 = vmatpush.msra.mxu1 %v6401_v53 }
 0x67c   :  { %2408 = vmatpush.msra.mxu2 %v6402_v46  ;;  %2428 = vmatpush.msra.mxu3 %v6403_v50 }
 0x67d   :  { %2369 = vmatpush.msra.mxu0 %v6404_v47  ;;  %2389 = vmatpush.msra.mxu1 %v6405_v1 }
 0x67e   :  { %2409 = vmatpush.msra.mxu2 %v6406_v56  ;;  %2429 = vmatpush.msra.mxu3 %v6407_v26 }
 0x67f   :  { %2370 = vmatpush.msra.mxu0 %v6408_v61  ;;  %2390 = vmatpush.msra.mxu1 %v6409_v43 }
 0x680   :  { %2410 = vmatpush.msra.mxu2 %v6410_v4  ;;  %2430 = vmatpush.msra.mxu3 %v6411_v5  ;;  %v5436_v5 = vld [vmem:[#allocation11 + $0x1e0] sm:$0xff] }
 0x6dc   :  { %v2042_v8 = vpop.f32.mrf.mxu0  ;;  %v2062_v9 = vpop.f32.mrf.mxu1 }
 0x6dd   :  { %v2109_v10 = vrot.slane %v2042_v8, 4  ;;  %v2110_v11 = vrot.slane %v2062_v9, 4  ;;  %v5439_v8 = vld [vmem:[#allocation11 + $0x1e8] sm:$0xff]  ;;  %v5442_v9 = vld [vmem:[#allocation11 + $0x1f0] sm:$0xff] }
 0x6df   :  { %v2117_v39 = vadd.f32 %v2109_v10, %v6412_v13  ;;  %v2118_v27 = vadd.f32 %v2110_v11, %v6413_v31  ;;  %v5445_v10 = vld [vmem:[#allocation11 + $0x1f8] sm:$0xff]  ;;  %v5448_v11 = vld [vmem:[#allocation11 + $0x1c0] sm:$0xff] }
 0x6e1   :  { %v3209_v12 = vmul.f32 -1.442695, %v2117_v39  ;;  %v3210_v60 = vmul.f32 -1.442695, %v2118_v27  ;;  %v5451_v39 = vld [vmem:[#allocation11 + $0x1c8] sm:$0xff]  ;;  %v5454_v27 = vld [vmem:[#allocation11 + $0x1d0] sm:$0xff] }
 0x6e3   :  { %3397 = vpow2.f32 %v3209_v12  ;;  %v2102_v2 = vpop.f32.mrf.mxu3  ;;  %v2082_v49 = vpop.f32.mrf.mxu2  ;;  %v5457_v12 = vld [vmem:[#allocation11 + $0x1d8] sm:$0xff] }
 0x6e4   :  { %3399 = vpow2.f32 %v3210_v60  ;;  %v2112_v48 = vrot.slane %v2102_v2, 4  ;;  %v2111_v63 = vrot.slane %v2082_v49, 4  ;;  %v5460_v60 = vld [vmem:[#allocation11 + $0x1a0] sm:$0xff]  ;;  %v5463_v2 = vld [vmem:[#allocation11 + $0x1a8] sm:$0xff] }
 0x6e5   :  { %v5487_v49 = vld [vmem:[#allocation11 + $0x168] sm:$0xff] }
 0x6e6   :  { %v2120_v23 = vadd.f32 %v2112_v48, %v6414_v18  ;;  %v2119_v25 = vadd.f32 %v2111_v63, %v6415_v51  ;;  %v5466_v48 = vld [vmem:[#allocation11 + $0x1b0] sm:$0xff] }
 0x6e7   :  { %v5490_v63 = vld [vmem:[#allocation11 + $0x170] sm:$0xff] }
 0x6e8   :  { %v3211_v44 = vmul.f32 -1.442695, %v2120_v23  ;;  %v5469_v23 = vld [vmem:[#allocation11 + $0x1b8] sm:$0xff] }
 0x6e9   :  { %v3398_v3 = vpop.eup %3397 }
 0x6ea   :  { %v3400_v52 = vpop.eup %3399  ;;  %v2124_v40 = vadd.f32 1.0, %v3398_v3  ;;  %3401 = vpow2.f32 %v3211_v44  ;;  %v5472_v44 = vld [vmem:[#allocation11 + $0x180] sm:$0xff]  ;;  %v5475_v3 = vld [vmem:[#allocation11 + $0x188] sm:$0xff] }
 0x6eb   :  { %v2143_v33 = vadd.f32 1.0, %v3400_v52  ;;  %v5478_v52 = vld [vmem:[#allocation11 + $0x190] sm:$0xff] }
 0x6ec   :  { %3403 = vrcp.f32 %v2124_v40  ;;  %v2136_v41 = vand.u32 2147483648, %v2124_v40  ;;  %v2134_v7 = vand.u32 2147483647, %v2124_v40  ;;  %vm2130_vm12 = vweird.f32 %v2124_v40 }
 0x6ed   :  { %3405 = vrcp.f32 %v2143_v33  ;;  %v2155_v54 = vand.u32 2147483648, %v2143_v33  ;;  %v2153_v15 = vand.u32 2147483647, %v2143_v33  ;;  %vm2149_vm14 = vweird.f32 %v2143_v33 }
 0x6ee   :  { %v2137_v55 = vor.u32 1.1754944e-38, %v2136_v41  ;;  %vm2135_vm2 = vcmp.eq.f32.partialorder %v2134_v7, 8.507059e+37  ;;  %v5520_v41 = vld [vmem:[#allocation11 + $0x100] sm:$0xff]  ;;  %v5529_v7 = vld [vmem:[#allocation11 + $0x118] sm:$0xff] }
 0x6ef   :  { %v2156_v28 = vor.u32 1.1754944e-38, %v2155_v54  ;;  %vm2154_vm3 = vcmp.eq.f32.partialorder %v2153_v15, 8.507059e+37  ;;  %v5523_v54 = vld [vmem:[#allocation11 + $0x108] sm:$0xff] }
 0x6f0   :  { %v3402_v14 = vpop.eup %3401  ;;  %v5535_v15 = vld [vmem:[#allocation11 + $0xe8] sm:$0xff] }
 0x6f1   :  { %v2163_v62 = vadd.f32 1.0, %v3402_v14  ;;  %v5493_v14 = vld [vmem:[#allocation11 + $0x178] sm:$0xff] }
 0x6f2   :  { %v3404_v38 = vpop.eup %3403 }
 0x6f3   :  { %v3406_v45 = vpop.eup %3405  ;;  %v2126_v24 = vmul.f32 %v3404_v38, %v2124_v40  ;;  %3407 = vrcp.f32 %v2163_v62  ;;  %vm2131_vm1 = vweird.f32 %v3404_v38  ;;  %v2175_v17 = vand.u32 2147483648, %v2163_v62  ;;  %v5481_v40 = vld [vmem:[#allocation11 + $0x198] sm:$0xff] }
 0x6f4   :  { %v2145_v58 = vmul.f32 %v3406_v45, %v2143_v33  ;;  %3409 = vtanh.f32 %v2119_v25  ;;  %vm2150_vm11 = vweird.f32 %v3406_v45  ;;  %vm2132_vm13 = vmor %vm2130_vm12, %vm2131_vm1  ;;  %vm2169_vm5 = vweird.f32 %v2163_v62  ;;  %v5484_v33 = vld [vmem:[#allocation11 + $0x160] sm:$0xff]  ;;  %v5502_v25 = vld [vmem:[#allocation11 + $0x150] sm:$0xff] }
 0x6f5   :  { %v2127_v34 = vsub.f32 1.0, %v2126_v24  ;;  %vm2151_vm15 = vmor %vm2149_vm14, %vm2150_vm11  ;;  %v2173_v47 = vand.u32 2147483647, %v2163_v62  ;;  %v2176_v56 = vor.u32 1.1754944e-38, %v2175_v17  ;;  %v5508_v24 = vld [vmem:[#allocation11 + $0x120] sm:$0xff]  ;;  %v5589_v17 = vld [vmem:[#allocation11 + $0x78] sm:$0xff] }
 0x6f6   :  { %v2146_v30 = vsub.f32 1.0, %v2145_v58  ;;  %v5511_v58 = vld [vmem:[#allocation11 + $0x128] sm:$0xff]  ;;  %6429 = vst [vmem:[#allocation43_spill] sm:$0xff] %v5589_v17 }
 0x6f7   :  { %v2128_v16 = vmul.f32 %v3404_v38, %v2127_v34  ;;  %vm2174_vm7 = vcmp.eq.f32.partialorder %v2173_v47, 8.507059e+37  ;;  %v5514_v34 = vld [vmem:[#allocation11 + $0x130] sm:$0xff]  ;;  %v5592_v47 = vld [vmem:[#allocation11 + $0x40] sm:$0xff] }
 0x6f8   :  { %v2147_v6 = vmul.f32 %v3406_v45, %v2146_v30  ;;  %v5517_v30 = vld [vmem:[#allocation11 + $0x138] sm:$0xff]  ;;  %6430 = vst [vmem:[#allocation44_spill] sm:$0xff] %v5592_v47 }
 0x6f9   :  { %v3408_v29 = vpop.eup %3407  ;;  %v2129_v37 = vadd.f32 %v3404_v38, %v2128_v16  ;;  %v5526_v16 = vld [vmem:[#allocation11 + $0x110] sm:$0xff] }
 0x6fa   :  { %v2148_v19 = vadd.f32 %v3406_v45, %v2147_v6  ;;  %v2165_v32 = vmul.f32 %v3408_v29, %v2163_v62  ;;  %v3410_v42 = vpop.eup %3409  ;;  %vm2170_vm4 = vweird.f32 %v3408_v29  ;;  %v5496_v62 = vld [vmem:[#allocation11 + $0x140] sm:$0xff] }
 0x6fb   :  { %v2133_v59 = vsel %vm2132_vm13, %v3404_v38, %v2129_v37  ;;  %vm2171_vm6 = vmor %vm2169_vm5, %vm2170_vm4  ;;  %v5499_v38 = vld [vmem:[#allocation11 + $0x148] sm:$0xff]  ;;  %v5532_v6 = vld [vmem:[#allocation11 + $0xe0] sm:$0xff] }
 0x6fc   :  { %v2138_v20 = vsel %vm2135_vm2, %v2137_v55, %v2133_v59  ;;  %v2152_v36 = vsel %vm2151_vm15, %v3406_v45, %v2148_v19  ;;  %v2166_v21 = vsub.f32 1.0, %v2165_v32  ;;  %v5505_v45 = vld [vmem:[#allocation11 + $0x158] sm:$0xff]  ;;  %v5544_v55 = vld [vmem:[#allocation11 + $0xc0] sm:$0xff]  ;;  %v5547_v19 = vld [vmem:[#allocation11 + $0xc8] sm:$0xff] }
 0x6fd   :  { %v2157_v35 = vsel %vm2154_vm3, %v2156_v28, %v2152_v36  ;;  %v2183_v0 = vmul.f32 %v3410_v42, %v2138_v20  ;;  %v5541_v37 = vld [vmem:[#allocation11 + $0xf8] sm:$0xff]  ;;  %v5550_v32 = vld [vmem:[#allocation11 + $0xd0] sm:$0xff]  ;;  %v5556_v28 = vld [vmem:[#allocation11 + $0xa0] sm:$0xff] }
 0x6fe   :  { %v2182_v57 = vmul.f32 %v2180_v22, %v2157_v35  ;;  %v2167_v53 = vmul.f32 %v3408_v29, %v2166_v21  ;;  %6416 = vst [vmem:[#allocation28_spill] sm:$0xff] %v5550_v32  ;;  %v5553_v22 = vld [vmem:[#allocation11 + $0xd8] sm:$0xff]  ;;  %v5559_v59 = vld [vmem:[#allocation11 + $0xa8] sm:$0xff]  ;;  %v5562_v42 = vld [vmem:[#allocation11 + $0xb0] sm:$0xff] }
 0x6ff   :  { %6417 = vst [vmem:[#allocation29_spill] sm:$0xff] %v5553_v22  ;;  %v5565_v20 = vld [vmem:[#allocation11 + $0xb8] sm:$0xff]  ;;  %v5568_v36 = vld [vmem:[#allocation11 + $0x80] sm:$0xff]  ;;  %v5571_v21 = vld [vmem:[#allocation11 + $0x88] sm:$0xff] }
 0x700   :  { %v5433_v46 = vadd.f32 %v2183_v0, %v2182_v57  ;;  %v2168_v50 = vadd.f32 %v3408_v29, %v2167_v53  ;;  %6418 = vst [vmem:[#allocation57_spill] sm:$0xff] %v5556_v28  ;;  %v5574_v35 = vld [vmem:[#allocation11 + $0x90] sm:$0xff]  ;;  %v5577_v0 = vld [vmem:[#allocation11 + $0x98] sm:$0xff]  ;;  %v5580_v57 = vld [vmem:[#allocation11 + $0x60] sm:$0xff] }
 0x701   :  { %6419 = vst [vmem:[#allocation65_spill] sm:$0xff] %v5559_v59  ;;  %v5583_v53 = vld [vmem:[#allocation11 + $0x68] sm:$0xff] }
 0x702   :  { %3411 = vtanh.f32 %v5433_v46  ;;  %v2172_v1 = vsel %vm2171_vm6, %v3408_v29, %v2168_v50  ;;  %v5538_v29 = vld [vmem:[#allocation11 + $0xf0] sm:$0xff]  ;;  %6420 = vst [vmem:[#allocation27_spill] sm:$0xff] %v5562_v42 }
 0x703   :  { %v2177_v61 = vsel %vm2174_vm7, %v2176_v56, %v2172_v1  ;;  %6421 = vst [vmem:[#allocation32_spill] sm:$0xff] %v5565_v20  ;;  %v5586_v50 = vld [vmem:[#allocation11 + $0x70] sm:$0xff]  ;;  %v5595_v1 = vld [vmem:[#allocation11 + $0x48] sm:$0xff] }
 0x704   :  { %6422 = vst [vmem:[#allocation35_spill] sm:$0xff] %v5568_v36  ;;  %v5598_v56 = vld [vmem:[#allocation11 + $0x50] sm:$0xff] }
 0x705   :  { %6423 = vst [vmem:[#allocation36_spill] sm:$0xff] %v5571_v21 }
 0x706   :  { %6424 = vst [vmem:[#allocation31_spill] sm:$0xff] %v5574_v35 }
 0x707   :  { %6425 = vst [vmem:[#allocation38_spill] sm:$0xff] %v5577_v0 }
 0x708   :  { %v3412_v26 = vpop.eup %3411  ;;  %6426 = vst [vmem:[#allocation39_spill] sm:$0xff] %v5580_v57 }
 0x709   :  { %v2186_v43 = vmul.f32 %v3412_v26, %v2177_v61  ;;  %6427 = vst [vmem:[#allocation40_spill] sm:$0xff] %v5583_v53  ;;  %v5601_v26 = vld [vmem:[#allocation11 + $0x58] sm:$0xff]  ;;  %v5604_v61 = vld [vmem:[#allocation11 + $0x20] sm:$0xff] }
 0x70a   :  { %6428 = vst [vmem:[#allocation41_spill] sm:$0xff] %v5586_v50 }
 0x70b   :  { %v2188_v4 = vrot.slane %v2186_v43, 4  ;;  %6431 = vst [vmem:[#allocation47_spill] sm:$0xff] %v5595_v1  ;;  %v5607_v43 = vld [vmem:[#allocation11 + $0x28] sm:$0xff] }
 0x70c   :  { %6432 = vst [vmem:[#allocation48_spill] sm:$0xff] %v5598_v56 }
 0x70d   :  { %2206 = vmatmul.f32.vlgmr.msrb.gmra.mxu0 %v2188_v4  ;;  %2226 = vmatmul.f32.vlgmr.msrb.gmra.mxu1 %v2188_v4  ;;  %6433 = vst [vmem:[#allocation49_spill] sm:$0xff] %v5601_v26 }
 0x70e   :  { %2246 = vmatmul.f32.vlgmr.msrb.gmra.mxu2 %v2188_v4  ;;  %2266 = vmatmul.f32.vlgmr.msrb.gmra.mxu3 %v2188_v4  ;;  %6434 = vst [vmem:[#allocation50_spill] sm:$0xff] %v5604_v61  ;;  %v5610_v4 = vld [vmem:[#allocation11 + $0x30] sm:$0xff] }
 0x70f   :  { %2505 = vmatpush.msrb.mxu0 %v5436_v5  ;;  %2525 = vmatpush.msrb.mxu1 %v5439_v8  ;;  %6435 = vst [vmem:[#allocation51_spill] sm:$0xff] %v5607_v43 }
 0x710   :  { %2545 = vmatpush.msrb.mxu2 %v5442_v9  ;;  %2565 = vmatpush.msrb.mxu3 %v5445_v10  ;;  %6436 = vst [vmem:[#allocation52_spill] sm:$0xff] %v5610_v4 }
 0x711   :  { %2506 = vmatpush.msrb.mxu0 %v5448_v11  ;;  %2526 = vmatpush.msrb.mxu1 %v5451_v39 }
 0x712   :  { %2546 = vmatpush.msrb.mxu2 %v5454_v27  ;;  %2566 = vmatpush.msrb.mxu3 %v5457_v12 }
 0x713   :  { %2507 = vmatpush.msrb.mxu0 %v5460_v60  ;;  %2527 = vmatpush.msrb.mxu1 %v5463_v2 }
 0x714   :  { %2547 = vmatpush.msrb.mxu2 %v5466_v48  ;;  %2567 = vmatpush.msrb.mxu3 %v5469_v23 }
 0x715   :  { %2508 = vmatpush.msrb.mxu0 %v5472_v44  ;;  %2528 = vmatpush.msrb.mxu1 %v5475_v3 }
 0x716   :  { %2548 = vmatpush.msrb.mxu2 %v5478_v52  ;;  %2568 = vmatpush.msrb.mxu3 %v5481_v40 }
 0x717   :  { %2509 = vmatpush.msrb.mxu0 %v5484_v33  ;;  %2529 = vmatpush.msrb.mxu1 %v5487_v49 }
 0x718   :  { %2549 = vmatpush.msrb.mxu2 %v5490_v63  ;;  %2569 = vmatpush.msrb.mxu3 %v5493_v14 }
 0x719   :  { %2510 = vmatpush.msrb.mxu0 %v5496_v62  ;;  %2530 = vmatpush.msrb.mxu1 %v5499_v38 }
 0x71a   :  { %2550 = vmatpush.msrb.mxu2 %v5502_v25  ;;  %2570 = vmatpush.msrb.mxu3 %v5505_v45 }
 0x71b   :  { %2511 = vmatpush.msrb.mxu0 %v5508_v24  ;;  %2531 = vmatpush.msrb.mxu1 %v5511_v58 }
 0x71c   :  { %2551 = vmatpush.msrb.mxu2 %v5514_v34  ;;  %2571 = vmatpush.msrb.mxu3 %v5517_v30 }
 0x71d   :  { %2512 = vmatpush.msrb.mxu0 %v5520_v41  ;;  %2532 = vmatpush.msrb.mxu1 %v5523_v54 }
 0x71e   :  { %2552 = vmatpush.msrb.mxu2 %v5526_v16  ;;  %2572 = vmatpush.msrb.mxu3 %v5529_v7 }
 0x71f   :  { %2513 = vmatpush.msrb.mxu0 %v5532_v6  ;;  %2533 = vmatpush.msrb.mxu1 %v5535_v15 }
 0x720   :  { %2553 = vmatpush.msrb.mxu2 %v5538_v29  ;;  %2573 = vmatpush.msrb.mxu3 %v5541_v37 }
 0x721   :  { %2514 = vmatpush.msrb.mxu0 %v5544_v55  ;;  %2534 = vmatpush.msrb.mxu1 %v5547_v19 }
 0x722   :  { %2554 = vmatpush.msrb.mxu2 %v5550_v32  ;;  %2574 = vmatpush.msrb.mxu3 %v5553_v22 }
 0x723   :  { %2515 = vmatpush.msrb.mxu0 %v5556_v28  ;;  %2535 = vmatpush.msrb.mxu1 %v5559_v59 }
 0x724   :  { %2555 = vmatpush.msrb.mxu2 %v5562_v42  ;;  %2575 = vmatpush.msrb.mxu3 %v5565_v20 }
 0x725   :  { %2516 = vmatpush.msrb.mxu0 %v5568_v36  ;;  %2536 = vmatpush.msrb.mxu1 %v5571_v21 }
 0x726   :  { %2556 = vmatpush.msrb.mxu2 %v5574_v35  ;;  %2576 = vmatpush.msrb.mxu3 %v5577_v0 }
 0x727   :  { %2517 = vmatpush.msrb.mxu0 %v5580_v57  ;;  %2537 = vmatpush.msrb.mxu1 %v5583_v53 }
 0x728   :  { %2557 = vmatpush.msrb.mxu2 %v5586_v50  ;;  %2577 = vmatpush.msrb.mxu3 %v5589_v17 }
 0x729   :  { %2518 = vmatpush.msrb.mxu0 %v5592_v47  ;;  %2538 = vmatpush.msrb.mxu1 %v5595_v1  ;;  %v5613_v1 = vld [vmem:[#allocation11 + $0x38] sm:$0xff] }
 0x72a   :  { %2558 = vmatpush.msrb.mxu2 %v5598_v56  ;;  %2578 = vmatpush.msrb.mxu3 %v5601_v26  ;;  %6437 = vst [vmem:[#allocation53_spill] sm:$0xff] %v5613_v1  ;;  %v5616_v56 = vld [vmem:[#allocation11] sm:$0xff]  ;;  %v5619_v26 = vld [vmem:[#allocation11 + $0x8] sm:$0xff] }
 0x72b   :  { %2519 = vmatpush.msrb.mxu0 %v5604_v61  ;;  %2539 = vmatpush.msrb.mxu1 %v5607_v43  ;;  %6438 = vst [vmem:[#allocation54_spill] sm:$0xff] %v5616_v56  ;;  %v5622_v61 = vld [vmem:[#allocation11 + $0x10] sm:$0xff]  ;;  %v5625_v43 = vld [vmem:[#allocation11 + $0x18] sm:$0xff] }
 0x72c   :  { %2559 = vmatpush.msrb.mxu2 %v5610_v4  ;;  %2579 = vmatpush.msrb.mxu3 %v5613_v1  ;;  %6439 = vst [vmem:[#allocation55_spill] sm:$0xff] %v5619_v26 }
 0x72d   :  { %2520 = vmatpush.msrb.mxu0 %v5616_v56  ;;  %2540 = vmatpush.msrb.mxu1 %v5619_v26  ;;  %6440 = vst [vmem:[#allocation56_spill] sm:$0xff] %v5622_v61 }
 0x72e   :  { %2560 = vmatpush.msrb.mxu2 %v5622_v61  ;;  %6441 = vst [vmem:[#allocation58_spill] sm:$0xff] %v5625_v43  ;;  %2580 = vmatpush.msrb.mxu3 %v5625_v43 }
 0x78a   :  { %v2207_v4 = vpop.f32.mrf.mxu0  ;;  %v2227_v47 = vpop.f32.mrf.mxu1 }
 0x78b   :  { %v2274_v17 = vrot.slane %v2207_v4, 2  ;;  %v2275_v1 = vrot.slane %v2227_v47, 2 }
 0x78d   :  { %v2282_v50 = vadd.f32 %v2274_v17, %v6412_v13  ;;  %v2283_v56 = vadd.f32 %v2275_v1, %v6413_v31 }
 0x78f   :  { %v3212_v53 = vmul.f32 -1.442695, %v2282_v50  ;;  %v3213_v57 = vmul.f32 -1.442695, %v2283_v56 }
 0x791   :  { %3413 = vpow2.f32 %v3212_v53  ;;  %v2267_v26 = vpop.f32.mrf.mxu3  ;;  %v2247_v4 = vpop.f32.mrf.mxu2 }
 0x792   :  { %3415 = vpow2.f32 %v3213_v57  ;;  %v2277_v0 = vrot.slane %v2267_v26, 2  ;;  %v2276_v13 = vrot.slane %v2247_v4, 2 }
 0x794   :  { %v2285_v61 = vadd.f32 %v2277_v0, %v6414_v18  ;;  %v2284_v53 = vadd.f32 %v2276_v13, %v6415_v51 }
 0x796   :  { %v3214_v35 = vmul.f32 -1.442695, %v2285_v61 }
 0x797   :  { %v3414_v21 = vpop.eup %3413 }
 0x798   :  { %v3416_v36 = vpop.eup %3415  ;;  %v2289_v43 = vadd.f32 1.0, %v3414_v21  ;;  %3417 = vpow2.f32 %v3214_v35 }
 0x799   :  { %v2308_v20 = vadd.f32 1.0, %v3416_v36 }
 0x79a   :  { %3419 = vrcp.f32 %v2289_v43  ;;  %v2301_v56 = vand.u32 2147483648, %v2289_v43  ;;  %v2299_v36 = vand.u32 2147483647, %v2289_v43  ;;  %vm2295_vm10 = vweird.f32 %v2289_v43 }
 0x79b   :  { %3421 = vrcp.f32 %v2308_v20  ;;  %v2320_v21 = vand.u32 2147483648, %v2308_v20  ;;  %v2318_v61 = vand.u32 2147483647, %v2308_v20  ;;  %vm2314_vm0 = vweird.f32 %v2308_v20 }
 0x79c   :  { %v2302_v51 = vor.u32 1.1754944e-38, %v2301_v56  ;;  %vm2300_vm12 = vcmp.eq.f32.partialorder %v2299_v36, 8.507059e+37 }
 0x79d   :  { %vm2319_vm14 = vcmp.eq.f32.partialorder %v2318_v61, 8.507059e+37  ;;  %v6446_v61 = vld [vmem:[#allocation27_spill] sm:$0xff] }
 0x79e   :  { %v3418_v17 = vpop.eup %3417 }
 0x79f   :  { %v2328_v31 = vadd.f32 1.0, %v3418_v17 }
 0x7a0   :  { %v3420_v50 = vpop.eup %3419 }
 0x7a1   :  { %v3422_v47 = vpop.eup %3421  ;;  %v2291_v57 = vmul.f32 %v3420_v50, %v2289_v43  ;;  %3423 = vrcp.f32 %v2328_v31  ;;  %vm2296_vm8 = vweird.f32 %v3420_v50  ;;  %vm2334_vm15 = vweird.f32 %v2328_v31 }
 0x7a2   :  { %v2310_v1 = vmul.f32 %v3422_v47, %v2308_v20  ;;  %3425 = vtanh.f32 %v2284_v53  ;;  %vm2315_vm9 = vweird.f32 %v3422_v47  ;;  %vm2297_vm1 = vmor %vm2295_vm10, %vm2296_vm8 }
 0x7a3   :  { %v2292_v18 = vsub.f32 1.0, %v2291_v57  ;;  %v2345_v57 = vrot.slane %v5433_v46, 6  ;;  %vm2316_vm11 = vmor %vm2314_vm0, %vm2315_vm9  ;;  %v2340_v46 = vand.u32 2147483648, %v2328_v31 }
 0x7a4   :  { %v2311_v0 = vsub.f32 1.0, %v2310_v1  ;;  %v2321_v1 = vor.u32 1.1754944e-38, %v2320_v21  ;;  %v2338_v21 = vand.u32 2147483647, %v2328_v31 }
 0x7a5   :  { %v2293_v35 = vmul.f32 %v3420_v50, %v2292_v18  ;;  %v2341_v36 = vor.u32 1.1754944e-38, %v2340_v46  ;;  %v6459_v46 = vld [vmem:[#allocation49_spill] sm:$0xff] }
 0x7a6   :  { %v2312_v26 = vmul.f32 %v3422_v47, %v2311_v0  ;;  %vm2339_vm3 = vcmp.eq.f32.partialorder %v2338_v21, 8.507059e+37  ;;  %v6460_v21 = vld [vmem:[#allocation50_spill] sm:$0xff] }
 0x7a7   :  { %v3424_v4 = vpop.eup %3423  ;;  %v2294_v17 = vadd.f32 %v3420_v50, %v2293_v35 }
 0x7a8   :  { %v2313_v13 = vadd.f32 %v3422_v47, %v2312_v26  ;;  %v2330_v42 = vmul.f32 %v3424_v4, %v2328_v31  ;;  %v3426_v18 = vpop.eup %3425  ;;  %vm2335_vm13 = vweird.f32 %v3424_v4  ;;  %v6445_v31 = vld [vmem:[#allocation65_spill] sm:$0xff] }
 0x7a9   :  { %v2298_v53 = vsel %vm2297_vm1, %v3420_v50, %v2294_v17  ;;  %vm2336_vm2 = vmor %vm2334_vm15, %vm2335_vm13  ;;  %v6448_v17 = vld [vmem:[#allocation35_spill] sm:$0xff] }
 0x7aa   :  { %v2303_v59 = vsel %vm2300_vm12, %v2302_v51, %v2298_v53  ;;  %v2317_v28 = vsel %vm2316_vm11, %v3422_v47, %v2313_v13  ;;  %v2331_v0 = vsub.f32 1.0, %v2330_v42  ;;  %v6449_v51 = vld [vmem:[#allocation36_spill] sm:$0xff]  ;;  %v6450_v13 = vld [vmem:[#allocation31_spill] sm:$0xff] }
 0x7ab   :  { %v2322_v22 = vsel %vm2319_vm14, %v2321_v1, %v2317_v28  ;;  %v2348_v32 = vmul.f32 %v3426_v18, %v2303_v59  ;;  %v6444_v59 = vld [vmem:[#allocation57_spill] sm:$0xff]  ;;  %v6452_v1 = vld [vmem:[#allocation39_spill] sm:$0xff]  ;;  %v6453_v53 = vld [vmem:[#allocation40_spill] sm:$0xff] }
 0x7ac   :  { %v2347_v35 = vmul.f32 %v2345_v57, %v2322_v22  ;;  %v2332_v43 = vmul.f32 %v3424_v4, %v2331_v0  ;;  %v6443_v22 = vld [vmem:[#allocation29_spill] sm:$0xff]  ;;  %v6451_v57 = vld [vmem:[#allocation38_spill] sm:$0xff]  ;;  %v6455_v0 = vld [vmem:[#allocation43_spill] sm:$0xff] }
 0x7ad   :  { %v6454_v18 = vld [vmem:[#allocation41_spill] sm:$0xff] }
 0x7ae   :  { %v5633_v20 = vadd.f32 %v2348_v32, %v2347_v35  ;;  %v2333_v56 = vadd.f32 %v3424_v4, %v2332_v43  ;;  %v6442_v32 = vld [vmem:[#allocation28_spill] sm:$0xff]  ;;  %v6457_v43 = vld [vmem:[#allocation47_spill] sm:$0xff] }
 0x7af   :  { %v6456_v35 = vld [vmem:[#allocation44_spill] sm:$0xff] }
 0x7b0   :  { %3427 = vtanh.f32 %v5633_v20  ;;  %v2337_v50 = vsel %vm2336_vm2, %v3424_v4, %v2333_v56  ;;  %v6447_v4 = vld [vmem:[#allocation32_spill] sm:$0xff] }
 0x7b1   :  { %v2342_v26 = vsel %vm2339_vm3, %v2341_v36, %v2337_v50  ;;  %v6458_v56 = vld [vmem:[#allocation48_spill] sm:$0xff]  ;;  %v6461_v50 = vld [vmem:[#allocation51_spill] sm:$0xff] }
 0x7b2   :  { %v6462_v36 = vld [vmem:[#allocation52_spill] sm:$0xff] }
 0x7b6   :  { %v3428_v47 = vpop.eup %3427 }
 0x7b7   :  { %v2351_v42 = vmul.f32 %v3428_v47, %v2342_v26  ;;  %v6463_v47 = vld [vmem:[#allocation53_spill] sm:$0xff]  ;;  %v6464_v26 = vld [vmem:[#allocation54_spill] sm:$0xff] }
 0x7b9   :  { %v2353_v28 = vrot.slane %v2351_v42, 6  ;;  %v6465_v42 = vld [vmem:[#allocation55_spill] sm:$0xff] }
 0x7bb   :  { %2371 = vmatmul.f32.vlgmr.msra.gmra.mxu0 %v2353_v28  ;;  %2391 = vmatmul.f32.vlgmr.msra.gmra.mxu1 %v2353_v28 }
 0x7bc   :  { %2411 = vmatmul.f32.vlgmr.msra.gmra.mxu2 %v2353_v28  ;;  %2431 = vmatmul.f32.vlgmr.msra.gmra.mxu3 %v2353_v28  ;;  %v6466_v28 = vld [vmem:[#allocation56_spill] sm:$0xff] }
 0x7bd   :  { %2670 = vmatpush.msra.mxu0 %v5436_v5  ;;  %2690 = vmatpush.msra.mxu1 %v5439_v8 }
 0x7be   :  { %2710 = vmatpush.msra.mxu2 %v5442_v9  ;;  %2730 = vmatpush.msra.mxu3 %v5445_v10 }
 0x7bf   :  { %2671 = vmatpush.msra.mxu0 %v5448_v11  ;;  %2691 = vmatpush.msra.mxu1 %v5451_v39 }
 0x7c0   :  { %2711 = vmatpush.msra.mxu2 %v5454_v27  ;;  %2731 = vmatpush.msra.mxu3 %v5457_v12 }
 0x7c1   :  { %2672 = vmatpush.msra.mxu0 %v5460_v60  ;;  %2692 = vmatpush.msra.mxu1 %v5463_v2 }
 0x7c2   :  { %2712 = vmatpush.msra.mxu2 %v5466_v48  ;;  %2732 = vmatpush.msra.mxu3 %v5469_v23 }
 0x7c3   :  { %2673 = vmatpush.msra.mxu0 %v5472_v44  ;;  %2693 = vmatpush.msra.mxu1 %v5475_v3 }
 0x7c4   :  { %2713 = vmatpush.msra.mxu2 %v5478_v52  ;;  %2733 = vmatpush.msra.mxu3 %v5481_v40 }
 0x7c5   :  { %2674 = vmatpush.msra.mxu0 %v5484_v33  ;;  %2694 = vmatpush.msra.mxu1 %v5487_v49 }
 0x7c6   :  { %2714 = vmatpush.msra.mxu2 %v5490_v63  ;;  %2734 = vmatpush.msra.mxu3 %v5493_v14 }
 0x7c7   :  { %2675 = vmatpush.msra.mxu0 %v5496_v62  ;;  %2695 = vmatpush.msra.mxu1 %v5499_v38 }
 0x7c8   :  { %2715 = vmatpush.msra.mxu2 %v5502_v25  ;;  %2735 = vmatpush.msra.mxu3 %v5505_v45 }
 0x7c9   :  { %2676 = vmatpush.msra.mxu0 %v5508_v24  ;;  %2696 = vmatpush.msra.mxu1 %v5511_v58 }
 0x7ca   :  { %2716 = vmatpush.msra.mxu2 %v5514_v34  ;;  %2736 = vmatpush.msra.mxu3 %v5517_v30 }
 0x7cb   :  { %2677 = vmatpush.msra.mxu0 %v5520_v41  ;;  %2697 = vmatpush.msra.mxu1 %v5523_v54 }
 0x7cc   :  { %2717 = vmatpush.msra.mxu2 %v5526_v16  ;;  %2737 = vmatpush.msra.mxu3 %v5529_v7 }
 0x7cd   :  { %2678 = vmatpush.msra.mxu0 %v5532_v6  ;;  %2698 = vmatpush.msra.mxu1 %v5535_v15 }
 0x7ce   :  { %2718 = vmatpush.msra.mxu2 %v5538_v29  ;;  %2738 = vmatpush.msra.mxu3 %v5541_v37 }
 0x7cf   :  { %2679 = vmatpush.msra.mxu0 %v5544_v55  ;;  %2699 = vmatpush.msra.mxu1 %v5547_v19 }
 0x7d0   :  { %2719 = vmatpush.msra.mxu2 %v6442_v32  ;;  %2739 = vmatpush.msra.mxu3 %v6443_v22 }
 0x7d1   :  { %2680 = vmatpush.msra.mxu0 %v6444_v59  ;;  %2700 = vmatpush.msra.mxu1 %v6445_v31 }
 0x7d2   :  { %2720 = vmatpush.msra.mxu2 %v6446_v61  ;;  %2740 = vmatpush.msra.mxu3 %v6447_v4 }
 0x7d3   :  { %2681 = vmatpush.msra.mxu0 %v6448_v17  ;;  %2701 = vmatpush.msra.mxu1 %v6449_v51 }
 0x7d4   :  { %2721 = vmatpush.msra.mxu2 %v6450_v13  ;;  %2741 = vmatpush.msra.mxu3 %v6451_v57 }
 0x7d5   :  { %2682 = vmatpush.msra.mxu0 %v6452_v1  ;;  %2702 = vmatpush.msra.mxu1 %v6453_v53  ;;  %v6476_v1 = vld [vmem:[#allocation45_spill] sm:$0xff] }
 0x7d6   :  { %2722 = vmatpush.msra.mxu2 %v6454_v18  ;;  %2742 = vmatpush.msra.mxu3 %v6455_v0  ;;  %v6470_v0 = vld [vmem:[#allocation46_spill] sm:$0xff] }
 0x7d7   :  { %2683 = vmatpush.msra.mxu0 %v6456_v35  ;;  %2703 = vmatpush.msra.mxu1 %v6457_v43  ;;  %v6467_v35 = vld [vmem:[#allocation58_spill] sm:$0xff] }
 0x7d8   :  { %2723 = vmatpush.msra.mxu2 %v6458_v56  ;;  %2743 = vmatpush.msra.mxu3 %v6459_v46  ;;  %v6468_v43 = vld [vmem:[#allocation66_spill] sm:$0xff] }
 0x7d9   :  { %2684 = vmatpush.msra.mxu0 %v6460_v21  ;;  %2704 = vmatpush.msra.mxu1 %v6461_v50  ;;  %v6469_v56 = vperm.slane %v6468_v43, 0  ;;  %v6472_v21 = vperm.slane %v6468_v43, 1  ;;  %v6473_v50 = vld [vmem:[#allocation30_spill] sm:$0xff] }
 0x7da   :  { %2724 = vmatpush.msra.mxu2 %v6462_v36  ;;  %2744 = vmatpush.msra.mxu3 %v6463_v47 }
 0x7db   :  { %2685 = vmatpush.msra.mxu0 %v6464_v26  ;;  %2705 = vmatpush.msra.mxu1 %v6465_v42  ;;  %v5703_v46 = vadd.f32 %v6470_v0, %v6469_v56  ;;  %v5708_v18 = vadd.f32 %v6473_v50, %v6472_v21 }
 0x7dc   :  { %2725 = vmatpush.msra.mxu2 %v6466_v28  ;;  %2745 = vmatpush.msra.mxu3 %v6467_v35  ;;  %v6475_v35 = vperm.slane %v6468_v43, 3 }
 0x7dd   :  { %6471 = vst [vmem:[#allocation59_spill] sm:$0xff] %v5703_v46 }
 0x7de   :  { %6474 = vst [vmem:[#allocation60_spill] sm:$0xff] %v5708_v18  ;;  %v5715_v57 = vadd.f32 %v6476_v1, %v6475_v35 }
 0x7e0   :  { %6477 = vst [vmem:[#allocation61_spill] sm:$0xff] %v5715_v57 }
 0x838   :  { %v2372_v36 = vpop.f32.mrf.mxu0  ;;  %v2392_v47 = vpop.f32.mrf.mxu1 }
 0x839   :  { %v2435_v26 = vadd.f32 %v2372_v36, %v5703_v46  ;;  %v2436_v42 = vadd.f32 %v2392_v47, %v5708_v18 }
 0x83b   :  { %v3215_v53 = vmul.f32 -1.442695, %v2435_v26  ;;  %v3216_v28 = vmul.f32 -1.442695, %v2436_v42  ;;  %v6479_v42 = vld [vmem:[#allocation37_spill] sm:$0xff] }
 0x83d   :  { %3429 = vpow2.f32 %v3215_v53  ;;  %v6478_v53 = vperm.slane %v6468_v43, 2 }
 0x83e   :  { %3431 = vpow2.f32 %v3216_v28 }
 0x83f   :  { %v2432_v0 = vpop.f32.mrf.mxu3  ;;  %v2412_v47 = vpop.f32.mrf.mxu2  ;;  %v5721_v18 = vadd.f32 %v6479_v42, %v6478_v53 }
 0x840   :  { %v2438_v56 = vadd.f32 %v2432_v0, %v5715_v57 }
 0x841   :  { %6480 = vst [vmem:[#allocation63_spill] sm:$0xff] %v5721_v18  ;;  %v2437_v28 = vadd.f32 %v2412_v47, %v5721_v18 }
 0x842   :  { %v3217_v21 = vmul.f32 -1.442695, %v2438_v56 }
 0x843   :  { %v3430_v50 = vpop.eup %3429 }
 0x844   :  { %v3432_v13 = vpop.eup %3431  ;;  %v2442_v51 = vadd.f32 1.0, %v3430_v50  ;;  %3433 = vpow2.f32 %v3217_v21 }
 0x845   :  { %v2461_v36 = vadd.f32 1.0, %v3432_v13 }
 0x846   :  { %3435 = vrcp.f32 %v2442_v51  ;;  %v2454_v13 = vand.u32 2147483648, %v2442_v51  ;;  %v2452_v4 = vand.u32 2147483647, %v2442_v51  ;;  %vm2448_vm6 = vweird.f32 %v2442_v51 }
 0x847   :  { %3437 = vrcp.f32 %v2461_v36  ;;  %v2473_v46 = vand.u32 2147483648, %v2461_v36  ;;  %v2471_v53 = vand.u32 2147483647, %v2461_v36  ;;  %vm2467_vm7 = vweird.f32 %v2461_v36 }
 0x848   :  { %v2455_v47 = vor.u32 1.1754944e-38, %v2454_v13  ;;  %vm2453_vm10 = vcmp.eq.f32.partialorder %v2452_v4, 8.507059e+37 }
 0x849   :  { %vm2472_vm0 = vcmp.eq.f32.partialorder %v2471_v53, 8.507059e+37 }
 0x84a   :  { %v3434_v26 = vpop.eup %3433 }
 0x84b   :  { %v2481_v1 = vadd.f32 1.0, %v3434_v26 }
 0x84c   :  { %v3436_v35 = vpop.eup %3435 }
 0x84d   :  { %v3438_v0 = vpop.eup %3437  ;;  %v2444_v56 = vmul.f32 %v3436_v35, %v2442_v51  ;;  %3439 = vrcp.f32 %v2481_v1  ;;  %vm2449_vm4 = vweird.f32 %v3436_v35  ;;  %vm2487_vm11 = vweird.f32 %v2481_v1 }
 0x84e   :  { %v2463_v57 = vmul.f32 %v3438_v0, %v2461_v36  ;;  %3441 = vtanh.f32 %v2437_v28  ;;  %vm2468_vm5 = vweird.f32 %v3438_v0  ;;  %vm2450_vm8 = vmor %vm2448_vm6, %vm2449_vm4  ;;  %v2498_v28 = vrot.slane %v5633_v20, 6 }
 0x84f   :  { %v2445_v50 = vsub.f32 1.0, %v2444_v56  ;;  %vm2469_vm9 = vmor %vm2467_vm7, %vm2468_vm5  ;;  %v2474_v56 = vor.u32 1.1754944e-38, %v2473_v46  ;;  %v2493_v46 = vand.u32 2147483648, %v2481_v1  ;;  %v2491_v4 = vand.u32 2147483647, %v2481_v1 }
 0x850   :  { %v2464_v21 = vsub.f32 1.0, %v2463_v57 }
 0x851   :  { %v2446_v17 = vmul.f32 %v3436_v35, %v2445_v50  ;;  %vm2492_vm14 = vcmp.eq.f32.partialorder %v2491_v4, 8.507059e+37 }
 0x852   :  { %v2465_v43 = vmul.f32 %v3438_v0, %v2464_v21 }
 0x853   :  { %v3440_v42 = vpop.eup %3439  ;;  %v2447_v26 = vadd.f32 %v3436_v35, %v2446_v17 }
 0x854   :  { %v2466_v18 = vadd.f32 %v3438_v0, %v2465_v43  ;;  %v2483_v61 = vmul.f32 %v3440_v42, %v2481_v1  ;;  %v3442_v50 = vpop.eup %3441  ;;  %vm2488_vm1 = vweird.f32 %v3440_v42 }
 0x855   :  { %v2451_v57 = vsel %vm2450_vm8, %v3436_v35, %v2447_v26  ;;  %vm2489_vm12 = vmor %vm2487_vm11, %vm2488_vm1  ;;  %v2494_v35 = vor.u32 1.1754944e-38, %v2493_v46 }
 0x856   :  { %v2456_v31 = vsel %vm2453_vm10, %v2455_v47, %v2451_v57  ;;  %v2470_v59 = vsel %vm2469_vm9, %v3438_v0, %v2466_v18  ;;  %v2484_v21 = vsub.f32 1.0, %v2483_v61 }
 0x857   :  { %v2475_v22 = vsel %vm2472_vm0, %v2474_v56, %v2470_v59  ;;  %v2501_v32 = vmul.f32 %v3442_v50, %v2456_v31 }
 0x858   :  { %v2500_v17 = vmul.f32 %v2498_v28, %v2475_v22  ;;  %v2485_v51 = vmul.f32 %v3440_v42, %v2484_v21  ;;  %v6510_v28 = vld [vmem:[#allocation63_spill] sm:$0xff] }
 0x85a   :  { %v5725_v36 = vadd.f32 %v2501_v32, %v2500_v17  ;;  %v2486_v13 = vadd.f32 %v3440_v42, %v2485_v51  ;;  %v6509_v32 = vld [vmem:[#allocation61_spill] sm:$0xff] }
 0x85c   :  { %3443 = vtanh.f32 %v5725_v36  ;;  %v2490_v20 = vsel %vm2489_vm12, %v3440_v42, %v2486_v13 }
 0x85d   :  { %v2495_v0 = vsel %vm2492_vm14, %v2494_v35, %v2490_v20 }
 0x862   :  { %v3444_v18 = vpop.eup %3443 }
 0x863   :  { %v2504_v61 = vmul.f32 %v3444_v18, %v2495_v0 }
 0x865   :  { %2521 = vmatmul.f32.vlgmr.msrb.gmra.mxu0 %v2504_v61  ;;  %2541 = vmatmul.f32.vlgmr.msrb.gmra.mxu1 %v2504_v61 }
 0x866   :  { %2561 = vmatmul.f32.vlgmr.msrb.gmra.mxu2 %v2504_v61  ;;  %2581 = vmatmul.f32.vlgmr.msrb.gmra.mxu3 %v2504_v61 }
 0x867   :  { %2835 = vmatpush.msrb.mxu0 %v5436_v5  ;;  %2855 = vmatpush.msrb.mxu1 %v5439_v8  ;;  %v6481_v5 = vld [vmem:[#allocation28_spill] sm:$0xff]  ;;  %v6482_v8 = vld [vmem:[#allocation29_spill] sm:$0xff] }
 0x868   :  { %2875 = vmatpush.msrb.mxu2 %v5442_v9  ;;  %2895 = vmatpush.msrb.mxu3 %v5445_v10  ;;  %v6483_v9 = vld [vmem:[#allocation57_spill] sm:$0xff] }
 0x869   :  { %2836 = vmatpush.msrb.mxu0 %v5448_v11  ;;  %2856 = vmatpush.msrb.mxu1 %v5451_v39  ;;  %v6484_v10 = vld [vmem:[#allocation65_spill] sm:$0xff]  ;;  %v6485_v11 = vld [vmem:[#allocation27_spill] sm:$0xff]  ;;  %v6486_v39 = vld [vmem:[#allocation32_spill] sm:$0xff] }
 0x86a   :  { %2876 = vmatpush.msrb.mxu2 %v5454_v27  ;;  %2896 = vmatpush.msrb.mxu3 %v5457_v12  ;;  %v6487_v27 = vld [vmem:[#allocation35_spill] sm:$0xff]  ;;  %v6488_v12 = vld [vmem:[#allocation36_spill] sm:$0xff] }
 0x86b   :  { %2837 = vmatpush.msrb.mxu0 %v5460_v60  ;;  %2857 = vmatpush.msrb.mxu1 %v5463_v2  ;;  %v6489_v60 = vld [vmem:[#allocation31_spill] sm:$0xff]  ;;  %v6490_v2 = vld [vmem:[#allocation38_spill] sm:$0xff] }
 0x86c   :  { %2877 = vmatpush.msrb.mxu2 %v5466_v48  ;;  %2897 = vmatpush.msrb.mxu3 %v5469_v23  ;;  %v6491_v48 = vld [vmem:[#allocation39_spill] sm:$0xff]  ;;  %v6492_v23 = vld [vmem:[#allocation40_spill] sm:$0xff] }
 0x86d   :  { %2838 = vmatpush.msrb.mxu0 %v5472_v44  ;;  %2858 = vmatpush.msrb.mxu1 %v5475_v3  ;;  %v6493_v44 = vld [vmem:[#allocation41_spill] sm:$0xff]  ;;  %v6494_v3 = vld [vmem:[#allocation43_spill] sm:$0xff] }
 0x86e   :  { %2878 = vmatpush.msrb.mxu2 %v5478_v52  ;;  %2898 = vmatpush.msrb.mxu3 %v5481_v40  ;;  %v6495_v52 = vld [vmem:[#allocation44_spill] sm:$0xff]  ;;  %v6496_v40 = vld [vmem:[#allocation47_spill] sm:$0xff] }
 0x86f   :  { %2839 = vmatpush.msrb.mxu0 %v5484_v33  ;;  %2859 = vmatpush.msrb.mxu1 %v5487_v49  ;;  %v6497_v33 = vld [vmem:[#allocation48_spill] sm:$0xff]  ;;  %v6498_v49 = vld [vmem:[#allocation49_spill] sm:$0xff] }
 0x870   :  { %2879 = vmatpush.msrb.mxu2 %v5490_v63  ;;  %2899 = vmatpush.msrb.mxu3 %v5493_v14  ;;  %v6499_v63 = vld [vmem:[#allocation50_spill] sm:$0xff]  ;;  %v6500_v14 = vld [vmem:[#allocation51_spill] sm:$0xff] }
 0x871   :  { %2840 = vmatpush.msrb.mxu0 %v5496_v62  ;;  %2860 = vmatpush.msrb.mxu1 %v5499_v38  ;;  %v6501_v62 = vld [vmem:[#allocation52_spill] sm:$0xff]  ;;  %v6502_v38 = vld [vmem:[#allocation53_spill] sm:$0xff] }
 0x872   :  { %2880 = vmatpush.msrb.mxu2 %v5502_v25  ;;  %2900 = vmatpush.msrb.mxu3 %v5505_v45  ;;  %v6503_v25 = vld [vmem:[#allocation54_spill] sm:$0xff]  ;;  %v6504_v45 = vld [vmem:[#allocation55_spill] sm:$0xff] }
 0x873   :  { %2841 = vmatpush.msrb.mxu0 %v5508_v24  ;;  %2861 = vmatpush.msrb.mxu1 %v5511_v58  ;;  %v6505_v24 = vld [vmem:[#allocation56_spill] sm:$0xff]  ;;  %v6506_v58 = vld [vmem:[#allocation58_spill] sm:$0xff] }
 0x874   :  { %2881 = vmatpush.msrb.mxu2 %v5514_v34  ;;  %2901 = vmatpush.msrb.mxu3 %v5517_v30 }
 0x875   :  { %2842 = vmatpush.msrb.mxu0 %v5520_v41  ;;  %2862 = vmatpush.msrb.mxu1 %v5523_v54 }
 0x876   :  { %2882 = vmatpush.msrb.mxu2 %v5526_v16  ;;  %2902 = vmatpush.msrb.mxu3 %v5529_v7  ;;  %v6507_v16 = vld [vmem:[#allocation59_spill] sm:$0xff] }
 0x877   :  { %2843 = vmatpush.msrb.mxu0 %v5532_v6  ;;  %2863 = vmatpush.msrb.mxu1 %v5535_v15  ;;  %v6508_v6 = vld [vmem:[#allocation60_spill] sm:$0xff] }
 0x878   :  { %2883 = vmatpush.msrb.mxu2 %v5538_v29  ;;  %2903 = vmatpush.msrb.mxu3 %v5541_v37 }
 0x879   :  { %2844 = vmatpush.msrb.mxu0 %v5544_v55  ;;  %2864 = vmatpush.msrb.mxu1 %v5547_v19 }
 0x87a   :  { %2884 = vmatpush.msrb.mxu2 %v6481_v5  ;;  %2904 = vmatpush.msrb.mxu3 %v6482_v8 }
 0x87b   :  { %2845 = vmatpush.msrb.mxu0 %v6483_v9  ;;  %2865 = vmatpush.msrb.mxu1 %v6484_v10 }
 0x87c   :  { %2885 = vmatpush.msrb.mxu2 %v6485_v11  ;;  %2905 = vmatpush.msrb.mxu3 %v6486_v39  ;;  %v2660_v39 = vrot.slane %v5725_v36, 6 }
 0x87d   :  { %2846 = vmatpush.msrb.mxu0 %v6487_v27  ;;  %2866 = vmatpush.msrb.mxu1 %v6488_v12 }
 0x87e   :  { %2886 = vmatpush.msrb.mxu2 %v6489_v60  ;;  %2906 = vmatpush.msrb.mxu3 %v6490_v2 }
 0x87f   :  { %2847 = vmatpush.msrb.mxu0 %v6491_v48  ;;  %2867 = vmatpush.msrb.mxu1 %v6492_v23 }
 0x880   :  { %2887 = vmatpush.msrb.mxu2 %v6493_v44  ;;  %2907 = vmatpush.msrb.mxu3 %v6494_v3 }
 0x881   :  { %2848 = vmatpush.msrb.mxu0 %v6495_v52  ;;  %2868 = vmatpush.msrb.mxu1 %v6496_v40 }
 0x882   :  { %2888 = vmatpush.msrb.mxu2 %v6497_v33  ;;  %2908 = vmatpush.msrb.mxu3 %v6498_v49 }
 0x883   :  { %2849 = vmatpush.msrb.mxu0 %v6499_v63  ;;  %2869 = vmatpush.msrb.mxu1 %v6500_v14 }
 0x884   :  { %2889 = vmatpush.msrb.mxu2 %v6501_v62  ;;  %2909 = vmatpush.msrb.mxu3 %v6502_v38 }
 0x885   :  { %2850 = vmatpush.msrb.mxu0 %v6503_v25  ;;  %2870 = vmatpush.msrb.mxu1 %v6504_v45 }
 0x886   :  { %2890 = vmatpush.msrb.mxu2 %v6505_v24  ;;  %2910 = vmatpush.msrb.mxu3 %v6506_v58 }
 0x8e2   :  { %v2522_v34 = vpop.f32.mrf.mxu0  ;;  %v2542_v30 = vpop.f32.mrf.mxu1 }
 0x8e3   :  { %v2589_v41 = vrot.slane %v2522_v34, 6  ;;  %v2590_v54 = vrot.slane %v2542_v30, 6 }
 0x8e5   :  { %v2597_v7 = vadd.f32 %v2589_v41, %v6507_v16  ;;  %v2598_v15 = vadd.f32 %v2590_v54, %v6508_v6 }
 0x8e7   :  { %v3218_v29 = vmul.f32 -1.442695, %v2597_v7  ;;  %v3219_v37 = vmul.f32 -1.442695, %v2598_v15 }
 0x8e9   :  { %3445 = vpow2.f32 %v3218_v29  ;;  %v2582_v55 = vpop.f32.mrf.mxu3  ;;  %v2562_v42 = vpop.f32.mrf.mxu2 }
 0x8ea   :  { %3447 = vpow2.f32 %v3219_v37  ;;  %v2592_v19 = vrot.slane %v2582_v55, 6  ;;  %v2591_v26 = vrot.slane %v2562_v42, 6 }
 0x8ec   :  { %v2600_v22 = vadd.f32 %v2592_v19, %v6509_v32  ;;  %v2599_v50 = vadd.f32 %v2591_v26, %v6510_v28 }
 0x8ee   :  { %v3220_v59 = vmul.f32 -1.442695, %v2600_v22 }
 0x8ef   :  { %v3446_v31 = vpop.eup %3445 }
 0x8f0   :  { %v3448_v1 = vpop.eup %3447  ;;  %v2604_v43 = vadd.f32 1.0, %v3446_v31  ;;  %3449 = vpow2.f32 %v3220_v59 }
 0x8f1   :  { %v2623_v53 = vadd.f32 1.0, %v3448_v1 }
 0x8f2   :  { %3451 = vrcp.f32 %v2604_v43  ;;  %v2616_v4 = vand.u32 2147483648, %v2604_v43  ;;  %v2614_v18 = vand.u32 2147483647, %v2604_v43  ;;  %vm2610_vm2 = vweird.f32 %v2604_v43 }
 0x8f3   :  { %3453 = vrcp.f32 %v2623_v53  ;;  %v2635_v20 = vand.u32 2147483648, %v2623_v53  ;;  %v2633_v61 = vand.u32 2147483647, %v2623_v53  ;;  %vm2629_vm3 = vweird.f32 %v2623_v53 }
 0x8f4   :  { %v2617_v9 = vor.u32 1.1754944e-38, %v2616_v4  ;;  %vm2615_vm6 = vcmp.eq.f32.partialorder %v2614_v18, 8.507059e+37 }
 0x8f5   :  { %v2636_v27 = vor.u32 1.1754944e-38, %v2635_v20  ;;  %vm2634_vm7 = vcmp.eq.f32.partialorder %v2633_v61, 8.507059e+37 }
 0x8f6   :  { %v3450_v47 = vpop.eup %3449 }
 0x8f7   :  { %v2643_v56 = vadd.f32 1.0, %v3450_v47 }
 0x8f8   :  { %v3452_v57 = vpop.eup %3451 }
 0x8f9   :  { %v3454_v21 = vpop.eup %3453  ;;  %v2606_v17 = vmul.f32 %v3452_v57, %v2604_v43  ;;  %3455 = vrcp.f32 %v2643_v56  ;;  %vm2611_vm13 = vweird.f32 %v3452_v57  ;;  %v2655_v36 = vand.u32 2147483648, %v2643_v56 }
 0x8fa   :  { %v2625_v51 = vmul.f32 %v3454_v21, %v2623_v53  ;;  %3457 = vtanh.f32 %v2599_v50  ;;  %vm2630_vm15 = vweird.f32 %v3454_v21  ;;  %vm2612_vm4 = vmor %vm2610_vm2, %vm2611_vm13  ;;  %vm2649_vm9 = vweird.f32 %v2643_v56 }
 0x8fb   :  { %v2607_v13 = vsub.f32 1.0, %v2606_v17  ;;  %vm2631_vm5 = vmor %vm2629_vm3, %vm2630_vm15  ;;  %v2653_v63 = vand.u32 2147483647, %v2643_v56  ;;  %v2656_v62 = vor.u32 1.1754944e-38, %v2655_v36 }
 0x8fc   :  { %v2626_v46 = vsub.f32 1.0, %v2625_v51 }
 0x8fd   :  { %v2608_v35 = vmul.f32 %v3452_v57, %v2607_v13  ;;  %vm2654_vm0 = vcmp.eq.f32.partialorder %v2653_v63, 8.507059e+37 }
 0x8fe   :  { %v2627_v0 = vmul.f32 %v3454_v21, %v2626_v46 }
 0x8ff   :  { %v3456_v5 = vpop.eup %3455  ;;  %v2609_v8 = vadd.f32 %v3452_v57, %v2608_v35 }
 0x900   :  { %v2628_v10 = vadd.f32 %v3454_v21, %v2627_v0  ;;  %v2645_v11 = vmul.f32 %v3456_v5, %v2643_v56  ;;  %v3458_v60 = vpop.eup %3457  ;;  %vm2650_vm8 = vweird.f32 %v3456_v5 }
 0x901   :  { %v2613_v12 = vsel %vm2612_vm4, %v3452_v57, %v2609_v8  ;;  %vm2651_vm10 = vmor %vm2649_vm9, %vm2650_vm8 }
 0x902   :  { %v2618_v2 = vsel %vm2615_vm6, %v2617_v9, %v2613_v12  ;;  %v2632_v48 = vsel %vm2631_vm5, %v3454_v21, %v2628_v10  ;;  %v2646_v23 = vsub.f32 1.0, %v2645_v11 }
 0x903   :  { %v2637_v44 = vsel %vm2634_vm7, %v2636_v27, %v2632_v48  ;;  %v2663_v3 = vmul.f32 %v3458_v60, %v2618_v2 }
 0x904   :  { %v2662_v52 = vmul.f32 %v2660_v39, %v2637_v44  ;;  %v2647_v40 = vmul.f32 %v3456_v5, %v2646_v23 }
 0x906   :  { %v5797_v33 = vadd.f32 %v2663_v3, %v2662_v52  ;;  %v2648_v49 = vadd.f32 %v3456_v5, %v2647_v40 }
 0x908   :  { %3459 = vtanh.f32 %v5797_v33  ;;  %v2652_v14 = vsel %vm2651_vm10, %v3456_v5, %v2648_v49  ;;  %v2825_v11 = vrot.slane %v5797_v33, 6 }
 0x909   :  { %v2657_v25 = vsel %vm2654_vm0, %v2656_v62, %v2652_v14 }
 0x90e   :  { %v3460_v38 = vpop.eup %3459 }
 0x90f   :  { %v2666_v45 = vmul.f32 %v3460_v38, %v2657_v25 }
 0x911   :  { %v2668_v24 = vrot.slane %v2666_v45, 2 }
 0x913   :  { %2686 = vmatmul.f32.vlgmr.msra.gmra.mxu0 %v2668_v24  ;;  %2706 = vmatmul.f32.vlgmr.msra.gmra.mxu1 %v2668_v24 }
 0x914   :  { %2726 = vmatmul.f32.vlgmr.msra.gmra.mxu2 %v2668_v24  ;;  %2746 = vmatmul.f32.vlgmr.msra.gmra.mxu3 %v2668_v24  ;;  %v3016_v24 = vld [vmem:[#allocation13 + $0x78] sm:$0xff] }
 0x915   :  { %3024 = vmatpush.msra.mxu0 %v3016_v24  ;;  %3044 = vmatpush.msra.mxu1 %v3016_v24 }
 0x916   :  { %3064 = vmatpush.msra.mxu2 %v3016_v24 }
 0x990   :  { %v2687_v58 = vpop.f32.mrf.mxu0  ;;  %v2707_v34 = vpop.f32.mrf.mxu1 }
 0x991   :  { %v2754_v30 = vrot.slane %v2687_v58, 4  ;;  %v2755_v41 = vrot.slane %v2707_v34, 4  ;;  %v3015_v58 = vld [vmem:[#allocation13 + $0x70] sm:$0xff]  ;;  %v3014_v34 = vld [vmem:[#allocation13 + $0x68] sm:$0xff] }
 0x992   :  { %3025 = vmatpush.msra.mxu0 %v3015_v58  ;;  %3045 = vmatpush.msra.mxu1 %v3015_v58 }
 0x993   :  { %v2762_v54 = vadd.f32 %v2754_v30, %v6507_v16  ;;  %v2763_v7 = vadd.f32 %v2755_v41, %v6508_v6  ;;  %3065 = vmatpush.msra.mxu2 %v3015_v58  ;;  %v3013_v30 = vld [vmem:[#allocation13 + $0x60] sm:$0xff]  ;;  %v3012_v41 = vld [vmem:[#allocation13 + $0x58] sm:$0xff] }
 0x994   :  { %3026 = vmatpush.msra.mxu0 %v3014_v34  ;;  %3046 = vmatpush.msra.mxu1 %v3014_v34 }
 0x995   :  { %v3221_v15 = vmul.f32 -1.442695, %v2762_v54  ;;  %v3222_v29 = vmul.f32 -1.442695, %v2763_v7  ;;  %3066 = vmatpush.msra.mxu2 %v3014_v34  ;;  %v3011_v54 = vld [vmem:[#allocation13 + $0x50] sm:$0xff]  ;;  %v3010_v7 = vld [vmem:[#allocation13 + $0x48] sm:$0xff] }
 0x996   :  { %3027 = vmatpush.msra.mxu0 %v3013_v30  ;;  %3047 = vmatpush.msra.mxu1 %v3013_v30 }
 0x997   :  { %3461 = vpow2.f32 %v3221_v15  ;;  %v2747_v37 = vpop.f32.mrf.mxu3  ;;  %v2727_v53 = vpop.f32.mrf.mxu2  ;;  %3067 = vmatpush.msra.mxu2 %v3013_v30  ;;  %v3009_v15 = vld [vmem:[#allocation13 + $0x40] sm:$0xff] }
 0x998   :  { %3463 = vpow2.f32 %v3222_v29  ;;  %v2757_v55 = vrot.slane %v2747_v37, 4  ;;  %v2756_v42 = vrot.slane %v2727_v53, 4  ;;  %3028 = vmatpush.msra.mxu0 %v3012_v41  ;;  %3048 = vmatpush.msra.mxu1 %v3012_v41 }
 0x999   :  { %3068 = vmatpush.msra.mxu2 %v3012_v41 }
 0x99a   :  { %v2765_v19 = vadd.f32 %v2757_v55, %v6509_v32  ;;  %v2764_v57 = vadd.f32 %v2756_v42, %v6510_v28  ;;  %3029 = vmatpush.msra.mxu0 %v3011_v54  ;;  %3049 = vmatpush.msra.mxu1 %v3011_v54  ;;  %v3006_v42 = vld [vmem:[#allocation13 + $0x28] sm:$0xff] }
 0x99b   :  { %3069 = vmatpush.msra.mxu2 %v3011_v54 }
 0x99c   :  { %v3223_v22 = vmul.f32 -1.442695, %v2765_v19  ;;  %3030 = vmatpush.msra.mxu0 %v3010_v7  ;;  %3050 = vmatpush.msra.mxu1 %v3010_v7 }
 0x99d   :  { %v3462_v59 = vpop.eup %3461  ;;  %3070 = vmatpush.msra.mxu2 %v3010_v7 }
 0x99e   :  { %v3464_v31 = vpop.eup %3463  ;;  %v2769_v1 = vadd.f32 1.0, %v3462_v59  ;;  %3465 = vpow2.f32 %v3223_v22  ;;  %3031 = vmatpush.msra.mxu0 %v3009_v15  ;;  %3051 = vmatpush.msra.mxu1 %v3009_v15  ;;  %v3008_v22 = vld [vmem:[#allocation13 + $0x38] sm:$0xff] }
 0x99f   :  { %v2788_v43 = vadd.f32 1.0, %v3464_v31  ;;  %3071 = vmatpush.msra.mxu2 %v3009_v15 }
 0x9a0   :  { %3467 = vrcp.f32 %v2769_v1  ;;  %v2781_v46 = vand.u32 2147483648, %v2769_v1  ;;  %v2779_v35 = vand.u32 2147483647, %v2769_v1  ;;  %vm2775_vm12 = vweird.f32 %v2769_v1  ;;  %3032 = vmatpush.msra.mxu0 %v3008_v22  ;;  %3052 = vmatpush.msra.mxu1 %v3008_v22 }
 0x9a1   :  { %3469 = vrcp.f32 %v2788_v43  ;;  %v2800_v4 = vand.u32 2147483648, %v2788_v43  ;;  %v2798_v0 = vand.u32 2147483647, %v2788_v43  ;;  %vm2794_vm14 = vweird.f32 %v2788_v43  ;;  %3072 = vmatpush.msra.mxu2 %v3008_v22 }
 0x9a2   :  { %v2782_v8 = vor.u32 1.1754944e-38, %v2781_v46  ;;  %vm2780_vm2 = vcmp.eq.f32.partialorder %v2779_v35, 8.507059e+37 }
 0x9a3   :  { %v2801_v39 = vor.u32 1.1754944e-38, %v2800_v4  ;;  %vm2799_vm3 = vcmp.eq.f32.partialorder %v2798_v0, 8.507059e+37 }
 0x9a4   :  { %v3466_v26 = vpop.eup %3465 }
 0x9a5   :  { %v2808_v47 = vadd.f32 1.0, %v3466_v26  ;;  %v3005_v26 = vld [vmem:[#allocation13 + $0x20] sm:$0xff] }
 0x9a6   :  { %v3468_v56 = vpop.eup %3467 }
 0x9a7   :  { %v3470_v50 = vpop.eup %3469  ;;  %v2771_v21 = vmul.f32 %v3468_v56, %v2769_v1  ;;  %3471 = vrcp.f32 %v2808_v47  ;;  %vm2776_vm1 = vweird.f32 %v3468_v56  ;;  %v2820_v33 = vand.u32 2147483648, %v2808_v47  ;;  %v3007_v1 = vld [vmem:[#allocation13 + $0x30] sm:$0xff] }
 0x9a8   :  { %v2790_v17 = vmul.f32 %v3470_v50, %v2788_v43  ;;  %3473 = vtanh.f32 %v2764_v57  ;;  %vm2795_vm11 = vweird.f32 %v3470_v50  ;;  %vm2777_vm13 = vmor %vm2775_vm12, %vm2776_vm1  ;;  %vm2814_vm5 = vweird.f32 %v2808_v47  ;;  %3033 = vmatpush.msra.mxu0 %v3007_v1  ;;  %3053 = vmatpush.msra.mxu1 %v3007_v1 }
 0x9a9   :  { %v2772_v51 = vsub.f32 1.0, %v2771_v21  ;;  %vm2796_vm15 = vmor %vm2794_vm14, %vm2795_vm11  ;;  %v2818_v36 = vand.u32 2147483647, %v2808_v47  ;;  %v2821_v14 = vor.u32 1.1754944e-38, %v2820_v33  ;;  %3073 = vmatpush.msra.mxu2 %v3007_v1  ;;  %v3098_v1 = vld [vmem:[#allocation14 + $0x70] sm:$0xff] }
 0x9aa   :  { %v2791_v13 = vsub.f32 1.0, %v2790_v17  ;;  %3034 = vmatpush.msra.mxu0 %v3006_v42  ;;  %3054 = vmatpush.msra.mxu1 %v3006_v42 }
 0x9ab   :  { %v2773_v20 = vmul.f32 %v3468_v56, %v2772_v51  ;;  %vm2819_vm7 = vcmp.eq.f32.partialorder %v2818_v36, 8.507059e+37  ;;  %3074 = vmatpush.msra.mxu2 %v3006_v42  ;;  %v3001_v51 = vld [vmem:[#allocation13] sm:$0xff]  ;;  %v3095_v42 = vld [vmem:[#allocation14 + $0x58] sm:$0xff] }
 0x9ac   :  { %v2792_v18 = vmul.f32 %v3470_v50, %v2791_v13  ;;  %3035 = vmatpush.msra.mxu0 %v3005_v26  ;;  %3055 = vmatpush.msra.mxu1 %v3005_v26 }
 0x9ad   :  { %v3472_v61 = vpop.eup %3471  ;;  %v2774_v5 = vadd.f32 %v3468_v56, %v2773_v20  ;;  %3075 = vmatpush.msra.mxu2 %v3005_v26  ;;  %v3094_v26 = vld [vmem:[#allocation14 + $0x50] sm:$0xff] }
 0x9ae   :  { %v2793_v9 = vadd.f32 %v3470_v50, %v2792_v18  ;;  %v2810_v10 = vmul.f32 %v3472_v61, %v2808_v47  ;;  %v3474_v12 = vpop.eup %3473  ;;  %vm2815_vm4 = vweird.f32 %v3472_v61 }
 0x9af   :  { %v2778_v27 = vsel %vm2777_vm13, %v3468_v56, %v2774_v5  ;;  %vm2816_vm6 = vmor %vm2814_vm5, %vm2815_vm4  ;;  %v3004_v56 = vld [vmem:[#allocation13 + $0x18] sm:$0xff] }
 0x9b0   :  { %v2783_v60 = vsel %vm2780_vm2, %v2782_v8, %v2778_v27  ;;  %v2797_v2 = vsel %vm2796_vm15, %v3470_v50, %v2793_v9  ;;  %v2811_v48 = vsub.f32 1.0, %v2810_v10  ;;  %3036 = vmatpush.msra.mxu0 %v3004_v56  ;;  %3056 = vmatpush.msra.mxu1 %v3004_v56  ;;  %v3002_v50 = vld [vmem:[#allocation13 + $0x8] sm:$0xff] }
 0x9b1   :  { %v2802_v23 = vsel %vm2799_vm3, %v2801_v39, %v2797_v2  ;;  %v2828_v44 = vmul.f32 %v3474_v12, %v2783_v60  ;;  %3076 = vmatpush.msra.mxu2 %v3004_v56  ;;  %v3092_v56 = vld [vmem:[#allocation14 + $0x40] sm:$0xff] }
 0x9b2   :  { %v2827_v3 = vmul.f32 %v2825_v11, %v2802_v23  ;;  %v2812_v52 = vmul.f32 %v3472_v61, %v2811_v48 }
 0x9b4   :  { %v5805_v40 = vadd.f32 %v2828_v44, %v2827_v3  ;;  %v2813_v49 = vadd.f32 %v3472_v61, %v2812_v52 }
 0x9b6   :  { %3475 = vtanh.f32 %v5805_v40  ;;  %v2817_v63 = vsel %vm2816_vm6, %v3472_v61, %v2813_v49  ;;  %v2990_v49 = vrot.slane %v5805_v40, 6 }
 0x9b7   :  { %v2822_v38 = vsel %vm2819_vm7, %v2821_v14, %v2817_v63 }
 0x9bc   :  { %v3476_v62 = vpop.eup %3475 }
 0x9bd   :  { %v2831_v25 = vmul.f32 %v3476_v62, %v2822_v38 }
 0x9bf   :  { %v2833_v45 = vrot.slane %v2831_v25, 4 }
 0x9c1   :  { %2851 = vmatmul.f32.vlgmr.msrb.gmra.mxu0 %v2833_v45  ;;  %2871 = vmatmul.f32.vlgmr.msrb.gmra.mxu1 %v2833_v45 }
 0x9c2   :  { %2891 = vmatmul.f32.vlgmr.msrb.gmra.mxu2 %v2833_v45  ;;  %2911 = vmatmul.f32.vlgmr.msrb.gmra.mxu3 %v2833_v45 }
 0xa3e   :  { %v2852_v29 = vpop.f32.mrf.mxu0  ;;  %v2872_v37 = vpop.f32.mrf.mxu1 }
 0xa3f   :  { %v2919_v55 = vrot.slane %v2852_v29, 2  ;;  %v2920_v19 = vrot.slane %v2872_v37, 2 }
 0xa41   :  { %v2927_v59 = vadd.f32 %v2919_v55, %v6507_v16  ;;  %v2928_v31 = vadd.f32 %v2920_v19, %v6508_v6  ;;  %v3003_v16 = vld [vmem:[#allocation13 + $0x10] sm:$0xff]  ;;  %v3243_v19 = vld [vmem:[%s5840_s8] ss:$0 sm:$0xff]  ;;  %s3911_s8 = smov [#allocation17]  }
 0xa42   :  { %3037 = vmatpush.msra.mxu0 %v3003_v16  ;;  %3057 = vmatpush.msra.mxu1 %v3003_v16  ;;  %s3140_s28 = sshll.u32 %s3911_s8, 4  ;;  %s3141_s28 = int_to_ptr.vmem [resolvable:$true] %s3140_s28 }
 0xa43   :  { %v3224_v43 = vmul.f32 -1.442695, %v2927_v59  ;;  %v3225_v53 = vmul.f32 -1.442695, %v2928_v31  ;;  %3077 = vmatpush.msra.mxu2 %v3003_v16  ;;  %v3099_v31 = vld [vmem:[#allocation14 + $0x78] sm:$0xff]  ;;  %v3090_v16 = vld [vmem:[#allocation14 + $0x30] sm:$0xff] }
 0xa44   :  { %3038 = vmatpush.msra.mxu0 %v3002_v50  ;;  %3058 = vmatpush.msra.mxu1 %v3002_v50 }
 0xa45   :  { %3477 = vpow2.f32 %v3224_v43  ;;  %v2912_v47 = vpop.f32.mrf.mxu3  ;;  %v2892_v20 = vpop.f32.mrf.mxu2  ;;  %3078 = vmatpush.msra.mxu2 %v3002_v50  ;;  %3104 = vmatpush.msra.mxu3 %v3099_v31  ;;  %v3097_v43 = vld [vmem:[#allocation14 + $0x68] sm:$0xff]  ;;  %v3088_v50 = vld [vmem:[#allocation14 + $0x20] sm:$0xff] }
 0xa46   :  { %3479 = vpow2.f32 %v3225_v53  ;;  %v2922_v57 = vrot.slane %v2912_v47, 2  ;;  %3039 = vmatpush.msra.mxu0 %v3001_v51  ;;  %3059 = vmatpush.msra.mxu1 %v3001_v51  ;;  %v3096_v53 = vld [vmem:[#allocation14 + $0x60] sm:$0xff]  ;;  %v3093_v47 = vld [vmem:[#allocation14 + $0x48] sm:$0xff] }
 0xa47   :  { %3079 = vmatpush.msra.mxu2 %v3001_v51  ;;  %3105 = vmatpush.msra.mxu3 %v3098_v1 }
 0xa48   :  { %v2930_v6 = vadd.f32 %v2922_v57, %v6509_v32  ;;  %v2921_v32 = vrot.slane %v2892_v20, 2  ;;  %v3091_v57 = vld [vmem:[#allocation14 + $0x38] sm:$0xff] }
 0xa49   :  { %3106 = vmatpush.msra.mxu3 %v3097_v43 }
 0xa4a   :  { %v3226_v21 = vmul.f32 -1.442695, %v2930_v6  ;;  %v2929_v61 = vadd.f32 %v2921_v32, %v6510_v28  ;;  %v3089_v6 = vld [vmem:[#allocation14 + $0x28] sm:$0xff] }
 0xa4b   :  { %v3478_v17 = vpop.eup %3477  ;;  %3107 = vmatpush.msra.mxu3 %v3096_v53 }
 0xa4c   :  { %v3480_v13 = vpop.eup %3479  ;;  %v2934_v46 = vadd.f32 1.0, %v3478_v17  ;;  %3481 = vpow2.f32 %v3226_v21  ;;  %v3087_v21 = vld [vmem:[#allocation14 + $0x18] sm:$0xff]  ;;  %v3086_v17 = vld [vmem:[#allocation14 + $0x10] sm:$0xff] }
 0xa4d   :  { %v2953_v4 = vadd.f32 1.0, %v3480_v13  ;;  %3108 = vmatpush.msra.mxu3 %v3095_v42 }
 0xa4e   :  { %3483 = vrcp.f32 %v2934_v46  ;;  %v2946_v39 = vand.u32 2147483648, %v2934_v46  ;;  %v2944_v60 = vand.u32 2147483647, %v2934_v46  ;;  %vm2940_vm10 = vweird.f32 %v2934_v46 }
 0xa4f   :  { %3485 = vrcp.f32 %v2953_v4  ;;  %v2965_v27 = vand.u32 2147483648, %v2953_v4  ;;  %v2963_v48 = vand.u32 2147483647, %v2953_v4  ;;  %vm2959_vm0 = vweird.f32 %v2953_v4  ;;  %3109 = vmatpush.msra.mxu3 %v3094_v26 }
 0xa50   :  { %v2947_v28 = vor.u32 1.1754944e-38, %v2946_v39  ;;  %vm2945_vm12 = vcmp.eq.f32.partialorder %v2944_v60, 8.507059e+37 }
 0xa51   :  { %v2966_v33 = vor.u32 1.1754944e-38, %v2965_v27  ;;  %vm2964_vm14 = vcmp.eq.f32.partialorder %v2963_v48, 8.507059e+37  ;;  %3110 = vmatpush.msra.mxu3 %v3093_v47 }
 0xa52   :  { %v3482_v35 = vpop.eup %3481 }
 0xa53   :  { %v2973_v18 = vadd.f32 1.0, %v3482_v35  ;;  %3111 = vmatpush.msra.mxu3 %v3092_v56  ;;  %v3244_v35 = vld [vmem:[%s5842_s10] ss:$0 sm:$0xff] }
 0xa54   :  { %v3484_v0 = vpop.eup %3483 }
 0xa55   :  { %v3486_v5 = vpop.eup %3485  ;;  %v2936_v8 = vmul.f32 %v3484_v0, %v2934_v46  ;;  %3487 = vrcp.f32 %v2973_v18  ;;  %vm2941_vm8 = vweird.f32 %v3484_v0  ;;  %v2985_v41 = vand.u32 2147483648, %v2973_v18  ;;  %3112 = vmatpush.msra.mxu3 %v3091_v57  ;;  %v3085_v46 = vld [vmem:[#allocation14 + $0x8] sm:$0xff] }
 0xa56   :  { %v2955_v9 = vmul.f32 %v3486_v5, %v2953_v4  ;;  %3489 = vtanh.f32 %v2929_v61  ;;  %vm2960_vm9 = vweird.f32 %v3486_v5  ;;  %vm2942_vm1 = vmor %vm2940_vm10, %vm2941_vm8  ;;  %vm2979_vm15 = vweird.f32 %v2973_v18  ;;  %v3084_v4 = vld [vmem:[#allocation14] sm:$0xff] }
 0xa57   :  { %v2937_v10 = vsub.f32 1.0, %v2936_v8  ;;  %vm2961_vm11 = vmor %vm2959_vm0, %vm2960_vm9  ;;  %v2983_v40 = vand.u32 2147483647, %v2973_v18  ;;  %v2986_v7 = vor.u32 1.1754944e-38, %v2985_v41  ;;  %3113 = vmatpush.msra.mxu3 %v3090_v16 }
 0xa58   :  { %v2956_v11 = vsub.f32 1.0, %v2955_v9 }
 0xa59   :  { %v2938_v12 = vmul.f32 %v3484_v0, %v2937_v10  ;;  %vm2984_vm3 = vcmp.eq.f32.partialorder %v2983_v40, 8.507059e+37  ;;  %3114 = vmatpush.msra.mxu3 %v3089_v6 }
 0xa5a   :  { %v2957_v2 = vmul.f32 %v3486_v5, %v2956_v11 }
 0xa5b   :  { %v3488_v23 = vpop.eup %3487  ;;  %v2939_v44 = vadd.f32 %v3484_v0, %v2938_v12  ;;  %3115 = vmatpush.msra.mxu3 %v3088_v50 }
 0xa5c   :  { %v2958_v3 = vadd.f32 %v3486_v5, %v2957_v2  ;;  %v2975_v52 = vmul.f32 %v3488_v23, %v2973_v18  ;;  %v3490_v63 = vpop.eup %3489  ;;  %vm2980_vm13 = vweird.f32 %v3488_v23 }
 0xa5d   :  { %v2943_v36 = vsel %vm2942_vm1, %v3484_v0, %v2939_v44  ;;  %vm2981_vm2 = vmor %vm2979_vm15, %vm2980_vm13  ;;  %3116 = vmatpush.msra.mxu3 %v3087_v21 }
 0xa5e   :  { %v2948_v14 = vsel %vm2945_vm12, %v2947_v28, %v2943_v36  ;;  %v2962_v62 = vsel %vm2961_vm11, %v3486_v5, %v2958_v3  ;;  %v2976_v38 = vsub.f32 1.0, %v2975_v52 }
 0xa5f   :  { %v2967_v25 = vsel %vm2964_vm14, %v2966_v33, %v2962_v62  ;;  %v2993_v45 = vmul.f32 %v3490_v63, %v2948_v14  ;;  %3117 = vmatpush.msra.mxu3 %v3086_v17 }
 0xa60   :  { %v2992_v24 = vmul.f32 %v2990_v49, %v2967_v25  ;;  %v2977_v58 = vmul.f32 %v3488_v23, %v2976_v38 }
 0xa61   :  { %3118 = vmatpush.msra.mxu3 %v3085_v46 }
 0xa62   :  { %v2994_v34 = vadd.f32 %v2993_v45, %v2992_v24  ;;  %v2978_v30 = vadd.f32 %v3488_v23, %v2977_v58 }
 0xa63   :  { %3119 = vmatpush.msra.mxu3 %v3084_v4 }
 0xa64   :  { %3491 = vtanh.f32 %v2994_v34  ;;  %3000 = vst [vmem:[#allocation19 - $0x4] sm:$0xc0] %v2994_v34  ;;  %v2982_v54 = vsel %vm2981_vm2, %v3488_v23, %v2978_v30 }
 0xa65   :  { %v2987_v29 = vsel %vm2984_vm3, %v2986_v7, %v2982_v54 }
 0xa6a   :  { %v3492_v15 = vpop.eup %3491 }
 0xa6b   :  { %v2996_v37 = vmul.f32 %v3492_v15, %v2987_v29 }
 0xa6d   :  { %v3022_v55 = vrot.slane %v2996_v37, 6  ;;  %2998 = vst [vmem:[#allocation17 - $0x4] sm:$0xc0] %v2996_v37 }
 0xa6e   :  { %3148 = dma.vmem_to_hbm [thread:$0]  %s3141_s28, 64, %s3143_s14, [#allocation18], %s3901_s17, %s3901_s17, %s3912_s0  }
 0xa6f   :  { %3040 = vmatmul.f32.vlgmr.msra.gmra.mxu0 %v3022_v55  ;;  %3161 = dma.vmem_to_hbm [thread:$0]  %s3154_s1, 64, %s3156_s19, [#allocation18], %s3901_s17, %s3901_s17, %s3912_s0  }
 0xaec   :  { %v3041_v22 = vpop.f32.mrf.mxu0 }
 0xaed   :  { %v3042_v59 = vadd.f32 %v3243_v19, %v3041_v22 }
 0xaef   :  { %3060 = vmatmul.f32.vlgmr.msra.gmra.mxu1 %v3042_v59 }
 0xb6c   :  { %v3061_v51 = vpop.f32.mrf.mxu1 }
 0xb6d   :  { %v3062_v13 = vadd.f32 %v3243_v19, %v3061_v51 }
 0xb6f   :  { %3080 = vmatmul.f32.vlgmr.msra.gmra.mxu2 %v3062_v13 }
 0xbf2   :  { %v3081_v20 = vpop.f32.mrf.mxu2 }
 0xbf3   :  { %v3082_v32 = vadd.f32 %v3243_v19, %v3081_v20 }
 0xbf5   :  { %3120 = vmatmul.f32.vlgmr.msra.gmra.mxu3 %v3082_v32 }
 0xc78   :  { %v3121_v18 = vpop.f32.mrf.mxu3 }
 0xc79   :  { %v3122_v0 = vadd.f32 %v3244_v35, %v3121_v18 }
 0xc7b   :  { %3124 = vst [vmem:[#allocation16] sm:$0x3] %v3122_v0 }
 0xc7c   :  { %3135 = dma.vmem_to_hbm [thread:$0]  %s3131_s23, 32, %s3133_s24, [#allocation4]  }
 0xc7d   :  { %3895 = dma.done.wait [#allocation4], 32  }
 0xc7e   :  { %3896 = vsyncadd [#allocation4], 4294967264 }
 0xc7f   :  { %3897 = dma.done.wait [#allocation18], 128  }
 0xc80   :  { %3898 = vsyncadd [#allocation18], 4294967168 }
 0xc81   :  { %3174 = vsyncpa [#allocation3], 1 }
 0xc82   :  { %3175 = vsyncpa [#allocation6], 1 }
 0xc83   :  { %3176 = vsyncpa [#allocation9], 1 }
 0xc84   :  { %3177 = vsyncpa [#allocation12], 1 }
 0xc85   :  { %3178 = vsyncpa [#allocation15], 1 }
 0xc86   :  { %3179 = vsyncpa [#allocation4], 1 }
 0xc87   :  { %3180 = vsyncpa [#allocation18], 1 }

</bundles_post_ra>
